<compile_context>
chip_gen: v6e
topology: v6e:2x2x1
jax: 0.10.0
libtpu: 0.0.40
codegen_flags: <defaults>
</compile_context>

<pallas_src>
import functools

import jax
import jax.numpy as jnp
from jax.experimental import pallas as pl
from jax.experimental.pallas import tpu as pltpu

C1 = 0.01 ** 2
C2 = 0.03 ** 2


def _ssim_kernel(x_ref, y_ref, out_ref, hpad_ref, *, H, W):
    """One grid step: Pb planes -> one partial sum of the clamped SSIM loss map."""
    x = x_ref[...].astype(jnp.float32)        # (Pb, H, W)
    y = y_ref[...].astype(jnp.float32)
    Pb = x.shape[0]

    # Lane-edge masks for the 1x3 (width) sum; hoisted out of box3 (5 uses).
    col = jax.lax.broadcasted_iota(jnp.int32, (Pb, H, W), 2)
    not_first = col > 0            # column j-1 exists
    not_last = col < (W - 1)       # column j+1 exists
    zero = jnp.zeros((), jnp.float32)

    # Zero the two padding rows of the scratch (rows 1..H are rewritten below,
    # so the zero border survives all five box3 calls).
    zrow = jnp.zeros((Pb, 1, W), jnp.float32)
    hpad_ref[:, 0:1, :] = zrow
    hpad_ref[:, H + 1:H + 2, :] = zrow

    def box3(a):
        # 3x3 zero-padded box mean == AvgPool2d(3,1,1) with count_include_pad=True,
        # computed separably:
        #   1) 1x3 sum along lanes (W): roll + edge masks (no wrapper pad needed)
        #   2) 3x1 sum along sublanes (H): slices of a zero-bordered VMEM scratch
        nxt = jnp.where(not_last, pltpu.roll(a, W - 1, 2), zero)   # a[:, :, j+1]
        prv = jnp.where(not_first, pltpu.roll(a, 1, 2), zero)      # a[:, :, j-1]
        r = (prv + nxt) + a                                        # (Pb, H, W)
        hpad_ref[:, 1:H + 1, :] = r
        c = (hpad_ref[:, 0:H, :] + hpad_ref[:, 2:H + 2, :]) + r    # (Pb, H, W)
        return c * (1.0 / 9.0)

    mu_x = box3(x)
    mu_y = box3(y)
    mu_xx = mu_x * mu_x
    mu_yy = mu_y * mu_y
    mu_xy = mu_x * mu_y
    sigma_x = box3(x * x) - mu_xx
    sigma_y = box3(y * y) - mu_yy
    sigma_xy = box3(x * y) - mu_xy

    ssim_n = (2.0 * mu_xy + C1) * (2.0 * sigma_xy + C2)
    ssim_d = (mu_xx + mu_yy + C1) * ((sigma_x + sigma_y) + C2)
    loss_map = jnp.clip((1.0 - ssim_n / ssim_d) * 0.5, 0.0, 1.0)

    # Per-block partial sum (one reduce per big block, not per plane); written
    # lane-dense so the store is an unmasked full-vreg write.  Final combine
    # happens outside the kernel, keeping the grid axis fully parallel.
    partial = jnp.sum(loss_map)
    out_ref[...] = jnp.full((1, 128), partial, dtype=jnp.float32)


def _plan_blocks(P, H, W, vmem_budget_bytes=6 << 20, bytes_per_elem=96):
    """Pick planes-per-step Pb (and padded plane count) from a VMEM budget.

    bytes_per_elem ~ inputs (double-buffered) + ~20 live fp32 intermediates;
    the 6 MiB budget stays well under the scoped VMEM default on v5e (16 MiB)
    and v7x (32 MiB of 64 MiB physical).
    """
    pb_max = max(1, min(P, vmem_budget_bytes // (bytes_per_elem * H * W)))
    # Prefer the largest divisor of P that fits (avoids padding the plane axis).
    best = 1
    d = 1
    while d * d <= P:
        if P % d == 0:
            if d <= pb_max:
                best = max(best, d)
            if P // d <= pb_max:
                best = max(best, P // d)
        d += 1
    if best * 2 >= pb_max or best == P:
        return best, P
    # Awkward P (e.g. prime): use the full budget and zero-pad the plane axis.
    # All-zero planes contribute exactly 0 to the SSIM-loss sum.
    num_blocks = -(-P // pb_max)
    return pb_max, num_blocks * pb_max


def ssim_loss(x, y):
    """x, y: (N, C, H, W) -> scalar SSIM loss (same as the PyTorch module)."""
    N, Cc, H, W = x.shape
    P = N * Cc
    xp = x.reshape(P, H, W).astype(jnp.float32)   # free view: no pad, no copy
    yp = y.reshape(P, H, W).astype(jnp.float32)

    Pb, P_pad = _plan_blocks(P, H, W)
    if P_pad != P:
        pad = ((0, P_pad - P), (0, 0), (0, 0))
        xp = jnp.pad(xp, pad)
        yp = jnp.pad(yp, pad)
    G = P_pad // Pb

    kernel = functools.partial(_ssim_kernel, H=H, W=W)
    partials = pl.pallas_call(
        kernel,
        out_shape=jax.ShapeDtypeStruct((G, 128), jnp.float32),
        grid_spec=pltpu.PrefetchScalarGridSpec(
            num_scalar_prefetch=0,
            grid=(G,),
            in_specs=[
                pl.BlockSpec((Pb, H, W), lambda i: (i, 0, 0)),
                pl.BlockSpec((Pb, H, W), lambda i: (i, 0, 0)),
            ],
            out_specs=pl.BlockSpec((1, 128), lambda i: (i, 0)),
            scratch_shapes=[pltpu.VMEM((Pb, H + 2, W), jnp.float32)],
        ),
        compiler_params=pltpu.CompilerParams(
            dimension_semantics=("parallel",),   # independent blocks -> both TCs on v7x
            vmem_limit_bytes=32 * 1024 * 1024,
        ),
    )(xp, yp)
    # Each block broadcast its scalar partial across 128 lanes; lane 0 is exact.
    return jnp.sum(partials[:, 0]) / float(P * H * W)


def _ssim_loss_ref(x, y):
    """Pure-JAX reference for correctness checking."""

    def pool(a):
        ap = jnp.pad(a, ((0, 0), (0, 0), (1, 1), (1, 1)))
        H, W = a.shape[-2:]
        s = jnp.zeros_like(a)
        for di in range(3):
            for dj in range(3):
                s = s + ap[:, :, di:di + H, dj:dj + W]
        return s / 9.0

    mu_x, mu_y = pool(x), pool(y)
    sigma_x = pool(x * x) - mu_x * mu_x
    sigma_y = pool(y * y) - mu_y * mu_y
    sigma_xy = pool(x * y) - mu_x * mu_y
    n = (2 * mu_x * mu_y + C1) * (2 * sigma_xy + C2)
    d = (mu_x ** 2 + mu_y ** 2 + C1) * (sigma_x + sigma_y + C2)
    return jnp.mean(jnp.clip((1 - n / d) / 2, 0.0, 1.0))


if __name__ == "__main__":
    key = jax.random.PRNGKey(0)
    kx, ky = jax.random.split(key)
    N, Cc, H, W = 2, 4, 16, 16
    x = jax.random.uniform(kx, (N, Cc, H, W), dtype=jnp.float32)
    y = jax.random.uniform(ky, (N, Cc, H, W), dtype=jnp.float32)

    out = jax.block_until_ready(ssim_loss(x, y))
    ref = jax.block_until_ready(_ssim_loss_ref(x, y))

    assert jnp.isfinite(out), "kernel produced non-finite output"
    assert abs(float(out) - float(ref)) < 1e-5, (float(out), float(ref))
    print("KERNEL_OK")
</pallas_src>

<mosaic_0001>
module attributes {stable_mosaic.version = 11 : i64} {
  func.func @_ssim_kernel(%arg0: i32, %arg1: memref<8x16x16xf32, #tpu.memory_space<vmem>>, %arg2: memref<8x16x16xf32, #tpu.memory_space<vmem>>, %arg3: memref<1x128xf32, #tpu.memory_space<vmem>>, %arg4: memref<8x18x16xf32, #tpu.memory_space<vmem>>) attributes {dimension_semantics = [#tpu.dimension_semantics<parallel>], iteration_bounds = array<i64: 1>, scalar_prefetch = 0 : i64, scratch_operands = 1 : i64, tpu.core_type = #tpu.core_type<tc>, window_params = [{transform_indices = @transform_0, window_bounds = array<i64: 8, 16, 16>}, {transform_indices = @transform_1, window_bounds = array<i64: 8, 16, 16>}, {transform_indices = @transform_2, window_bounds = array<i64: 1, 128>}]} {
    %c0 = arith.constant 0 : index
    %c0_0 = arith.constant 0 : index
    %c0_1 = arith.constant 0 : index
    %0 = vector.load %arg1[%c0, %c0_0, %c0_1] : memref<8x16x16xf32, #tpu.memory_space<vmem>>, vector<8x16x16xf32>
    %c0_2 = arith.constant 0 : index
    %c0_3 = arith.constant 0 : index
    %c0_4 = arith.constant 0 : index
    %1 = vector.load %arg2[%c0_2, %c0_3, %c0_4] : memref<8x16x16xf32, #tpu.memory_space<vmem>>, vector<8x16x16xf32>
    %2 = tpu.iota {dimensions = array<i32: 2>} : vector<8x16x16xi32>
    %c0_i32 = arith.constant 0 : i32
    %3 = vector.broadcast %c0_i32 : i32 to vector<8x16x16xi32>
    %4 = arith.cmpi sgt, %2, %3 : vector<8x16x16xi32>
    %c15_i32 = arith.constant 15 : i32
    %5 = vector.broadcast %c15_i32 : i32 to vector<8x16x16xi32>
    %6 = arith.cmpi slt, %2, %5 : vector<8x16x16xi32>
    %cst = arith.constant 0.000000e+00 : f32
    %7 = vector.broadcast %cst : f32 to vector<8x1x16xf32>
    %c0_5 = arith.constant 0 : index
    %c0_6 = arith.constant 0 : index
    %c0_7 = arith.constant 0 : index
    %8 = vector.load %arg4[%c0_5, %c0_6, %c0_7] : memref<8x18x16xf32, #tpu.memory_space<vmem>>, vector<8x1x16xf32>
    tpu.vector_store %arg4[%c0_5, %c0_6, %c0_7], %7 {strides = array<i32>} : memref<8x18x16xf32, #tpu.memory_space<vmem>>, vector<8x1x16xf32>,
    %c0_8 = arith.constant 0 : index
    %c17 = arith.constant 17 : index
    %c0_9 = arith.constant 0 : index
    %9 = vector.load %arg4[%c0_8, %c17, %c0_9] : memref<8x18x16xf32, #tpu.memory_space<vmem>>, vector<8x1x16xf32>
    tpu.vector_store %arg4[%c0_8, %c17, %c0_9], %7 {strides = array<i32>} : memref<8x18x16xf32, #tpu.memory_space<vmem>>, vector<8x1x16xf32>,
    %c15_i32_10 = arith.constant 15 : i32
    %10 = tpu.dynamic_rotate %0 by %c15_i32_10 dim 2 : vector<8x16x16xf32>, i32 -> vector<8x16x16xf32>
    %cst_11 = arith.constant 0.000000e+00 : f32
    %11 = vector.broadcast %cst_11 : f32 to vector<8x16x16xf32>
    %12 = arith.select %6, %10, %11 : vector<8x16x16xi1>, vector<8x16x16xf32>
    %c1_i32 = arith.constant 1 : i32
    %13 = tpu.dynamic_rotate %0 by %c1_i32 dim 2 : vector<8x16x16xf32>, i32 -> vector<8x16x16xf32>
    %cst_12 = arith.constant 0.000000e+00 : f32
    %14 = vector.broadcast %cst_12 : f32 to vector<8x16x16xf32>
    %15 = arith.select %4, %13, %14 : vector<8x16x16xi1>, vector<8x16x16xf32>
    %16 = arith.addf %15, %12 : vector<8x16x16xf32>
    %17 = arith.addf %16, %0 : vector<8x16x16xf32>
    %c0_13 = arith.constant 0 : index
    %c1 = arith.constant 1 : index
    %c0_14 = arith.constant 0 : index
    %18 = vector.load %arg4[%c0_13, %c1, %c0_14] : memref<8x18x16xf32, #tpu.memory_space<vmem>>, vector<8x16x16xf32>
    tpu.vector_store %arg4[%c0_13, %c1, %c0_14], %17 {strides = array<i32>} : memref<8x18x16xf32, #tpu.memory_space<vmem>>, vector<8x16x16xf32>,
    %c0_15 = arith.constant 0 : index
    %c0_16 = arith.constant 0 : index
    %c0_17 = arith.constant 0 : index
    %19 = vector.load %arg4[%c0_15, %c0_16, %c0_17] : memref<8x18x16xf32, #tpu.memory_space<vmem>>, vector<8x16x16xf32>
    %c0_18 = arith.constant 0 : index
    %c2 = arith.constant 2 : index
    %c0_19 = arith.constant 0 : index
    %20 = vector.load %arg4[%c0_18, %c2, %c0_19] : memref<8x18x16xf32, #tpu.memory_space<vmem>>, vector<8x16x16xf32>
    %21 = arith.addf %19, %20 : vector<8x16x16xf32>
    %22 = arith.addf %21, %17 : vector<8x16x16xf32>
    %cst_20 = arith.constant 0.111111112 : f32
    %23 = vector.broadcast %cst_20 : f32 to vector<8x16x16xf32>
    %24 = arith.mulf %22, %23 : vector<8x16x16xf32>
    %c15_i32_21 = arith.constant 15 : i32
    %25 = tpu.dynamic_rotate %1 by %c15_i32_21 dim 2 : vector<8x16x16xf32>, i32 -> vector<8x16x16xf32>
    %cst_22 = arith.constant 0.000000e+00 : f32
    %26 = vector.broadcast %cst_22 : f32 to vector<8x16x16xf32>
    %27 = arith.select %6, %25, %26 : vector<8x16x16xi1>, vector<8x16x16xf32>
    %c1_i32_23 = arith.constant 1 : i32
    %28 = tpu.dynamic_rotate %1 by %c1_i32_23 dim 2 : vector<8x16x16xf32>, i32 -> vector<8x16x16xf32>
    %cst_24 = arith.constant 0.000000e+00 : f32
    %29 = vector.broadcast %cst_24 : f32 to vector<8x16x16xf32>
    %30 = arith.select %4, %28, %29 : vector<8x16x16xi1>, vector<8x16x16xf32>
    %31 = arith.addf %30, %27 : vector<8x16x16xf32>
    %32 = arith.addf %31, %1 : vector<8x16x16xf32>
    %c0_25 = arith.constant 0 : index
    %c1_26 = arith.constant 1 : index
    %c0_27 = arith.constant 0 : index
    %33 = vector.load %arg4[%c0_25, %c1_26, %c0_27] : memref<8x18x16xf32, #tpu.memory_space<vmem>>, vector<8x16x16xf32>
    tpu.vector_store %arg4[%c0_25, %c1_26, %c0_27], %32 {strides = array<i32>} : memref<8x18x16xf32, #tpu.memory_space<vmem>>, vector<8x16x16xf32>,
    %c0_28 = arith.constant 0 : index
    %c0_29 = arith.constant 0 : index
    %c0_30 = arith.constant 0 : index
    %34 = vector.load %arg4[%c0_28, %c0_29, %c0_30] : memref<8x18x16xf32, #tpu.memory_space<vmem>>, vector<8x16x16xf32>
    %c0_31 = arith.constant 0 : index
    %c2_32 = arith.constant 2 : index
    %c0_33 = arith.constant 0 : index
    %35 = vector.load %arg4[%c0_31, %c2_32, %c0_33] : memref<8x18x16xf32, #tpu.memory_space<vmem>>, vector<8x16x16xf32>
    %36 = arith.addf %34, %35 : vector<8x16x16xf32>
    %37 = arith.addf %36, %32 : vector<8x16x16xf32>
    %cst_34 = arith.constant 0.111111112 : f32
    %38 = vector.broadcast %cst_34 : f32 to vector<8x16x16xf32>
    %39 = arith.mulf %37, %38 : vector<8x16x16xf32>
    %40 = arith.mulf %24, %24 : vector<8x16x16xf32>
    %41 = arith.mulf %39, %39 : vector<8x16x16xf32>
    %42 = arith.mulf %24, %39 : vector<8x16x16xf32>
    %43 = arith.mulf %0, %0 : vector<8x16x16xf32>
    %c15_i32_35 = arith.constant 15 : i32
    %44 = tpu.dynamic_rotate %43 by %c15_i32_35 dim 2 : vector<8x16x16xf32>, i32 -> vector<8x16x16xf32>
    %cst_36 = arith.constant 0.000000e+00 : f32
    %45 = vector.broadcast %cst_36 : f32 to vector<8x16x16xf32>
    %46 = arith.select %6, %44, %45 : vector<8x16x16xi1>, vector<8x16x16xf32>
    %c1_i32_37 = arith.constant 1 : i32
    %47 = tpu.dynamic_rotate %43 by %c1_i32_37 dim 2 : vector<8x16x16xf32>, i32 -> vector<8x16x16xf32>
    %cst_38 = arith.constant 0.000000e+00 : f32
    %48 = vector.broadcast %cst_38 : f32 to vector<8x16x16xf32>
    %49 = arith.select %4, %47, %48 : vector<8x16x16xi1>, vector<8x16x16xf32>
    %50 = arith.addf %49, %46 : vector<8x16x16xf32>
    %51 = arith.addf %50, %43 : vector<8x16x16xf32>
    %c0_39 = arith.constant 0 : index
    %c1_40 = arith.constant 1 : index
    %c0_41 = arith.constant 0 : index
    %52 = vector.load %arg4[%c0_39, %c1_40, %c0_41] : memref<8x18x16xf32, #tpu.memory_space<vmem>>, vector<8x16x16xf32>
    tpu.vector_store %arg4[%c0_39, %c1_40, %c0_41], %51 {strides = array<i32>} : memref<8x18x16xf32, #tpu.memory_space<vmem>>, vector<8x16x16xf32>,
    %c0_42 = arith.constant 0 : index
    %c0_43 = arith.constant 0 : index
    %c0_44 = arith.constant 0 : index
    %53 = vector.load %arg4[%c0_42, %c0_43, %c0_44] : memref<8x18x16xf32, #tpu.memory_space<vmem>>, vector<8x16x16xf32>
    %c0_45 = arith.constant 0 : index
    %c2_46 = arith.constant 2 : index
    %c0_47 = arith.constant 0 : index
    %54 = vector.load %arg4[%c0_45, %c2_46, %c0_47] : memref<8x18x16xf32, #tpu.memory_space<vmem>>, vector<8x16x16xf32>
    %55 = arith.addf %53, %54 : vector<8x16x16xf32>
    %56 = arith.addf %55, %51 : vector<8x16x16xf32>
    %cst_48 = arith.constant 0.111111112 : f32
    %57 = vector.broadcast %cst_48 : f32 to vector<8x16x16xf32>
    %58 = arith.mulf %56, %57 : vector<8x16x16xf32>
    %59 = arith.subf %58, %40 : vector<8x16x16xf32>
    %60 = arith.mulf %1, %1 : vector<8x16x16xf32>
    %c15_i32_49 = arith.constant 15 : i32
    %61 = tpu.dynamic_rotate %60 by %c15_i32_49 dim 2 : vector<8x16x16xf32>, i32 -> vector<8x16x16xf32>
    %cst_50 = arith.constant 0.000000e+00 : f32
    %62 = vector.broadcast %cst_50 : f32 to vector<8x16x16xf32>
    %63 = arith.select %6, %61, %62 : vector<8x16x16xi1>, vector<8x16x16xf32>
    %c1_i32_51 = arith.constant 1 : i32
    %64 = tpu.dynamic_rotate %60 by %c1_i32_51 dim 2 : vector<8x16x16xf32>, i32 -> vector<8x16x16xf32>
    %cst_52 = arith.constant 0.000000e+00 : f32
    %65 = vector.broadcast %cst_52 : f32 to vector<8x16x16xf32>
    %66 = arith.select %4, %64, %65 : vector<8x16x16xi1>, vector<8x16x16xf32>
    %67 = arith.addf %66, %63 : vector<8x16x16xf32>
    %68 = arith.addf %67, %60 : vector<8x16x16xf32>
    %c0_53 = arith.constant 0 : index
    %c1_54 = arith.constant 1 : index
    %c0_55 = arith.constant 0 : index
    %69 = vector.load %arg4[%c0_53, %c1_54, %c0_55] : memref<8x18x16xf32, #tpu.memory_space<vmem>>, vector<8x16x16xf32>
    tpu.vector_store %arg4[%c0_53, %c1_54, %c0_55], %68 {strides = array<i32>} : memref<8x18x16xf32, #tpu.memory_space<vmem>>, vector<8x16x16xf32>,
    %c0_56 = arith.constant 0 : index
    %c0_57 = arith.constant 0 : index
    %c0_58 = arith.constant 0 : index
    %70 = vector.load %arg4[%c0_56, %c0_57, %c0_58] : memref<8x18x16xf32, #tpu.memory_space<vmem>>, vector<8x16x16xf32>
    %c0_59 = arith.constant 0 : index
    %c2_60 = arith.constant 2 : index
    %c0_61 = arith.constant 0 : index
    %71 = vector.load %arg4[%c0_59, %c2_60, %c0_61] : memref<8x18x16xf32, #tpu.memory_space<vmem>>, vector<8x16x16xf32>
    %72 = arith.addf %70, %71 : vector<8x16x16xf32>
    %73 = arith.addf %72, %68 : vector<8x16x16xf32>
    %cst_62 = arith.constant 0.111111112 : f32
    %74 = vector.broadcast %cst_62 : f32 to vector<8x16x16xf32>
    %75 = arith.mulf %73, %74 : vector<8x16x16xf32>
    %76 = arith.subf %75, %41 : vector<8x16x16xf32>
    %77 = arith.mulf %0, %1 : vector<8x16x16xf32>
    %c15_i32_63 = arith.constant 15 : i32
    %78 = tpu.dynamic_rotate %77 by %c15_i32_63 dim 2 : vector<8x16x16xf32>, i32 -> vector<8x16x16xf32>
    %cst_64 = arith.constant 0.000000e+00 : f32
    %79 = vector.broadcast %cst_64 : f32 to vector<8x16x16xf32>
    %80 = arith.select %6, %78, %79 : vector<8x16x16xi1>, vector<8x16x16xf32>
    %c1_i32_65 = arith.constant 1 : i32
    %81 = tpu.dynamic_rotate %77 by %c1_i32_65 dim 2 : vector<8x16x16xf32>, i32 -> vector<8x16x16xf32>
    %cst_66 = arith.constant 0.000000e+00 : f32
    %82 = vector.broadcast %cst_66 : f32 to vector<8x16x16xf32>
    %83 = arith.select %4, %81, %82 : vector<8x16x16xi1>, vector<8x16x16xf32>
    %84 = arith.addf %83, %80 : vector<8x16x16xf32>
    %85 = arith.addf %84, %77 : vector<8x16x16xf32>
    %c0_67 = arith.constant 0 : index
    %c1_68 = arith.constant 1 : index
    %c0_69 = arith.constant 0 : index
    %86 = vector.load %arg4[%c0_67, %c1_68, %c0_69] : memref<8x18x16xf32, #tpu.memory_space<vmem>>, vector<8x16x16xf32>
    tpu.vector_store %arg4[%c0_67, %c1_68, %c0_69], %85 {strides = array<i32>} : memref<8x18x16xf32, #tpu.memory_space<vmem>>, vector<8x16x16xf32>,
    %c0_70 = arith.constant 0 : index
    %c0_71 = arith.constant 0 : index
    %c0_72 = arith.constant 0 : index
    %87 = vector.load %arg4[%c0_70, %c0_71, %c0_72] : memref<8x18x16xf32, #tpu.memory_space<vmem>>, vector<8x16x16xf32>
    %c0_73 = arith.constant 0 : index
    %c2_74 = arith.constant 2 : index
    %c0_75 = arith.constant 0 : index
    %88 = vector.load %arg4[%c0_73, %c2_74, %c0_75] : memref<8x18x16xf32, #tpu.memory_space<vmem>>, vector<8x16x16xf32>
    %89 = arith.addf %87, %88 : vector<8x16x16xf32>
    %90 = arith.addf %89, %85 : vector<8x16x16xf32>
    %cst_76 = arith.constant 0.111111112 : f32
    %91 = vector.broadcast %cst_76 : f32 to vector<8x16x16xf32>
    %92 = arith.mulf %90, %91 : vector<8x16x16xf32>
    %93 = arith.subf %92, %42 : vector<8x16x16xf32>
    %cst_77 = arith.constant 2.000000e+00 : f32
    %94 = vector.broadcast %cst_77 : f32 to vector<8x16x16xf32>
    %95 = arith.mulf %94, %42 : vector<8x16x16xf32>
    %cst_78 = arith.constant 9.99999974E-5 : f32
    %96 = vector.broadcast %cst_78 : f32 to vector<8x16x16xf32>
    %97 = arith.addf %95, %96 : vector<8x16x16xf32>
    %cst_79 = arith.constant 2.000000e+00 : f32
    %98 = vector.broadcast %cst_79 : f32 to vector<8x16x16xf32>
    %99 = arith.mulf %98, %93 : vector<8x16x16xf32>
    %cst_80 = arith.constant 8.99999984E-4 : f32
    %100 = vector.broadcast %cst_80 : f32 to vector<8x16x16xf32>
    %101 = arith.addf %99, %100 : vector<8x16x16xf32>
    %102 = arith.mulf %97, %101 : vector<8x16x16xf32>
    %103 = arith.addf %40, %41 : vector<8x16x16xf32>
    %cst_81 = arith.constant 9.99999974E-5 : f32
    %104 = vector.broadcast %cst_81 : f32 to vector<8x16x16xf32>
    %105 = arith.addf %103, %104 : vector<8x16x16xf32>
    %106 = arith.addf %59, %76 : vector<8x16x16xf32>
    %cst_82 = arith.constant 8.99999984E-4 : f32
    %107 = vector.broadcast %cst_82 : f32 to vector<8x16x16xf32>
    %108 = arith.addf %106, %107 : vector<8x16x16xf32>
    %109 = arith.mulf %105, %108 : vector<8x16x16xf32>
    %110 = arith.divf %102, %109 : vector<8x16x16xf32>
    %cst_83 = arith.constant 1.000000e+00 : f32
    %111 = vector.broadcast %cst_83 : f32 to vector<8x16x16xf32>
    %112 = arith.subf %111, %110 : vector<8x16x16xf32>
    %cst_84 = arith.constant 5.000000e-01 : f32
    %113 = vector.broadcast %cst_84 : f32 to vector<8x16x16xf32>
    %114 = arith.mulf %112, %113 : vector<8x16x16xf32>
    %cst_85 = arith.constant 0.000000e+00 : f32
    %cst_86 = arith.constant 1.000000e+00 : f32
    %115 = vector.broadcast %cst_85 : f32 to vector<8x16x16xf32>
    %116 = arith.maximumf %115, %114 : vector<8x16x16xf32>
    %117 = vector.broadcast %cst_86 : f32 to vector<8x16x16xf32>
    %118 = arith.minimumf %117, %116 : vector<8x16x16xf32>
    %119 = vector.shape_cast %118 : vector<8x16x16xf32> to vector<1x8x16x16xf32>
    %cst_87 = arith.constant dense<0.000000e+00> : vector<1xf32>
    %120 = vector.multi_reduction <add>, %119, %cst_87 [1, 2, 3] : vector<1x8x16x16xf32> to vector<1xf32>
    %121 = vector.shape_cast %120 : vector<1xf32> to vector<1x1x1x1xf32>
    %122 = vector.extract %121[0, 0, 0, 0] : f32 from vector<1x1x1x1xf32>
    %123 = vector.broadcast %122 : f32 to vector<1x128xf32>
    %c0_88 = arith.constant 0 : index
    %c0_89 = arith.constant 0 : index
    %124 = vector.load %arg3[%c0_88, %c0_89] : memref<1x128xf32, #tpu.memory_space<vmem>>, vector<1x128xf32>
    tpu.vector_store %arg3[%c0_88, %c0_89], %123 {strides = array<i32>} : memref<1x128xf32, #tpu.memory_space<vmem>>, vector<1x128xf32>,
    return
  }
  func.func @transform_0(%arg0: i32) -> (i32, i32, i32) {
    %c0_i32 = arith.constant 0 : i32
    %c0_i32_0 = arith.constant 0 : i32
    %c0_i32_1 = arith.constant 0 : i32
    return %arg0, %c0_i32, %c0_i32_0 : i32, i32, i32
  }
  func.func @transform_1(%arg0: i32) -> (i32, i32, i32) {
    %c0_i32 = arith.constant 0 : i32
    %c0_i32_0 = arith.constant 0 : i32
    %c0_i32_1 = arith.constant 0 : i32
    return %arg0, %c0_i32, %c0_i32_0 : i32, i32, i32
  }
  func.func @transform_2(%arg0: i32) -> (i32, i32) {
    %c0_i32 = arith.constant 0 : i32
    %c0_i32_0 = arith.constant 0 : i32
    return %arg0, %c0_i32 : i32, i32
  }
}

</mosaic_0001>

<bundles_post_ra>
// kernel: tpu_custom_call.1
= control target key start
LH: loop header
LB: loop body
LE: loop exit
PB: predicated region body
PF: predicated region fallthrough
CT: control target
= control target key end

     0   :  { %7 = vsyncpa [#allocation4], 0  ;;  %s4878_s0 = inlined_call_operand.hbm [shape: f32[8,16,16], index: 0, kind: input, shape index: {}]   ;;  %s4879_s1 = inlined_call_operand.hbm [shape: f32[8,16,16], index: 1, kind: input, shape index: {}]   ;;  %s4880_s2 = inlined_call_operand.hbm [shape: f32[1,128], index: 2, kind: output, shape index: {}]  }
   0x1   :  { %8 = vsyncpa [#allocation7], 0 }
   0x2   :  { %9 = vsyncpa [#allocation5], 0  ;;  %s2523_s9 = smov [#allocation3]  }
   0x3   :  { %s15_s10 = sshll.u32 %s2523_s9, 4  ;;  %s16_s10 = int_to_ptr.vmem [resolvable:$true] %s15_s10 }
   0x4   :  { %s2465_s11 = scalar_lea.vmem %s16_s10, 2048  ;;  %p2470_p1 = scmp.lt.s32.totalorder %s16_s10, %s16_s10 }
   0x5   :  { %p2466_p0 = scmp.ne.s32.totalorder %s16_s10, %s2465_s11  ;;  %p2471_p2 = scmp.lt.s32.totalorder %s2465_s11, %s2465_s11 }
   0x7   :  { %p2472_p3 = por %p2471_p2, %p2470_p1 }
   0x9   :  { %p2473_p4 = pnand %p2472_p3, %p2466_p0 }
   0xb   :  { %2476 = shalt.err (!%p2473_p4)
}
   0xc   :  { %s2524_s12 = smov 128   ;;  %s2525_s13 = smov 8  }
   0xd   :  { %21 = dma.hbm_to_vmem [thread:$0]  %s4878_s0, 2048, %s16_s10, [#allocation4], %s2524_s12, %s2524_s12, %s2525_s13  }
   0xe   :  { %s2526_s16 = smov [#allocation6]  }
   0xf   :  { %s27_s17 = sshll.u32 %s2526_s16, 4  ;;  %s28_s17 = int_to_ptr.vmem [resolvable:$true] %s27_s17 }
  0x10   :  { %s2485_s18 = scalar_lea.vmem %s28_s17, 2048  ;;  %p2490_p6 = scmp.lt.s32.totalorder %s28_s17, %s28_s17 }
  0x11   :  { %p2486_p5 = scmp.ne.s32.totalorder %s28_s17, %s2485_s18  ;;  %p2491_p7 = scmp.lt.s32.totalorder %s2485_s18, %s2485_s18 }
  0x13   :  { %p2492_p8 = por %p2491_p7, %p2490_p6 }
  0x15   :  { %p2493_p9 = pnand %p2492_p8, %p2486_p5 }
  0x17   :  { %2496 = shalt.err (!%p2493_p9)
}
  0x18   :  { %33 = dma.hbm_to_vmem [thread:$0]  %s4879_s1, 2048, %s28_s17, [#allocation7], %s2524_s12, %s2524_s12, %s2525_s13  }
  0x19   :  { %2517 = dma.done.wait [#allocation4], 2048  }
  0x1a   :  { %2518 = vsyncadd [#allocation4], 4294965248 }
  0x1b   :  { %2519 = dma.done.wait [#allocation7], 2048  }
  0x1c   :  { %2520 = vsyncadd [#allocation7], 4294965248  ;;  %v2553_v0 = vld [vmem:[#allocation3] sm:$0xff]  ;;  %v2555_v1 = vld [vmem:[#allocation3 + $0x10] sm:$0xff]  ;;  %s2527_s0 = smov 16   ;;  %vm93_vm0 = vcmask 1047680  }
  0x1d   :  { %94 = vrot.lane.b32.xlu0 %v2553_v0, %s2527_s0  ;;  %100 = vrot.lane.b32.xlu1 %v2555_v1, %s2527_s0  ;;  %v2561_v2 = vld [vmem:[#allocation3 + $0x8] sm:$0xff]  ;;  %v2563_v3 = vld [vmem:[#allocation3 + $0x18] sm:$0xff]  ;;  %v2569_v4 = vld [vmem:[#allocation3 + $0x20] sm:$0xff]  ;;  %s2528_s1 = smov 127   ;;  %vm76_vm1 = vcmask 122880   ;;  %s2530_s21 = smov 113  }
  0x1e   :  { %v2571_v5 = vld [vmem:[#allocation3 + $0x28] sm:$0xff]  ;;  %v2577_v6 = vld [vmem:[#allocation3 + $0x30] sm:$0xff]  ;;  %v2579_v7 = vld [vmem:[#allocation3 + $0x38] sm:$0xff]  ;;  %vm366_vm4 = vcmask 130048   ;;  %s2531_s22 = smov [#allocation8]  }
  0x1f   :  { %v2585_v8 = vld [vmem:[#allocation3 + $0x40] sm:$0xff]  ;;  %v2587_v9 = vld [vmem:[#allocation3 + $0x48] sm:$0xff]  ;;  %v2593_v10 = vld [vmem:[#allocation3 + $0x50] sm:$0xff]  ;;  %s2383_s23 = sshll.u32 %s2531_s22, 4  ;;  %s2384_s23 = int_to_ptr.vmem [resolvable:$true] %s2383_s23 }
  0x20   :  { %v2595_v11 = vld [vmem:[#allocation3 + $0x58] sm:$0xff]  ;;  %v2601_v12 = vld [vmem:[#allocation3 + $0x60] sm:$0xff]  ;;  %v2603_v13 = vld [vmem:[#allocation3 + $0x68] sm:$0xff]  ;;  %s2497_s25 = scalar_lea.vmem %s2384_s23, 16  ;;  %s2501_s26 = scalar_lea.vmem %s2384_s23, 32 }
  0x21   :  { %97 = vrot.lane.b32.xlu0 %v2561_v2, %s2527_s0  ;;  %103 = vrot.lane.b32.xlu1 %v2563_v3, %s2527_s0  ;;  %v2609_v14 = vld [vmem:[#allocation3 + $0x70] sm:$0xff]  ;;  %v2611_v15 = vld [vmem:[#allocation3 + $0x78] sm:$0xff]  ;;  %v2617_v16 = vld [vmem:[#allocation6] sm:$0xff]  ;;  %p2498_p10 = scmp.ne.s32.totalorder %s2384_s23, %s2497_s25  ;;  %p2502_p11 = scmp.lt.s32.totalorder %s2384_s23, %s2384_s23 }
  0x22   :  { %v2619_v17 = vld [vmem:[#allocation6 + $0x8] sm:$0xff]  ;;  %v2625_v18 = vld [vmem:[#allocation6 + $0x10] sm:$0xff]  ;;  %v2627_v19 = vld [vmem:[#allocation6 + $0x18] sm:$0xff]  ;;  %p2503_p12 = scmp.lt.s32.totalorder %s2501_s26, %s2497_s25 }
  0x23   :  { %v2633_v20 = vld [vmem:[#allocation6 + $0x20] sm:$0xff]  ;;  %v2635_v21 = vld [vmem:[#allocation6 + $0x28] sm:$0xff]  ;;  %v2641_v22 = vld [vmem:[#allocation6 + $0x30] sm:$0xff] }
  0x24   :  { %v2643_v23 = vld [vmem:[#allocation6 + $0x38] sm:$0xff]  ;;  %v2649_v24 = vld [vmem:[#allocation6 + $0x40] sm:$0xff]  ;;  %v2651_v25 = vld [vmem:[#allocation6 + $0x48] sm:$0xff]  ;;  %p2504_p13 = por %p2503_p12, %p2502_p11 }
  0x25   :  { %106 = vrot.lane.b32.xlu0 %v2569_v4, %s2527_s0  ;;  %109 = vrot.lane.b32.xlu1 %v2571_v5, %s2527_s0  ;;  %v2657_v26 = vld [vmem:[#allocation6 + $0x50] sm:$0xff]  ;;  %v2659_v27 = vld [vmem:[#allocation6 + $0x58] sm:$0xff]  ;;  %v2665_v28 = vld [vmem:[#allocation6 + $0x60] sm:$0xff] }
  0x26   :  { %v2667_v29 = vld [vmem:[#allocation6 + $0x68] sm:$0xff]  ;;  %v2673_v30 = vld [vmem:[#allocation6 + $0x70] sm:$0xff]  ;;  %v2675_v31 = vld [vmem:[#allocation6 + $0x78] sm:$0xff]  ;;  %p2505_p0 = pnand %p2504_p13, %p2498_p10 }
  0x29   :  { %112 = vrot.lane.b32.xlu0 %v2577_v6, %s2527_s0  ;;  %115 = vrot.lane.b32.xlu1 %v2579_v7, %s2527_s0 }
  0x2d   :  { %118 = vrot.lane.b32.xlu0 %v2585_v8, %s2527_s0  ;;  %121 = vrot.lane.b32.xlu1 %v2587_v9, %s2527_s0 }
  0x31   :  { %124 = vrot.lane.b32.xlu0 %v2593_v10, %s2527_s0  ;;  %127 = vrot.lane.b32.xlu1 %v2595_v11, %s2527_s0 }
  0x35   :  { %130 = vrot.lane.b32.xlu0 %v2601_v12, %s2527_s0  ;;  %133 = vrot.lane.b32.xlu1 %v2603_v13, %s2527_s0 }
  0x39   :  { %136 = vrot.lane.b32.xlu0 %v2609_v14, %s2527_s0  ;;  %139 = vrot.lane.b32.xlu1 %v2611_v15, %s2527_s0 }
  0x3d   :  { %463 = vrot.lane.b32.xlu0 %v2617_v16, %s2527_s0  ;;  %466 = vrot.lane.b32.xlu1 %v2619_v17, %s2527_s0 }
  0x41   :  { %469 = vrot.lane.b32.xlu0 %v2625_v18, %s2527_s0  ;;  %472 = vrot.lane.b32.xlu1 %v2627_v19, %s2527_s0 }
  0x45   :  { %475 = vrot.lane.b32.xlu0 %v2633_v20, %s2527_s0  ;;  %478 = vrot.lane.b32.xlu1 %v2635_v21, %s2527_s0 }
  0x49   :  { %481 = vrot.lane.b32.xlu0 %v2641_v22, %s2527_s0  ;;  %484 = vrot.lane.b32.xlu1 %v2643_v23, %s2527_s0 }
  0x4d   :  { %487 = vrot.lane.b32.xlu0 %v2649_v24, %s2527_s0  ;;  %490 = vrot.lane.b32.xlu1 %v2651_v25, %s2527_s0 }
  0x51   :  { %493 = vrot.lane.b32.xlu0 %v2657_v26, %s2527_s0  ;;  %496 = vrot.lane.b32.xlu1 %v2659_v27, %s2527_s0 }
  0x55   :  { %499 = vrot.lane.b32.xlu0 %v2665_v28, %s2527_s0  ;;  %502 = vrot.lane.b32.xlu1 %v2667_v29, %s2527_s0 }
  0x59   :  { %505 = vrot.lane.b32.xlu0 %v2673_v30, %s2527_s0  ;;  %508 = vrot.lane.b32.xlu1 %v2675_v31, %s2527_s0 }
  0x8f   :  { %v95_v32 = vpop.permute.xlu0 %94  ;;  %v101_v33 = vpop.permute.xlu1 %100 }
  0x90   :  { %v96_v34 = vsel %vm93_vm0, %v95_v32, %v2553_v0  ;;  %v102_v35 = vsel %vm93_vm0, %v101_v33, %v2555_v1 }
  0x91   :  { %142 = vrot.lane.b32.xlu0 %v96_v34, %s2527_s0 }
  0x93   :  { %v98_v36 = vpop.permute.xlu0 %97  ;;  %v104_v37 = vpop.permute.xlu1 %103 }
  0x94   :  { %v99_v38 = vsel %vm93_vm0, %v98_v36, %v2561_v2  ;;  %v105_v39 = vsel %vm93_vm0, %v104_v37, %v2563_v3 }
  0x95   :  { %146 = vrot.lane.b32.xlu0 %v102_v35, %s2527_s0  ;;  %144 = vrot.lane.b32.xlu1 %v99_v38, %s2527_s0 }
  0x97   :  { %v107_v40 = vpop.permute.xlu0 %106  ;;  %v110_v41 = vpop.permute.xlu1 %109 }
  0x98   :  { %v108_v42 = vsel %vm93_vm0, %v107_v40, %v2569_v4  ;;  %v111_v43 = vsel %vm93_vm0, %v110_v41, %v2571_v5 }
  0x99   :  { %148 = vrot.lane.b32.xlu1 %v105_v39, %s2527_s0  ;;  %150 = vrot.lane.b32.xlu0 %v108_v42, %s2527_s0 }
  0x9b   :  { %v113_v44 = vpop.permute.xlu0 %112  ;;  %v116_v45 = vpop.permute.xlu1 %115 }
  0x9c   :  { %v114_v46 = vsel %vm93_vm0, %v113_v44, %v2577_v6  ;;  %v117_v47 = vsel %vm93_vm0, %v116_v45, %v2579_v7 }
  0x9d   :  { %152 = vrot.lane.b32.xlu1 %v111_v43, %s2527_s0  ;;  %154 = vrot.lane.b32.xlu0 %v114_v46, %s2527_s0 }
  0x9f   :  { %v119_v48 = vpop.permute.xlu0 %118  ;;  %v122_v49 = vpop.permute.xlu1 %121 }
  0xa0   :  { %v120_v50 = vsel %vm93_vm0, %v119_v48, %v2585_v8  ;;  %v123_v51 = vsel %vm93_vm0, %v122_v49, %v2587_v9 }
  0xa1   :  { %156 = vrot.lane.b32.xlu1 %v117_v47, %s2527_s0  ;;  %158 = vrot.lane.b32.xlu0 %v120_v50, %s2527_s0 }
  0xa3   :  { %v125_v52 = vpop.permute.xlu0 %124  ;;  %v128_v53 = vpop.permute.xlu1 %127 }
  0xa4   :  { %v126_v54 = vsel %vm93_vm0, %v125_v52, %v2593_v10  ;;  %v129_v55 = vsel %vm93_vm0, %v128_v53, %v2595_v11 }
  0xa5   :  { %160 = vrot.lane.b32.xlu1 %v123_v51, %s2527_s0  ;;  %162 = vrot.lane.b32.xlu0 %v126_v54, %s2527_s0 }
  0xa7   :  { %v131_v56 = vpop.permute.xlu0 %130  ;;  %v134_v57 = vpop.permute.xlu1 %133 }
  0xa8   :  { %v132_v58 = vsel %vm93_vm0, %v131_v56, %v2601_v12  ;;  %v135_v59 = vsel %vm93_vm0, %v134_v57, %v2603_v13 }
  0xa9   :  { %164 = vrot.lane.b32.xlu1 %v129_v55, %s2527_s0  ;;  %166 = vrot.lane.b32.xlu0 %v132_v58, %s2527_s0 }
  0xab   :  { %v137_v60 = vpop.permute.xlu0 %136  ;;  %v140_v61 = vpop.permute.xlu1 %139 }
  0xac   :  { %v138_v62 = vsel %vm93_vm0, %v137_v60, %v2609_v14  ;;  %v141_v63 = vsel %vm93_vm0, %v140_v61, %v2611_v15 }
  0xad   :  { %168 = vrot.lane.b32.xlu1 %v135_v59, %s2527_s0  ;;  %170 = vrot.lane.b32.xlu0 %v138_v62, %s2527_s0 }
  0xaf   :  { %v464_v32 = vpop.permute.xlu0 %463  ;;  %v467_v33 = vpop.permute.xlu1 %466 }
  0xb0   :  { %v465_v34 = vsel %vm93_vm0, %v464_v32, %v2617_v16  ;;  %v468_v35 = vsel %vm93_vm0, %v467_v33, %v2619_v17 }
  0xb1   :  { %172 = vrot.lane.b32.xlu1 %v141_v63, %s2527_s0  ;;  %511 = vrot.lane.b32.xlu0 %v465_v34, %s2527_s0 }
  0xb3   :  { %v470_v36 = vpop.permute.xlu0 %469  ;;  %v473_v37 = vpop.permute.xlu1 %472 }
  0xb4   :  { %v471_v38 = vsel %vm93_vm0, %v470_v36, %v2625_v18  ;;  %v474_v39 = vsel %vm93_vm0, %v473_v37, %v2627_v19 }
  0xb5   :  { %513 = vrot.lane.b32.xlu1 %v468_v35, %s2527_s0  ;;  %515 = vrot.lane.b32.xlu0 %v471_v38, %s2527_s0 }
  0xb7   :  { %v476_v40 = vpop.permute.xlu0 %475  ;;  %v479_v41 = vpop.permute.xlu1 %478 }
  0xb8   :  { %v477_v42 = vsel %vm93_vm0, %v476_v40, %v2633_v20  ;;  %v480_v43 = vsel %vm93_vm0, %v479_v41, %v2635_v21 }
  0xb9   :  { %517 = vrot.lane.b32.xlu1 %v474_v39, %s2527_s0  ;;  %519 = vrot.lane.b32.xlu0 %v477_v42, %s2527_s0 }
  0xbb   :  { %v482_v44 = vpop.permute.xlu0 %481  ;;  %v485_v45 = vpop.permute.xlu1 %484 }
  0xbc   :  { %v483_v46 = vsel %vm93_vm0, %v482_v44, %v2641_v22  ;;  %v486_v47 = vsel %vm93_vm0, %v485_v45, %v2643_v23 }
  0xbd   :  { %521 = vrot.lane.b32.xlu1 %v480_v43, %s2527_s0  ;;  %523 = vrot.lane.b32.xlu0 %v483_v46, %s2527_s0 }
  0xbf   :  { %v488_v48 = vpop.permute.xlu0 %487  ;;  %v491_v49 = vpop.permute.xlu1 %490 }
  0xc0   :  { %v489_v50 = vsel %vm93_vm0, %v488_v48, %v2649_v24  ;;  %v492_v51 = vsel %vm93_vm0, %v491_v49, %v2651_v25 }
  0xc1   :  { %525 = vrot.lane.b32.xlu1 %v486_v47, %s2527_s0  ;;  %527 = vrot.lane.b32.xlu0 %v489_v50, %s2527_s0 }
  0xc3   :  { %v494_v52 = vpop.permute.xlu0 %493  ;;  %v497_v53 = vpop.permute.xlu1 %496 }
  0xc4   :  { %v495_v54 = vsel %vm93_vm0, %v494_v52, %v2657_v26  ;;  %v498_v55 = vsel %vm93_vm0, %v497_v53, %v2659_v27 }
  0xc5   :  { %529 = vrot.lane.b32.xlu1 %v492_v51, %s2527_s0  ;;  %531 = vrot.lane.b32.xlu0 %v495_v54, %s2527_s0  ;;  %v2529_v54 = vmov 0.0  }
  0xc6   :  { %77 = vst.msk [vmem:[#allocation2] sm:$0x1] %vm76_vm1, %v2529_v54  ;;  %78 = vst.msk [vmem:[#allocation2 + $0x18] sm:$0x1] %vm76_vm1, %v2529_v54 }
  0xc7   :  { %v500_v56 = vpop.permute.xlu0 %499  ;;  %v503_v57 = vpop.permute.xlu1 %502  ;;  %79 = vst.msk [vmem:[#allocation2 + $0x30] sm:$0x1] %vm76_vm1, %v2529_v54  ;;  %80 = vst.msk [vmem:[#allocation2 + $0x48] sm:$0x1] %vm76_vm1, %v2529_v54 }
  0xc8   :  { %v501_v58 = vsel %vm93_vm0, %v500_v56, %v2665_v28  ;;  %v504_v59 = vsel %vm93_vm0, %v503_v57, %v2667_v29  ;;  %81 = vst.msk [vmem:[#allocation2 + $0x60] sm:$0x1] %vm76_vm1, %v2529_v54  ;;  %82 = vst.msk [vmem:[#allocation2 + $0x78] sm:$0x1] %vm76_vm1, %v2529_v54 }
  0xc9   :  { %533 = vrot.lane.b32.xlu1 %v498_v55, %s2527_s0  ;;  %535 = vrot.lane.b32.xlu0 %v501_v58, %s2527_s0  ;;  %83 = vst.msk [vmem:[#allocation2 + $0x90] sm:$0x1] %vm76_vm1, %v2529_v54  ;;  %84 = vst.msk [vmem:[#allocation2 + $0xa8] sm:$0x1] %vm76_vm1, %v2529_v54 }
  0xca   :  { %85 = vst.msk [vmem:[#allocation2 + $0x11] sm:$0x1] %vm76_vm1, %v2529_v54  ;;  %86 = vst.msk [vmem:[#allocation2 + $0x29] sm:$0x1] %vm76_vm1, %v2529_v54 }
  0xcb   :  { %v506_v60 = vpop.permute.xlu0 %505  ;;  %v509_v61 = vpop.permute.xlu1 %508  ;;  %87 = vst.msk [vmem:[#allocation2 + $0x41] sm:$0x1] %vm76_vm1, %v2529_v54  ;;  %88 = vst.msk [vmem:[#allocation2 + $0x59] sm:$0x1] %vm76_vm1, %v2529_v54 }
  0xcc   :  { %v507_v62 = vsel %vm93_vm0, %v506_v60, %v2673_v30  ;;  %v510_v63 = vsel %vm93_vm0, %v509_v61, %v2675_v31  ;;  %89 = vst.msk [vmem:[#allocation2 + $0x71] sm:$0x1] %vm76_vm1, %v2529_v54  ;;  %90 = vst.msk [vmem:[#allocation2 + $0x89] sm:$0x1] %vm76_vm1, %v2529_v54 }
  0xcd   :  { %537 = vrot.lane.b32.xlu1 %v504_v59, %s2527_s0  ;;  %539 = vrot.lane.b32.xlu0 %v507_v62, %s2527_s0  ;;  %91 = vst.msk [vmem:[#allocation2 + $0xa1] sm:$0x1] %vm76_vm1, %v2529_v54  ;;  %92 = vst.msk [vmem:[#allocation2 + $0xb9] sm:$0x1] %vm76_vm1, %v2529_v54 }
  0xd1   :  { %541 = vrot.lane.b32.xlu1 %v510_v63, %s2527_s0 }
 0x103   :  { %v143_v32 = vpop.permute.xlu0 %142 }
 0x104   :  { %v2779_v33 = vsel %vm93_vm0, %v143_v32, %v2553_v0 }
 0x105   :  { %206 = vrot.lane.b32.xlu0 %v2779_v33, %s2528_s1 }
 0x107   :  { %v145_v34 = vpop.permute.xlu1 %144  ;;  %v147_v35 = vpop.permute.xlu0 %146 }
 0x108   :  { %v175_v36 = vsel %vm93_vm0, %v145_v34, %v2561_v2  ;;  %v176_v37 = vsel %vm93_vm0, %v147_v35, %v2555_v1 }
 0x109   :  { %208 = vrot.lane.b32.xlu1 %v175_v36, %s2528_s1  ;;  %210 = vrot.lane.b32.xlu0 %v176_v37, %s2528_s1 }
 0x10b   :  { %v149_v38 = vpop.permute.xlu1 %148  ;;  %v151_v39 = vpop.permute.xlu0 %150 }
 0x10c   :  { %v177_v40 = vsel %vm93_vm0, %v149_v38, %v2563_v3  ;;  %v178_v41 = vsel %vm93_vm0, %v151_v39, %v2569_v4 }
 0x10d   :  { %212 = vrot.lane.b32.xlu1 %v177_v40, %s2528_s1  ;;  %214 = vrot.lane.b32.xlu0 %v178_v41, %s2528_s1 }
 0x10f   :  { %v153_v42 = vpop.permute.xlu1 %152  ;;  %v155_v43 = vpop.permute.xlu0 %154 }
 0x110   :  { %v179_v44 = vsel %vm93_vm0, %v153_v42, %v2571_v5  ;;  %v180_v45 = vsel %vm93_vm0, %v155_v43, %v2577_v6 }
 0x111   :  { %216 = vrot.lane.b32.xlu1 %v179_v44, %s2528_s1  ;;  %218 = vrot.lane.b32.xlu0 %v180_v45, %s2528_s1 }
 0x113   :  { %v157_v46 = vpop.permute.xlu1 %156  ;;  %v159_v47 = vpop.permute.xlu0 %158 }
 0x114   :  { %v181_v48 = vsel %vm93_vm0, %v157_v46, %v2579_v7  ;;  %v182_v49 = vsel %vm93_vm0, %v159_v47, %v2585_v8 }
 0x115   :  { %220 = vrot.lane.b32.xlu1 %v181_v48, %s2528_s1  ;;  %222 = vrot.lane.b32.xlu0 %v182_v49, %s2528_s1 }
 0x117   :  { %v161_v50 = vpop.permute.xlu1 %160  ;;  %v163_v51 = vpop.permute.xlu0 %162 }
 0x118   :  { %v183_v52 = vsel %vm93_vm0, %v161_v50, %v2587_v9  ;;  %v184_v53 = vsel %vm93_vm0, %v163_v51, %v2593_v10 }
 0x119   :  { %224 = vrot.lane.b32.xlu1 %v183_v52, %s2528_s1  ;;  %226 = vrot.lane.b32.xlu0 %v184_v53, %s2528_s1 }
 0x11b   :  { %v165_v55 = vpop.permute.xlu1 %164  ;;  %v167_v56 = vpop.permute.xlu0 %166 }
 0x11c   :  { %v185_v57 = vsel %vm93_vm0, %v165_v55, %v2595_v11  ;;  %v186_v58 = vsel %vm93_vm0, %v167_v56, %v2601_v12 }
 0x11d   :  { %228 = vrot.lane.b32.xlu1 %v185_v57, %s2528_s1  ;;  %230 = vrot.lane.b32.xlu0 %v186_v58, %s2528_s1 }
 0x11f   :  { %v169_v59 = vpop.permute.xlu1 %168  ;;  %v171_v60 = vpop.permute.xlu0 %170 }
 0x120   :  { %v187_v61 = vsel %vm93_vm0, %v169_v59, %v2603_v13  ;;  %v188_v62 = vsel %vm93_vm0, %v171_v60, %v2609_v14 }
 0x121   :  { %232 = vrot.lane.b32.xlu1 %v187_v61, %s2528_s1  ;;  %234 = vrot.lane.b32.xlu0 %v188_v62, %s2528_s1 }
 0x123   :  { %v173_v63 = vpop.permute.xlu1 %172  ;;  %v512_v34 = vpop.permute.xlu0 %511 }
 0x124   :  { %v189_v32 = vsel %vm93_vm0, %v173_v63, %v2611_v15  ;;  %v543_v39 = vsel %vm93_vm0, %v512_v34, %v2617_v16 }
 0x125   :  { %236 = vrot.lane.b32.xlu1 %v189_v32, %s2528_s1  ;;  %270 = vrot.lane.b32.xlu0 %v2779_v33, %s2530_s21 }
 0x127   :  { %v514_v35 = vpop.permute.xlu1 %513  ;;  %v516_v38 = vpop.permute.xlu0 %515 }
 0x128   :  { %v544_v42 = vsel %vm93_vm0, %v514_v35, %v2619_v17 }
 0x129   :  { %272 = vrot.lane.b32.xlu1 %v175_v36, %s2530_s21  ;;  %274 = vrot.lane.b32.xlu0 %v176_v37, %s2530_s21 }
 0x12b   :  { %v518_v33 = vpop.permute.xlu1 %517  ;;  %v520_v36 = vpop.permute.xlu0 %519 }
 0x12c   :  { %v547_v46 = vsel %vm93_vm0, %v520_v36, %v2633_v20 }
 0x12d   :  { %276 = vrot.lane.b32.xlu1 %v177_v40, %s2530_s21  ;;  %278 = vrot.lane.b32.xlu0 %v178_v41, %s2530_s21  ;;  %v545_v41 = vsel %vm93_vm0, %v516_v38, %v2625_v18 }
 0x12f   :  { %v522_v37 = vpop.permute.xlu1 %521  ;;  %v524_v40 = vpop.permute.xlu0 %523 }
 0x131   :  { %280 = vrot.lane.b32.xlu1 %v179_v44, %s2530_s21  ;;  %282 = vrot.lane.b32.xlu0 %v180_v45, %s2530_s21  ;;  %v546_v45 = vsel %vm93_vm0, %v518_v33, %v2627_v19 }
 0x133   :  { %v526_v43 = vpop.permute.xlu1 %525  ;;  %v528_v44 = vpop.permute.xlu0 %527 }
 0x134   :  { %v550_v51 = vsel %vm93_vm0, %v526_v43, %v2643_v23 }
 0x135   :  { %284 = vrot.lane.b32.xlu1 %v181_v48, %s2530_s21  ;;  %286 = vrot.lane.b32.xlu0 %v182_v49, %s2530_s21  ;;  %v548_v48 = vsel %vm93_vm0, %v522_v37, %v2635_v21  ;;  %v549_v49 = vsel %vm93_vm0, %v524_v40, %v2641_v22  ;;  %v2930_v37 = vmul.f32 %v2553_v0, %v2553_v0 }
 0x137   :  { %v530_v47 = vpop.permute.xlu1 %529  ;;  %v532_v50 = vpop.permute.xlu0 %531 }
 0x138   :  { %v552_v55 = vsel %vm93_vm0, %v530_v47, %v2651_v25  ;;  %v553_v56 = vsel %vm93_vm0, %v532_v50, %v2657_v26  ;;  %v2973_v50 = vmul.f32 %v2571_v5, %v2571_v5 }
 0x139   :  { %288 = vrot.lane.b32.xlu1 %v183_v52, %s2530_s21  ;;  %290 = vrot.lane.b32.xlu0 %v184_v53, %s2530_s21  ;;  %v551_v52 = vsel %vm93_vm0, %v528_v44, %v2649_v24 }
 0x13a   :  { %5040 = vst [vmem:[#allocation14_spill] sm:$0xff] %v2973_v50 }
 0x13b   :  { %v534_v53 = vpop.permute.xlu1 %533  ;;  %v536_v54 = vpop.permute.xlu0 %535 }
 0x13c   :  { %v555_v59 = vsel %vm93_vm0, %v536_v54, %v2665_v28 }
 0x13d   :  { %292 = vrot.lane.b32.xlu1 %v185_v57, %s2530_s21  ;;  %294 = vrot.lane.b32.xlu0 %v186_v58, %s2530_s21  ;;  %v554_v58 = vsel %vm93_vm0, %v534_v53, %v2659_v27 }
 0x13f   :  { %v538_v57 = vpop.permute.xlu1 %537  ;;  %v540_v60 = vpop.permute.xlu0 %539 }
 0x141   :  { %296 = vrot.lane.b32.xlu1 %v187_v61, %s2530_s21  ;;  %298 = vrot.lane.b32.xlu0 %v188_v62, %s2530_s21  ;;  %v556_v61 = vsel %vm93_vm0, %v538_v57, %v2667_v29  ;;  %v557_v62 = vsel %vm93_vm0, %v540_v60, %v2673_v30  ;;  %v3013_v60 = vmul.f32 %v2625_v18, %v2625_v18 }
 0x143   :  { %v542_v63 = vpop.permute.xlu1 %541  ;;  %5045 = vst [vmem:[#allocation19_spill] sm:$0xff] %v3013_v60 }
 0x145   :  { %300 = vrot.lane.b32.xlu1 %v189_v32, %s2530_s21  ;;  %575 = vrot.lane.b32.xlu0 %v543_v39, %s2528_s1  ;;  %v558_v32 = vsel %vm93_vm0, %v542_v63, %v2675_v31 }
 0x149   :  { %577 = vrot.lane.b32.xlu1 %v544_v42, %s2528_s1  ;;  %579 = vrot.lane.b32.xlu0 %v545_v41, %s2528_s1 }
 0x14d   :  { %581 = vrot.lane.b32.xlu1 %v546_v45, %s2528_s1  ;;  %583 = vrot.lane.b32.xlu0 %v547_v46, %s2528_s1 }
 0x151   :  { %585 = vrot.lane.b32.xlu1 %v548_v48, %s2528_s1  ;;  %587 = vrot.lane.b32.xlu0 %v549_v49, %s2528_s1 }
 0x155   :  { %589 = vrot.lane.b32.xlu1 %v550_v51, %s2528_s1  ;;  %591 = vrot.lane.b32.xlu0 %v551_v52, %s2528_s1 }
 0x159   :  { %593 = vrot.lane.b32.xlu1 %v552_v55, %s2528_s1  ;;  %595 = vrot.lane.b32.xlu0 %v553_v56, %s2528_s1 }
 0x15d   :  { %597 = vrot.lane.b32.xlu1 %v554_v58, %s2528_s1  ;;  %599 = vrot.lane.b32.xlu0 %v555_v59, %s2528_s1 }
 0x161   :  { %601 = vrot.lane.b32.xlu1 %v556_v61, %s2528_s1  ;;  %603 = vrot.lane.b32.xlu0 %v557_v62, %s2528_s1 }
 0x165   :  { %605 = vrot.lane.b32.xlu1 %v558_v32, %s2528_s1  ;;  %639 = vrot.lane.b32.xlu0 %v543_v39, %s2530_s21 }
 0x169   :  { %641 = vrot.lane.b32.xlu1 %v544_v42, %s2530_s21  ;;  %643 = vrot.lane.b32.xlu0 %v545_v41, %s2530_s21  ;;  %v2941_v41 = vmul.f32 %v2561_v2, %v2561_v2  ;;  %v2945_v42 = vmul.f32 %v2555_v1, %v2555_v1 }
 0x16d   :  { %645 = vrot.lane.b32.xlu1 %v546_v45, %s2530_s21  ;;  %647 = vrot.lane.b32.xlu0 %v547_v46, %s2530_s21  ;;  %v2957_v45 = vmul.f32 %v2563_v3, %v2563_v3  ;;  %v2961_v46 = vmul.f32 %v2569_v4, %v2569_v4 }
 0x16f   :  { %5038 = vst [vmem:[#allocation12_spill] sm:$0xff] %v2957_v45  ;;  %5039 = vst [vmem:[#allocation13_spill] sm:$0xff] %v2961_v46 }
 0x171   :  { %649 = vrot.lane.b32.xlu1 %v548_v48, %s2530_s21  ;;  %651 = vrot.lane.b32.xlu0 %v549_v49, %s2530_s21  ;;  %v72_v49 = vlaneseq }
 0x173   :  { %v2983_v54 = vand.u32 127, %v72_v49 }
 0x175   :  { %653 = vrot.lane.b32.xlu1 %v550_v51, %s2530_s21  ;;  %655 = vrot.lane.b32.xlu0 %v551_v52, %s2530_s21  ;;  %v2977_v51 = vmul.f32 %v2617_v16, %v2617_v16  ;;  %vm75_vm2 = vcmp.lt.s32.totalorder %v2983_v54, 15  ;;  %vm74_vm3 = vcmp.gt.s32.totalorder %v2983_v54, 0 }
 0x177   :  { %v207_v34 = vpop.permute.xlu0 %206  ;;  %5041 = vst [vmem:[#allocation15_spill] sm:$0xff] %v2977_v51 }
 0x178   :  { %v254_v63 = vsel %vm75_vm2, %v207_v34, 0.0 }
 0x179   :  { %657 = vrot.lane.b32.xlu1 %v552_v55, %s2530_s21  ;;  %659 = vrot.lane.b32.xlu0 %v553_v56, %s2530_s21  ;;  %v2991_v55 = vmul.f32 %v2619_v17, %v2619_v17  ;;  %v2995_v56 = vmul.f32 %v2577_v6, %v2577_v6 }
 0x17b   :  { %v209_v35 = vpop.permute.xlu1 %208  ;;  %v211_v38 = vpop.permute.xlu0 %210  ;;  %5042 = vst [vmem:[#allocation16_spill] sm:$0xff] %v2991_v55  ;;  %5043 = vst [vmem:[#allocation17_spill] sm:$0xff] %v2995_v56 }
 0x17d   :  { %661 = vrot.lane.b32.xlu1 %v554_v58, %s2530_s21  ;;  %663 = vrot.lane.b32.xlu0 %v555_v59, %s2530_s21  ;;  %v3009_v59 = vmul.f32 %v2579_v7, %v2579_v7 }
 0x17f   :  { %v2922_v33 = vpop.permute.xlu1 %212  ;;  %v2924_v36 = vpop.permute.xlu0 %214  ;;  %5044 = vst [vmem:[#allocation18_spill] sm:$0xff] %v3009_v59 }
 0x181   :  { %665 = vrot.lane.b32.xlu1 %v556_v61, %s2530_s21  ;;  %667 = vrot.lane.b32.xlu0 %v557_v62, %s2530_s21 }
 0x183   :  { %v2932_v39 = vpop.permute.xlu1 %216  ;;  %v2934_v40 = vpop.permute.xlu0 %218 }
 0x185   :  { %669 = vrot.lane.b32.xlu1 %v558_v32, %s2530_s21  ;;  %895 = vrot.lane.b32.xlu0 %v2930_v37, %s2527_s0 }
 0x187   :  { %v2947_v43 = vpop.permute.xlu1 %220  ;;  %v2949_v44 = vpop.permute.xlu0 %222 }
 0x189   :  { %898 = vrot.lane.b32.xlu1 %v2941_v41, %s2527_s0  ;;  %901 = vrot.lane.b32.xlu0 %v2945_v42, %s2527_s0 }
 0x18b   :  { %v2963_v47 = vpop.permute.xlu1 %224  ;;  %v2965_v48 = vpop.permute.xlu0 %226 }
 0x18d   :  { %904 = vrot.lane.b32.xlu1 %v2957_v45, %s2527_s0  ;;  %907 = vrot.lane.b32.xlu0 %v2961_v46, %s2527_s0 }
 0x18f   :  { %v2979_v52 = vpop.permute.xlu1 %228  ;;  %v2981_v53 = vpop.permute.xlu0 %230 }
 0x191   :  { %910 = vrot.lane.b32.xlu1 %v2973_v50, %s2527_s0  ;;  %1295 = vrot.lane.b32.xlu0 %v2977_v51, %s2527_s0 }
 0x193   :  { %v2997_v57 = vpop.permute.xlu1 %232  ;;  %v2999_v58 = vpop.permute.xlu0 %234 }
 0x195   :  { %1298 = vrot.lane.b32.xlu1 %v2991_v55, %s2527_s0  ;;  %913 = vrot.lane.b32.xlu0 %v2995_v56, %s2527_s0  ;;  %v3027_v56 = vmul.f32 %v2627_v19, %v2627_v19  ;;  %v3031_v55 = vmul.f32 %v2585_v8, %v2585_v8 }
 0x197   :  { %v3015_v61 = vpop.permute.xlu1 %236  ;;  %v271_v62 = vpop.permute.xlu0 %270  ;;  %5046 = vst [vmem:[#allocation20_spill] sm:$0xff] %v3027_v56  ;;  %5047 = vst [vmem:[#allocation21_spill] sm:$0xff] %v3031_v55 }
 0x198   :  { %v318_v32 = vsel %vm74_vm3, %v271_v62, 0.0 }
 0x199   :  { %v334_v49 = vadd.f32 %v318_v32, %v254_v63  ;;  %916 = vrot.lane.b32.xlu1 %v3009_v59, %s2527_s0  ;;  %1301 = vrot.lane.b32.xlu0 %v3013_v60, %s2527_s0  ;;  %v3038_v32 = vmul.f32 %v2587_v9, %v2587_v9  ;;  %v255_v60 = vsel %vm75_vm2, %v209_v35, 0.0  ;;  %v256_v59 = vsel %vm75_vm2, %v211_v38, 0.0 }
 0x19a   :  { %v3056_v35 = vmul.f32 %v2633_v20, %v2633_v20 }
 0x19b   :  { %v3034_v34 = vadd.f32 %v334_v49, %v2553_v0  ;;  %v273_v62 = vpop.permute.xlu1 %272  ;;  %v275_v63 = vpop.permute.xlu0 %274  ;;  %5048 = vst [vmem:[#allocation22_spill] sm:$0xff] %v3038_v32 }
 0x19c   :  { %v319_v51 = vsel %vm74_vm3, %v273_v62, 0.0  ;;  %v320_v50 = vsel %vm74_vm3, %v275_v63, 0.0  ;;  %5049 = vst [vmem:[#allocation23_spill] sm:$0xff] %v3056_v35 }
 0x19d   :  { %367 = vst.msk [vmem:[#allocation2 + $0x1] sm:$0xff] %vm366_vm4, %v3034_v34  ;;  %v335_v49 = vadd.f32 %v319_v51, %v255_v60  ;;  %v336_v46 = vadd.f32 %v320_v50, %v256_v59  ;;  %1304 = vrot.lane.b32.xlu1 %v3027_v56, %s2527_s0  ;;  %919 = vrot.lane.b32.xlu0 %v3031_v55, %s2527_s0  ;;  %v257_v51 = vsel %vm75_vm2, %v2922_v33, 0.0  ;;  %v258_v59 = vsel %vm75_vm2, %v2924_v36, 0.0 }
 0x19e   :  { %v3066_v50 = vmul.f32 %v2635_v21, %v2635_v21  ;;  %v3088_v33 = vmul.f32 %v2593_v10, %v2593_v10 }
 0x19f   :  { %v3059_v38 = vadd.f32 %v335_v49, %v2561_v2  ;;  %v3062_v62 = vadd.f32 %v336_v46, %v2555_v1  ;;  %v277_v63 = vpop.permute.xlu1 %276  ;;  %v279_v45 = vpop.permute.xlu0 %278 }
 0x1a0   :  { %5050 = vst [vmem:[#allocation24_spill] sm:$0xff] %v3066_v50  ;;  %v321_v60 = vsel %vm74_vm3, %v277_v63, 0.0  ;;  %v322_v46 = vsel %vm74_vm3, %v279_v45, 0.0  ;;  %5051 = vst [vmem:[#allocation25_spill] sm:$0xff] %v3088_v33 }
 0x1a1   :  { %368 = vst.msk [vmem:[#allocation2 + $0x9] sm:$0xff] %vm366_vm4, %v3059_v38  ;;  %369 = vst.msk [vmem:[#allocation2 + $0x19] sm:$0xff] %vm366_vm4, %v3062_v62  ;;  %v337_v49 = vadd.f32 %v321_v60, %v257_v51  ;;  %v338_v55 = vadd.f32 %v322_v46, %v258_v59  ;;  %922 = vrot.lane.b32.xlu1 %v3038_v32, %s2527_s0  ;;  %1307 = vrot.lane.b32.xlu0 %v3056_v35, %s2527_s0  ;;  %v259_v59 = vsel %vm75_vm2, %v2932_v39, 0.0 }
 0x1a2   :  { %v3098_v51 = vmul.f32 %v2595_v11, %v2595_v11  ;;  %v260_v60 = vsel %vm75_vm2, %v2934_v40, 0.0  ;;  %v3120_v39 = vmul.f32 %v2641_v22, %v2641_v22 }
 0x1a3   :  { %v3091_v36 = vadd.f32 %v337_v49, %v2563_v3  ;;  %v3094_v45 = vadd.f32 %v338_v55, %v2569_v4  ;;  %v281_v63 = vpop.permute.xlu1 %280  ;;  %v283_v56 = vpop.permute.xlu0 %282 }
 0x1a4   :  { %5052 = vst [vmem:[#allocation26_spill] sm:$0xff] %v3098_v51  ;;  %v323_v46 = vsel %vm74_vm3, %v281_v63, 0.0  ;;  %v324_v55 = vsel %vm74_vm3, %v283_v56, 0.0  ;;  %5053 = vst [vmem:[#allocation27_spill] sm:$0xff] %v3120_v39 }
 0x1a5   :  { %370 = vst.msk [vmem:[#allocation2 + $0x21] sm:$0xff] %vm366_vm4, %v3091_v36  ;;  %371 = vst.msk [vmem:[#allocation2 + $0x31] sm:$0xff] %vm366_vm4, %v3094_v45  ;;  %v339_v49 = vadd.f32 %v323_v46, %v259_v59  ;;  %v340_v35 = vadd.f32 %v324_v55, %v260_v60  ;;  %1310 = vrot.lane.b32.xlu1 %v3066_v50, %s2527_s0  ;;  %925 = vrot.lane.b32.xlu0 %v3088_v33, %s2527_s0  ;;  %v261_v60 = vsel %vm75_vm2, %v2947_v43, 0.0 }
 0x1a6   :  { %v3130_v59 = vmul.f32 %v2643_v23, %v2643_v23  ;;  %v262_v46 = vsel %vm75_vm2, %v2949_v44, 0.0  ;;  %v3152_v43 = vmul.f32 %v2601_v12, %v2601_v12 }
 0x1a7   :  { %v3123_v40 = vadd.f32 %v339_v49, %v2571_v5  ;;  %v3126_v56 = vadd.f32 %v340_v35, %v2577_v6  ;;  %v285_v63 = vpop.permute.xlu1 %284  ;;  %v287_v32 = vpop.permute.xlu0 %286 }
 0x1a8   :  { %5054 = vst [vmem:[#allocation28_spill] sm:$0xff] %v3130_v59  ;;  %v325_v55 = vsel %vm74_vm3, %v285_v63, 0.0  ;;  %v326_v35 = vsel %vm74_vm3, %v287_v32, 0.0  ;;  %5055 = vst [vmem:[#allocation29_spill] sm:$0xff] %v3152_v43 }
 0x1a9   :  { %372 = vst.msk [vmem:[#allocation2 + $0x39] sm:$0xff] %vm366_vm4, %v3123_v40  ;;  %373 = vst.msk [vmem:[#allocation2 + $0x49] sm:$0xff] %vm366_vm4, %v3126_v56  ;;  %v341_v49 = vadd.f32 %v325_v55, %v261_v60  ;;  %v342_v33 = vadd.f32 %v326_v35, %v262_v46  ;;  %928 = vrot.lane.b32.xlu1 %v3098_v51, %s2527_s0  ;;  %1313 = vrot.lane.b32.xlu0 %v3120_v39, %s2527_s0  ;;  %v263_v46 = vsel %vm75_vm2, %v2963_v47, 0.0 }
 0x1aa   :  { %v3162_v60 = vmul.f32 %v2603_v13, %v2603_v13  ;;  %v264_v55 = vsel %vm75_vm2, %v2965_v48, 0.0  ;;  %v3184_v47 = vmul.f32 %v2649_v24, %v2649_v24 }
 0x1ab   :  { %v3155_v44 = vadd.f32 %v341_v49, %v2579_v7  ;;  %v3158_v32 = vadd.f32 %v342_v33, %v2585_v8  ;;  %v289_v63 = vpop.permute.xlu1 %288  ;;  %v291_v50 = vpop.permute.xlu0 %290 }
 0x1ac   :  { %5056 = vst [vmem:[#allocation30_spill] sm:$0xff] %v3162_v60  ;;  %v327_v35 = vsel %vm74_vm3, %v289_v63, 0.0  ;;  %v328_v33 = vsel %vm74_vm3, %v291_v50, 0.0  ;;  %5057 = vst [vmem:[#allocation31_spill] sm:$0xff] %v3184_v47 }
 0x1ad   :  { %374 = vst.msk [vmem:[#allocation2 + $0x51] sm:$0xff] %vm366_vm4, %v3155_v44  ;;  %375 = vst.msk [vmem:[#allocation2 + $0x61] sm:$0xff] %vm366_vm4, %v3158_v32  ;;  %v343_v49 = vadd.f32 %v327_v35, %v263_v46  ;;  %v344_v39 = vadd.f32 %v328_v33, %v264_v55  ;;  %1316 = vrot.lane.b32.xlu1 %v3130_v59, %s2527_s0  ;;  %931 = vrot.lane.b32.xlu0 %v3152_v43, %s2527_s0  ;;  %v265_v55 = vsel %vm75_vm2, %v2979_v52, 0.0 }
 0x1ae   :  { %v3194_v46 = vmul.f32 %v2651_v25, %v2651_v25  ;;  %v266_v35 = vsel %vm75_vm2, %v2981_v53, 0.0  ;;  %v3216_v52 = vmul.f32 %v2617_v16, %v2553_v0  ;;  %v268_v0 = vsel %vm75_vm2, %v2999_v58, 0.0 }
 0x1af   :  { %v3187_v48 = vadd.f32 %v343_v49, %v2587_v9  ;;  %v3190_v50 = vadd.f32 %v344_v39, %v2593_v10  ;;  %v293_v63 = vpop.permute.xlu1 %292  ;;  %v295_v51 = vpop.permute.xlu0 %294 }
 0x1b0   :  { %5058 = vst [vmem:[#allocation32_spill] sm:$0xff] %v3194_v46  ;;  %v329_v33 = vsel %vm74_vm3, %v293_v63, 0.0  ;;  %v330_v39 = vsel %vm74_vm3, %v295_v51, 0.0  ;;  %5059 = vst [vmem:[#allocation33_spill] sm:$0xff] %v3216_v52 }
 0x1b1   :  { %376 = vst.msk [vmem:[#allocation2 + $0x69] sm:$0xff] %vm366_vm4, %v3187_v48  ;;  %377 = vst.msk [vmem:[#allocation2 + $0x79] sm:$0xff] %vm366_vm4, %v3190_v50  ;;  %v345_v49 = vadd.f32 %v329_v33, %v265_v55  ;;  %v346_v43 = vadd.f32 %v330_v39, %v266_v35  ;;  %934 = vrot.lane.b32.xlu1 %v3162_v60, %s2527_s0  ;;  %1319 = vrot.lane.b32.xlu0 %v3184_v47, %s2527_s0  ;;  %v267_v35 = vsel %vm75_vm2, %v2997_v57, 0.0  ;;  %v387_v47 = vld [vmem:[#allocation2 + $0x30] sm:$0xff] }
 0x1b2   :  { %v3226_v55 = vmul.f32 %v2619_v17, %v2561_v2  ;;  %v3248_v17 = vmul.f32 %v2625_v18, %v2555_v1  ;;  %v269_v33 = vsel %vm75_vm2, %v3015_v61, 0.0  ;;  %v3277_v18 = vmul.f32 %v2609_v14, %v2609_v14 }
 0x1b3   :  { %v3219_v53 = vadd.f32 %v345_v49, %v2595_v11  ;;  %v3222_v51 = vadd.f32 %v346_v43, %v2601_v12  ;;  %v297_v63 = vpop.permute.xlu1 %296  ;;  %v299_v59 = vpop.permute.xlu0 %298 }
 0x1b4   :  { %5060 = vst [vmem:[#allocation34_spill] sm:$0xff] %v3226_v55  ;;  %v331_v11 = vsel %vm74_vm3, %v297_v63, 0.0  ;;  %v332_v12 = vsel %vm74_vm3, %v299_v59, 0.0  ;;  %5061 = vst [vmem:[#allocation35_spill] sm:$0xff] %v3248_v17 }
 0x1b5   :  { %378 = vst.msk [vmem:[#allocation2 + $0x81] sm:$0xff] %vm366_vm4, %v3219_v53  ;;  %379 = vst.msk [vmem:[#allocation2 + $0x91] sm:$0xff] %vm366_vm4, %v3222_v51  ;;  %v347_v2 = vadd.f32 %v331_v11, %v267_v35  ;;  %v348_v16 = vadd.f32 %v332_v12, %v268_v0  ;;  %1322 = vrot.lane.b32.xlu1 %v3194_v46, %s2527_s0  ;;  %1695 = vrot.lane.b32.xlu0 %v3216_v52, %s2527_s0 }
 0x1b6   :  { %5064 = vst [vmem:[#allocation38_spill] sm:$0xff] %v3277_v18  ;;  %v3310_v0 = vmul.f32 %v2659_v27, %v2659_v27 }
 0x1b7   :  { %v3251_v57 = vadd.f32 %v347_v2, %v2603_v13  ;;  %v3254_v58 = vadd.f32 %v348_v16, %v2609_v14  ;;  %v301_v59 = vpop.permute.xlu1 %300  ;;  %v3256_v43 = vpop.permute.xlu0 %575  ;;  %v3273_v13 = vmul.f32 %v2627_v19, %v2563_v3  ;;  %v3294_v3 = vmul.f32 %v2611_v15, %v2611_v15 }
 0x1b8   :  { %v333_v39 = vsel %vm74_vm3, %v301_v59, 0.0  ;;  %v3298_v14 = vmul.f32 %v2657_v26, %v2657_v26  ;;  %5067 = vst [vmem:[#allocation41_spill] sm:$0xff] %v3310_v0  ;;  %v3326_v2 = vmul.f32 %v2635_v21, %v2571_v5  ;;  %v3330_v16 = vmul.f32 %v2665_v28, %v2665_v28 }
 0x1b9   :  { %5062 = vst [vmem:[#allocation36_spill] sm:$0xff] %v3254_v58  ;;  %380 = vst.msk [vmem:[#allocation2 + $0x99] sm:$0xff] %vm366_vm4, %v3251_v57  ;;  %v349_v1 = vadd.f32 %v333_v39, %v269_v33  ;;  %1698 = vrot.lane.b32.xlu1 %v3226_v55, %s2527_s0  ;;  %1701 = vrot.lane.b32.xlu0 %v3248_v17, %s2527_s0  ;;  %v3342_v59 = vmul.f32 %v2667_v29, %v2667_v29  ;;  %v403_v17 = vld [vmem:[#allocation2 + $0x32] sm:$0xff]  ;;  %v2437_v55 = vld [vmem:[#allocation3 + $0x60] sm:$0xff] }
 0x1ba   :  { %381 = vst.msk [vmem:[#allocation2 + $0xa9] sm:$0xff] %vm366_vm4, %v3254_v58  ;;  %5063 = vst [vmem:[#allocation37_spill] sm:$0xff] %v3273_v13  ;;  %v3346_v5 = vmul.f32 %v2641_v22, %v2577_v6  ;;  %v3358_v39 = vmul.f32 %v2643_v23, %v2579_v7  ;;  %v3378_v7 = vmul.f32 %v2649_v24, %v2585_v8  ;;  %v383_v24 = vld [vmem:[#allocation2] sm:$0xff] }
 0x1bb   :  { %v3280_v61 = vadd.f32 %v349_v1, %v2611_v15  ;;  %v3282_v49 = vpop.permute.xlu1 %577  ;;  %v3284_v63 = vpop.permute.xlu0 %579  ;;  %5065 = vst [vmem:[#allocation39_spill] sm:$0xff] %v3294_v3  ;;  %5066 = vst [vmem:[#allocation40_spill] sm:$0xff] %v3298_v14  ;;  %v3314_v15 = vmul.f32 %v2633_v20, %v2569_v4  ;;  %v3362_v1 = vmul.f32 %v2673_v30, %v2673_v30 }
 0x1bc   :  { %5069 = vst [vmem:[#allocation43_spill] sm:$0xff] %v3326_v2  ;;  %5070 = vst [vmem:[#allocation44_spill] sm:$0xff] %v3330_v16  ;;  %v3394_v8 = vmul.f32 %v2657_v26, %v2593_v10  ;;  %v3411_v52 = vmul.f32 %v2437_v55, %v2665_v28 }
 0x1bd   :  { %382 = vst.msk [vmem:[#allocation2 + $0xb1] sm:$0xff] %vm366_vm4, %v3280_v61  ;;  %1704 = vrot.lane.b32.xlu1 %v3273_v13, %s2527_s0  ;;  %937 = vrot.lane.b32.xlu0 %v3277_v18, %s2527_s0  ;;  %5068 = vst [vmem:[#allocation42_spill] sm:$0xff] %v3314_v15  ;;  %v388_v13 = vld [vmem:[#allocation2 + $0x38] sm:$0xff] }
 0x1be   :  { %5071 = vst [vmem:[#allocation45_spill] sm:$0xff] %v3342_v59  ;;  %5072 = vst [vmem:[#allocation46_spill] sm:$0xff] %v3346_v5 }
 0x1bf   :  { %v3300_v19 = vpop.permute.xlu1 %581  ;;  %v3302_v35 = vpop.permute.xlu0 %583  ;;  %5073 = vst [vmem:[#allocation47_spill] sm:$0xff] %v3358_v39  ;;  %5074 = vst [vmem:[#allocation48_spill] sm:$0xff] %v3362_v1 }
 0x1c0   :  { %5076 = vst [vmem:[#allocation50_spill] sm:$0xff] %v3378_v7  ;;  %5078 = vst [vmem:[#allocation52_spill] sm:$0xff] %v3394_v8 }
 0x1c1   :  { %940 = vrot.lane.b32.xlu1 %v3294_v3, %s2527_s0  ;;  %1325 = vrot.lane.b32.xlu0 %v3298_v14, %s2527_s0  ;;  %v401_v14 = vld [vmem:[#allocation2 + $0x1a] sm:$0xff]  ;;  %v402_v3 = vld [vmem:[#allocation2 + $0x22] sm:$0xff]  ;;  %5080 = vst [vmem:[#allocation54_spill] sm:$0xff] %v3411_v52 }
 0x1c3   :  { %v3316_v11 = vpop.permute.xlu1 %585  ;;  %v3318_v12 = vpop.permute.xlu0 %587 }
 0x1c5   :  { %1328 = vrot.lane.b32.xlu1 %v3310_v0, %s2527_s0  ;;  %1707 = vrot.lane.b32.xlu0 %v3314_v15, %s2527_s0  ;;  %v386_v0 = vld [vmem:[#allocation2 + $0x20] sm:$0xff] }
 0x1c6   :  { %v418_v46 = vadd.f32 %v402_v3, %v386_v0  ;;  %v624_v3 = vsel %vm75_vm2, %v3282_v49, 0.0  ;;  %v2441_v49 = vld [vmem:[#allocation3 + $0x78] sm:$0xff] }
 0x1c7   :  { %v3332_v4 = vpop.permute.xlu1 %589  ;;  %v3334_v20 = vpop.permute.xlu0 %591 }
 0x1c9   :  { %1710 = vrot.lane.b32.xlu1 %v3326_v2, %s2527_s0  ;;  %1331 = vrot.lane.b32.xlu0 %v3330_v16, %s2527_s0  ;;  %v384_v16 = vld [vmem:[#allocation2 + $0x8] sm:$0xff] }
 0x1ca   :  { %v400_v2 = vld [vmem:[#allocation2 + $0xa] sm:$0xff] }
 0x1cb   :  { %v3348_v21 = vpop.permute.xlu1 %593  ;;  %v3350_v33 = vpop.permute.xlu0 %595  ;;  %v416_v15 = vadd.f32 %v400_v2, %v384_v16  ;;  %v385_v2 = vld [vmem:[#allocation2 + $0x18] sm:$0xff] }
 0x1cd   :  { %1334 = vrot.lane.b32.xlu1 %v3342_v59, %s2527_s0  ;;  %1713 = vrot.lane.b32.xlu0 %v3346_v5, %s2527_s0  ;;  %v3374_v5 = vmul.f32 %v2675_v31, %v2675_v31 }
 0x1cf   :  { %v3364_v6 = vpop.permute.xlu1 %597  ;;  %v3366_v22 = vpop.permute.xlu0 %599  ;;  %5075 = vst [vmem:[#allocation49_spill] sm:$0xff] %v3374_v5 }
 0x1d1   :  { %1716 = vrot.lane.b32.xlu1 %v3358_v39, %s2527_s0  ;;  %1337 = vrot.lane.b32.xlu0 %v3362_v1, %s2527_s0  ;;  %v3390_v1 = vmul.f32 %v2651_v25, %v2587_v9  ;;  %v399_v39 = vld [vmem:[#allocation2 + $0x2] sm:$0xff]  ;;  %v623_v9 = vsel %vm75_vm2, %v3256_v43, 0.0  ;;  %v2436_v25 = vld [vmem:[#allocation3 + $0x58] sm:$0xff] }
 0x1d2   :  { %v3404_v26 = vmul.f32 %v2436_v25, %v2659_v27  ;;  %v415_v43 = vadd.f32 %v399_v39, %v383_v24  ;;  %v2439_v27 = vld [vmem:[#allocation3 + $0x70] sm:$0xff]  ;;  %v432_v25 = vadd.f32 %v416_v15, %v3059_v38  ;;  %v419_v39 = vadd.f32 %v403_v17, %v387_v47  ;;  %v2442_v24 = vld [vmem:[#allocation6 + $0x8] sm:$0xff] }
 0x1d3   :  { %v3380_v23 = vpop.permute.xlu1 %601  ;;  %v3382_v59 = vpop.permute.xlu0 %603  ;;  %5077 = vst [vmem:[#allocation51_spill] sm:$0xff] %v3390_v1  ;;  %v434_v17 = vadd.f32 %v418_v46, %v3091_v36 }
 0x1d4   :  { %5079 = vst [vmem:[#allocation53_spill] sm:$0xff] %v3404_v26  ;;  %v431_v47 = vadd.f32 %v415_v43, %v3034_v34  ;;  %v435_v36 = vadd.f32 %v419_v39, %v3094_v45  ;;  %v2444_v39 = vld [vmem:[#allocation6 + $0x18] sm:$0xff] }
 0x1d5   :  { %1340 = vrot.lane.b32.xlu1 %v3374_v5, %s2527_s0  ;;  %1719 = vrot.lane.b32.xlu0 %v3378_v7, %s2527_s0  ;;  %v404_v7 = vld [vmem:[#allocation2 + $0x3a] sm:$0xff]  ;;  %v3472_v43 = vmul.f32 0.11111111, %v434_v17  ;;  %v629_v17 = vsel %vm75_vm2, %v3318_v12, 0.0 }
 0x1d7   :  { %v3396_v18 = vpop.permute.xlu1 %605  ;;  %v640_v5 = vpop.permute.xlu0 %639 }
 0x1d8   :  { %v687_v10 = vsel %vm74_vm3, %v640_v5, 0.0  ;;  %v2438_v5 = vld [vmem:[#allocation3 + $0x68] sm:$0xff] }
 0x1d9   :  { %v703_v16 = vadd.f32 %v687_v10, %v623_v9  ;;  %1722 = vrot.lane.b32.xlu1 %v3390_v1, %s2527_s0  ;;  %1725 = vrot.lane.b32.xlu0 %v3394_v8, %s2527_s0  ;;  %v3414_v60 = vmul.f32 %v2438_v5, %v2667_v29  ;;  %v3417_v9 = vmul.f32 %v2439_v27, %v2673_v30  ;;  %v2440_v8 = vld [vmem:[#allocation6] sm:$0xff]  ;;  %v625_v29 = vsel %vm75_vm2, %v3284_v63, 0.0 }
 0x1da   :  { %v417_v10 = vadd.f32 %v401_v14, %v385_v2  ;;  %v420_v1 = vadd.f32 %v404_v7, %v388_v13  ;;  %v3441_v63 = vmul.f32 %v2441_v49, %v2675_v31  ;;  %v390_v7 = vld [vmem:[#allocation2 + $0x50] sm:$0xff]  ;;  %v626_v31 = vsel %vm75_vm2, %v3300_v19, 0.0 }
 0x1db   :  { %5081 = vst [vmem:[#allocation55_spill] sm:$0xff] %v3414_v60  ;;  %5082 = vst [vmem:[#allocation56_spill] sm:$0xff] %v3417_v9  ;;  %v3420_v58 = vadd.f32 %v2440_v8, %v703_v16  ;;  %v642_v28 = vpop.permute.xlu1 %641  ;;  %v644_v55 = vpop.permute.xlu0 %643  ;;  %v406_v8 = vld [vmem:[#allocation2 + $0x52] sm:$0xff] }
 0x1dc   :  { %v688_v30 = vsel %vm74_vm3, %v642_v28, 0.0  ;;  %v689_v38 = vsel %vm74_vm3, %v644_v55, 0.0  ;;  %5083 = vst [vmem:[#allocation57_spill] sm:$0xff] %v3441_v63  ;;  %v433_v0 = vadd.f32 %v417_v10, %v3062_v62  ;;  %v436_v15 = vadd.f32 %v420_v1, %v3123_v40  ;;  %v2443_v16 = vld [vmem:[#allocation6 + $0x10] sm:$0xff] }
 0x1dd   :  { %735 = vst.msk [vmem:[#allocation2 + $0x1] sm:$0xff] %vm366_vm4, %v3420_v58  ;;  %v704_v13 = vadd.f32 %v688_v30, %v624_v3  ;;  %v705_v14 = vadd.f32 %v689_v38, %v625_v29  ;;  %1728 = vrot.lane.b32.xlu1 %v3404_v26, %s2527_s0  ;;  %1731 = vrot.lane.b32.xlu0 %v3411_v52, %s2527_s0  ;;  %v627_v62 = vsel %vm75_vm2, %v3302_v35, 0.0  ;;  %v3460_v1 = vmul.f32 0.11111111, %v432_v25  ;;  %v405_v55 = vld [vmem:[#allocation2 + $0x4a] sm:$0xff]  ;;  %v2445_v29 = vld [vmem:[#allocation6 + $0x20] sm:$0xff] }
 0x1de   :  { %v3470_v35 = vmul.f32 0.11111111, %v431_v47  ;;  %v422_v10 = vadd.f32 %v406_v8, %v390_v7  ;;  %v3474_v25 = vmul.f32 0.11111111, %v433_v0  ;;  %v3476_v28 = vmul.f32 0.11111111, %v436_v15 }
 0x1df   :  { %v3445_v2 = vadd.f32 %v2442_v24, %v704_v13  ;;  %v3447_v5 = vadd.f32 %v2443_v16, %v705_v14  ;;  %v646_v27 = vpop.permute.xlu1 %645  ;;  %v648_v34 = vpop.permute.xlu0 %647  ;;  %v3482_v14 = vmul.f32 0.11111111, %v435_v36  ;;  %v628_v47 = vsel %vm75_vm2, %v3316_v11, 0.0  ;;  %v389_v7 = vld [vmem:[#allocation2 + $0x48] sm:$0xff] }
 0x1e0   :  { %v690_v40 = vsel %vm74_vm3, %v646_v27, 0.0  ;;  %v691_v46 = vsel %vm74_vm3, %v648_v34, 0.0  ;;  %v3496_v15 = vmul.f32 %v3460_v1, %v3460_v1  ;;  %v3506_v12 = vmul.f32 %v3470_v35, %v3470_v35  ;;  %v392_v27 = vld [vmem:[#allocation2 + $0x68] sm:$0xff] }
 0x1e1   :  { %736 = vst.msk [vmem:[#allocation2 + $0x9] sm:$0xff] %vm366_vm4, %v3445_v2  ;;  %737 = vst.msk [vmem:[#allocation2 + $0x19] sm:$0xff] %vm366_vm4, %v3447_v5  ;;  %v706_v45 = vadd.f32 %v690_v40, %v626_v31  ;;  %v707_v19 = vadd.f32 %v691_v46, %v627_v62  ;;  %1734 = vrot.lane.b32.xlu1 %v3414_v60, %s2527_s0  ;;  %1737 = vrot.lane.b32.xlu0 %v3417_v9, %s2527_s0  ;;  %v407_v62 = vld [vmem:[#allocation2 + $0x62] sm:$0xff]  ;;  %v408_v40 = vld [vmem:[#allocation2 + $0x6a] sm:$0xff]  ;;  %v630_v46 = vsel %vm75_vm2, %v3332_v4, 0.0 }
 0x1e2   :  { %v3510_v24 = vmul.f32 %v3472_v43, %v3472_v43  ;;  %v438_v16 = vadd.f32 %v422_v10, %v3155_v44  ;;  %v3515_v34 = vmul.f32 %v3474_v25, %v3474_v25  ;;  %v421_v36 = vadd.f32 %v405_v55, %v389_v7  ;;  %v2447_v44 = vld [vmem:[#allocation6 + $0x30] sm:$0xff]  ;;  %v391_v7 = vld [vmem:[#allocation2 + $0x60] sm:$0xff]  ;;  %v2448_v60 = vld [vmem:[#allocation6 + $0x38] sm:$0xff] }
 0x1e3   :  { %v3478_v3 = vadd.f32 %v2444_v39, %v706_v45  ;;  %v3480_v30 = vadd.f32 %v2445_v29, %v707_v19  ;;  %v650_v38 = vpop.permute.xlu1 %649  ;;  %v652_v13 = vpop.permute.xlu0 %651  ;;  %v3519_v31 = vmul.f32 %v3476_v28, %v3476_v28  ;;  %v2446_v19 = vld [vmem:[#allocation6 + $0x28] sm:$0xff]  ;;  %v631_v55 = vsel %vm75_vm2, %v3334_v20, 0.0 }
 0x1e4   :  { %v692_v49 = vsel %vm74_vm3, %v650_v38, 0.0  ;;  %v693_v0 = vsel %vm74_vm3, %v652_v13, 0.0  ;;  %v751_v45 = vld [vmem:[#allocation2] sm:$0xff] }
 0x1e5   :  { %738 = vst.msk [vmem:[#allocation2 + $0x21] sm:$0xff] %vm366_vm4, %v3478_v3  ;;  %739 = vst.msk [vmem:[#allocation2 + $0x31] sm:$0xff] %vm366_vm4, %v3480_v30  ;;  %v708_v11 = vadd.f32 %v692_v49, %v628_v47  ;;  %v709_v8 = vadd.f32 %v693_v0, %v629_v17  ;;  %1740 = vrot.lane.b32.xlu1 %v3441_v63, %s2527_s0  ;;  %v3537_v0 = vmul.f32 %v3482_v14, %v3482_v14 }
 0x1e6   :  { %v3546_v63 = vadd.f32 %v407_v62, %v391_v7 }
 0x1e7   :  { %v3524_v39 = vadd.f32 %v2446_v19, %v708_v11  ;;  %v3526_v10 = vadd.f32 %v2447_v44, %v709_v8  ;;  %v654_v29 = vpop.permute.xlu1 %653  ;;  %v656_v38 = vpop.permute.xlu0 %655  ;;  %5084 = vst [vmem:[#allocation58_spill] sm:$0xff] %v3537_v0  ;;  %v3543_v44 = vmul.f32 0.11111111, %v438_v16  ;;  %v632_v16 = vsel %vm75_vm2, %v3348_v21, 0.0 }
 0x1e8   :  { %v752_v13 = vld [vmem:[#allocation2 + $0x8] sm:$0xff]  ;;  %v694_v49 = vsel %vm74_vm3, %v654_v29, 0.0  ;;  %v695_v4 = vsel %vm74_vm3, %v656_v38, 0.0  ;;  %v424_v29 = vadd.f32 %v408_v40, %v392_v27  ;;  %v437_v38 = vadd.f32 %v421_v36, %v3126_v56 }
 0x1e9   :  { %v767_v47 = vld [vmem:[#allocation2 + $0x2] sm:$0xff]  ;;  %v768_v17 = vld [vmem:[#allocation2 + $0xa] sm:$0xff]  ;;  %740 = vst.msk [vmem:[#allocation2 + $0x39] sm:$0xff] %vm366_vm4, %v3524_v39  ;;  %741 = vst.msk [vmem:[#allocation2 + $0x49] sm:$0xff] %vm366_vm4, %v3526_v10  ;;  %v710_v20 = vadd.f32 %v694_v49, %v630_v46  ;;  %v711_v8 = vadd.f32 %v695_v4, %v631_v55  ;;  %v633_v56 = vsel %vm75_vm2, %v3350_v33, 0.0  ;;  %v3570_v33 = vmul.f32 %v3543_v44, %v3543_v44 }
 0x1ea   :  { %v784_v11 = vadd.f32 %v768_v17, %v752_v13  ;;  %v783_v19 = vadd.f32 %v767_v47, %v751_v45  ;;  %v2449_v17 = vld [vmem:[#allocation6 + $0x40] sm:$0xff]  ;;  %v3575_v55 = vmul.f32 0.11111111, %v437_v38  ;;  %v2450_v4 = vld [vmem:[#allocation6 + $0x48] sm:$0xff] }
 0x1eb   :  { %v3549_v13 = vadd.f32 %v2448_v60, %v710_v20  ;;  %v3551_v52 = vadd.f32 %v2449_v17, %v711_v8  ;;  %v658_v26 = vpop.permute.xlu1 %657  ;;  %v660_v0 = vpop.permute.xlu0 %659  ;;  %5085 = vst [vmem:[#allocation59_spill] sm:$0xff] %v3570_v33 }
 0x1ec   :  { %v800_v9 = vadd.f32 %v784_v11, %v3445_v2  ;;  %v799_v46 = vadd.f32 %v783_v19, %v3420_v58  ;;  %v754_v27 = vld [vmem:[#allocation2 + $0x20] sm:$0xff]  ;;  %v696_v60 = vsel %vm74_vm3, %v658_v26, 0.0  ;;  %v697_v36 = vsel %vm74_vm3, %v660_v0, 0.0  ;;  %v2451_v19 = vld [vmem:[#allocation6 + $0x50] sm:$0xff] }
 0x1ed   :  { %v770_v2 = vld [vmem:[#allocation2 + $0x22] sm:$0xff]  ;;  %742 = vst.msk [vmem:[#allocation2 + $0x51] sm:$0xff] %vm366_vm4, %v3549_v13  ;;  %743 = vst.msk [vmem:[#allocation2 + $0x61] sm:$0xff] %vm366_vm4, %v3551_v52  ;;  %v712_v58 = vadd.f32 %v696_v60, %v632_v16  ;;  %v713_v21 = vadd.f32 %v697_v36, %v633_v56  ;;  %v634_v26 = vsel %vm75_vm2, %v3364_v6, 0.0  ;;  %v3595_v16 = vld [vmem:[#allocation2 + $0x7a] sm:$0xff]  ;;  %v635_v56 = vsel %vm75_vm2, %v3366_v22, 0.0 }
 0x1ee   :  { %v816_v62 = vmul.f32 0.11111111, %v800_v9  ;;  %v786_v40 = vadd.f32 %v770_v2, %v754_v27  ;;  %v815_v45 = vmul.f32 0.11111111, %v799_v46  ;;  %v3593_v46 = vld [vmem:[#allocation2 + $0x78] sm:$0xff]  ;;  %v410_v36 = vld [vmem:[#allocation2 + $0x82] sm:$0xff] }
 0x1ef   :  { %v3583_v0 = vadd.f32 %v2450_v4, %v712_v58  ;;  %v662_v7 = vpop.permute.xlu1 %661  ;;  %v664_v11 = vpop.permute.xlu0 %663  ;;  %v3585_v17 = vadd.f32 %v2451_v19, %v713_v21  ;;  %v440_v21 = vadd.f32 %v424_v29, %v3187_v48  ;;  %v412_v4 = vld [vmem:[#allocation2 + $0x9a] sm:$0xff] }
 0x1f0   :  { %v3577_v9 = vmul.f32 %v816_v62, %v816_v62  ;;  %v3580_v47 = vmul.f32 %v816_v62, %v3460_v1  ;;  %v802_v49 = vadd.f32 %v786_v40, %v3478_v3  ;;  %v756_v20 = vld [vmem:[#allocation2 + $0x38] sm:$0xff]  ;;  %v698_v6 = vsel %vm74_vm3, %v662_v7, 0.0  ;;  %v394_v3 = vld [vmem:[#allocation2 + $0x80] sm:$0xff] }
 0x1f1   :  { %v772_v8 = vld [vmem:[#allocation2 + $0x3a] sm:$0xff]  ;;  %v699_v38 = vsel %vm74_vm3, %v664_v11, 0.0  ;;  %v3591_v1 = vmul.f32 %v815_v45, %v815_v45  ;;  %744 = vst.msk [vmem:[#allocation2 + $0x69] sm:$0xff] %vm366_vm4, %v3583_v0  ;;  %745 = vst.msk [vmem:[#allocation2 + $0x79] sm:$0xff] %vm366_vm4, %v3585_v17  ;;  %v714_v62 = vadd.f32 %v698_v6, %v634_v26  ;;  %v3609_v58 = vmul.f32 %v815_v45, %v3470_v35 }
 0x1f2   :  { %5086 = vst [vmem:[#allocation60_spill] sm:$0xff] %v3577_v9  ;;  %5087 = vst [vmem:[#allocation61_spill] sm:$0xff] %v3580_v47  ;;  %v3602_v27 = vadd.f32 %v3577_v9, %v3496_v15  ;;  %v818_v2 = vmul.f32 0.11111111, %v802_v49  ;;  %v788_v60 = vadd.f32 %v772_v8, %v756_v20  ;;  %v715_v40 = vadd.f32 %v699_v38, %v635_v56  ;;  %v396_v49 = vld [vmem:[#allocation2 + $0x98] sm:$0xff]  ;;  %v2453_v29 = vld [vmem:[#allocation6 + $0x60] sm:$0xff] }
 0x1f3   :  { %5088 = vst [vmem:[#allocation62_spill] sm:$0xff] %v3591_v1  ;;  %5090 = vst [vmem:[#allocation64_spill] sm:$0xff] %v3609_v58  ;;  %v3613_v22 = vadd.f32 %v3591_v1, %v3506_v12  ;;  %v636_v7 = vsel %vm75_vm2, %v3380_v23, 0.0  ;;  %v666_v20 = vpop.permute.xlu1 %665  ;;  %v668_v35 = vpop.permute.xlu0 %667  ;;  %v769_v45 = vld [vmem:[#allocation2 + $0x1a] sm:$0xff]  ;;  %v426_v58 = vadd.f32 %v410_v36, %v394_v3  ;;  %v3631_v47 = vld [vmem:[#allocation2 + $0x90] sm:$0xff]  ;;  %v638_v36 = vsel %vm75_vm2, %v3396_v18, 0.0 }
 0x1f4   :  { %5089 = vst [vmem:[#allocation63_spill] sm:$0xff] %v3602_v27  ;;  %v3619_v11 = vmul.f32 %v818_v2, %v818_v2  ;;  %v3622_v26 = vmul.f32 %v818_v2, %v3472_v43  ;;  %v804_v8 = vadd.f32 %v788_v60, %v3524_v39  ;;  %v758_v19 = vld [vmem:[#allocation2 + $0x50] sm:$0xff]  ;;  %v2452_v38 = vld [vmem:[#allocation6 + $0x58] sm:$0xff]  ;;  %v3627_v56 = vadd.f32 %v2453_v29, %v715_v40 }
 0x1f5   :  { %5091 = vst [vmem:[#allocation65_spill] sm:$0xff] %v3613_v22  ;;  %v774_v6 = vld [vmem:[#allocation2 + $0x52] sm:$0xff]  ;;  %v3625_v48 = vadd.f32 %v2452_v38, %v714_v62  ;;  %v700_v23 = vsel %vm74_vm3, %v666_v20, 0.0  ;;  %v637_v62 = vsel %vm75_vm2, %v3382_v59, 0.0  ;;  %v701_v3 = vsel %vm74_vm3, %v668_v35, 0.0  ;;  %v5187_v27 = vld [vmem:[#allocation55_spill] sm:$0xff] }
 0x1f6   :  { %5092 = vst [vmem:[#allocation66_spill] sm:$0xff] %v3619_v11  ;;  %5093 = vst [vmem:[#allocation67_spill] sm:$0xff] %v3622_v26  ;;  %v3633_v43 = vld [vmem:[#allocation2 + $0x92] sm:$0xff]  ;;  %v3637_v2 = vadd.f32 %v3619_v11, %v3510_v24  ;;  %v790_v39 = vadd.f32 %v774_v6, %v758_v19  ;;  %v716_v60 = vadd.f32 %v700_v23, %v636_v7  ;;  %v820_v38 = vmul.f32 0.11111111, %v804_v8 }
 0x1f7   :  { %v428_v26 = vadd.f32 %v412_v4, %v396_v49  ;;  %v753_v40 = vld [vmem:[#allocation2 + $0x18] sm:$0xff]  ;;  %746 = vst.msk [vmem:[#allocation2 + $0x81] sm:$0xff] %vm366_vm4, %v3625_v48  ;;  %747 = vst.msk [vmem:[#allocation2 + $0x91] sm:$0xff] %vm366_vm4, %v3627_v56  ;;  %v2454_v4 = vld [vmem:[#allocation6 + $0x68] sm:$0xff]  ;;  %v670_v59 = vpop.permute.xlu1 %669  ;;  %v896_v20 = vpop.permute.xlu0 %895  ;;  %v717_v35 = vadd.f32 %v701_v3, %v637_v62 }
 0x1f8   :  { %5094 = vst [vmem:[#allocation68_spill] sm:$0xff] %v3637_v2  ;;  %v806_v49 = vadd.f32 %v790_v39, %v3549_v13  ;;  %v3652_v7 = vadd.f32 %v2454_v4, %v716_v60  ;;  %v785_v8 = vadd.f32 %v769_v45, %v753_v40  ;;  %v3654_v19 = vmul.f32 %v820_v38, %v820_v38  ;;  %v760_v29 = vld [vmem:[#allocation2 + $0x68] sm:$0xff]  ;;  %v398_v40 = vld [vmem:[#allocation2 + $0xb0] sm:$0xff] }
 0x1f9   :  { %v3657_v6 = vmul.f32 %v820_v38, %v3476_v28  ;;  %v776_v23 = vld [vmem:[#allocation2 + $0x6a] sm:$0xff]  ;;  %v702_v2 = vsel %vm74_vm3, %v670_v59, 0.0  ;;  %v897_v45 = vsel %vm93_vm0, %v896_v20, %v2930_v37  ;;  %v456_v39 = vmul.f32 0.11111111, %v440_v21  ;;  %v2456_v21 = vld [vmem:[#allocation6 + $0x78] sm:$0xff] }
 0x1fa   :  { %5095 = vst [vmem:[#allocation69_spill] sm:$0xff] %v3654_v19  ;;  %v822_v18 = vmul.f32 0.11111111, %v806_v49  ;;  %v792_v11 = vadd.f32 %v776_v23, %v760_v29  ;;  %748 = vst.msk [vmem:[#allocation2 + $0x99] sm:$0xff] %vm366_vm4, %v3652_v7  ;;  %v718_v13 = vadd.f32 %v702_v2, %v638_v36  ;;  %v442_v60 = vadd.f32 %v426_v58, %v3219_v53  ;;  %v3666_v28 = vld [vmem:[#allocation2 + $0xa8] sm:$0xff]  ;;  %v2455_v38 = vld [vmem:[#allocation6 + $0x70] sm:$0xff] }
 0x1fb   :  { %5096 = vst [vmem:[#allocation70_spill] sm:$0xff] %v3657_v6  ;;  %v3670_v62 = vadd.f32 %v3654_v19, %v3519_v31  ;;  %v3672_v3 = vadd.f32 %v2455_v38, %v717_v35  ;;  %943 = vrot.lane.b32.xlu0 %v897_v45, %s2527_s0  ;;  %v3675_v49 = vld [vmem:[#allocation2 + $0xaa] sm:$0xff]  ;;  %v771_v2 = vld [vmem:[#allocation2 + $0x32] sm:$0xff]  ;;  %v899_v20 = vpop.permute.xlu1 %898  ;;  %v902_v29 = vpop.permute.xlu0 %901 }
 0x1fc   :  { %v773_v36 = vld [vmem:[#allocation2 + $0x4a] sm:$0xff]  ;;  %v3677_v4 = vmul.f32 %v822_v18, %v822_v18  ;;  %v3680_v53 = vmul.f32 %v822_v18, %v3543_v44  ;;  %v808_v58 = vadd.f32 %v792_v11, %v3583_v0  ;;  %v3683_v59 = vadd.f32 %v2456_v21, %v718_v13  ;;  %v414_v23 = vld [vmem:[#allocation2 + $0xb2] sm:$0xff] }
 0x1fd   :  { %5097 = vst [vmem:[#allocation71_spill] sm:$0xff] %v3670_v62  ;;  %v755_v35 = vld [vmem:[#allocation2 + $0x30] sm:$0xff]  ;;  %749 = vst.msk [vmem:[#allocation2 + $0xa9] sm:$0xff] %vm366_vm4, %v3672_v3  ;;  %v900_v45 = vsel %vm93_vm0, %v899_v20, %v2941_v41  ;;  %v903_v38 = vsel %vm93_vm0, %v902_v29, %v2945_v42  ;;  %v3693_v44 = vadd.f32 %v3595_v16, %v3593_v46  ;;  %v757_v18 = vld [vmem:[#allocation2 + $0x48] sm:$0xff] }
 0x1fe   :  { %5098 = vst [vmem:[#allocation72_spill] sm:$0xff] %v3677_v4  ;;  %5099 = vst [vmem:[#allocation73_spill] sm:$0xff] %v3680_v53  ;;  %v3697_v0 = vadd.f32 %v3546_v63, %v3158_v32  ;;  %v444_v11 = vadd.f32 %v428_v26, %v3251_v57  ;;  %v3702_v13 = vadd.f32 %v3677_v4, %v3570_v33  ;;  %v824_v21 = vmul.f32 0.11111111, %v808_v58  ;;  %v762_v20 = vld [vmem:[#allocation2 + $0x80] sm:$0xff]  ;;  %v5185_v33 = vld [vmem:[#allocation53_spill] sm:$0xff] }
 0x1ff   :  { %v778_v53 = vld [vmem:[#allocation2 + $0x82] sm:$0xff]  ;;  %750 = vst.msk [vmem:[#allocation2 + $0xb1] sm:$0xff] %vm366_vm4, %v3683_v59  ;;  %945 = vrot.lane.b32.xlu1 %v900_v45, %s2527_s0  ;;  %v801_v46 = vadd.f32 %v785_v8, %v3447_v5  ;;  %v3708_v16 = vmul.f32 %v456_v39, %v456_v39  ;;  %947 = vrot.lane.b32.xlu0 %v903_v38, %s2527_s0  ;;  %v458_v26 = vmul.f32 0.11111111, %v442_v60  ;;  %v908_v4 = vpop.permute.xlu0 %907 }
 0x200   :  { %5100 = vst [vmem:[#allocation74_spill] sm:$0xff] %v3702_v13  ;;  %v794_v32 = vadd.f32 %v778_v53, %v762_v20  ;;  %v787_v57 = vadd.f32 %v771_v2, %v755_v35  ;;  %v789_v63 = vadd.f32 %v773_v36, %v757_v18  ;;  %v430_v29 = vadd.f32 %v414_v23, %v398_v40  ;;  %v905_v13 = vpop.permute.xlu1 %904  ;;  %v5104_v5 = vld [vmem:[#allocation12_spill] sm:$0xff]  ;;  %v5105_v53 = vld [vmem:[#allocation13_spill] sm:$0xff] }
 0x201   :  { %5101 = vst [vmem:[#allocation75_spill] sm:$0xff] %v3708_v16  ;;  %v3711_v6 = vmul.f32 %v824_v21, %v824_v21  ;;  %v3713_v58 = vmul.f32 %v824_v21, %v456_v39  ;;  %v764_v45 = vld [vmem:[#allocation2 + $0x98] sm:$0xff]  ;;  %v906_v8 = vsel %vm93_vm0, %v905_v13, %v5104_v5  ;;  %v909_v38 = vsel %vm93_vm0, %v908_v4, %v5105_v53 }
 0x202   :  { %v810_v62 = vadd.f32 %v794_v32, %v3625_v48  ;;  %v780_v19 = vld [vmem:[#allocation2 + $0x9a] sm:$0xff]  ;;  %v817_v2 = vmul.f32 0.11111111, %v801_v46  ;;  %v460_v36 = vmul.f32 0.11111111, %v444_v11  ;;  %v803_v40 = vadd.f32 %v787_v57, %v3480_v30  ;;  %v5112_v32 = vld [vmem:[#allocation14_spill] sm:$0xff] }
 0x203   :  { %5102 = vst [vmem:[#allocation76_spill] sm:$0xff] %v3711_v6  ;;  %5103 = vst [vmem:[#allocation77_spill] sm:$0xff] %v3713_v58  ;;  %v3722_v60 = vadd.f32 %v3711_v6, %v3708_v16  ;;  %v796_v39 = vadd.f32 %v780_v19, %v764_v45  ;;  %949 = vrot.lane.b32.xlu1 %v906_v8, %s2527_s0  ;;  %951 = vrot.lane.b32.xlu0 %v909_v38, %s2527_s0  ;;  %v1296_v21 = vpop.permute.xlu0 %1295  ;;  %v5113_v57 = vld [vmem:[#allocation15_spill] sm:$0xff]  ;;  %v5181_v16 = vld [vmem:[#allocation49_spill] sm:$0xff] }
 0x204   :  { %v826_v48 = vmul.f32 0.11111111, %v810_v62  ;;  %v3727_v23 = vmul.f32 %v817_v2, %v817_v2  ;;  %v3730_v35 = vmul.f32 %v817_v2, %v3474_v25  ;;  %v805_v4 = vadd.f32 %v789_v63, %v3526_v10  ;;  %v911_v13 = vpop.permute.xlu1 %910  ;;  %v765_v58 = vld [vmem:[#allocation2 + $0xa8] sm:$0xff]  ;;  %v5171_v6 = vld [vmem:[#allocation39_spill] sm:$0xff] }
 0x205   :  { %5106 = vst [vmem:[#allocation12_spill] sm:$0xff] %v3722_v60  ;;  %v3733_v11 = vmul.f32 %v458_v26, %v458_v26  ;;  %v446_v18 = vadd.f32 %v430_v29, %v3280_v61  ;;  %v812_v19 = vadd.f32 %v796_v39, %v3652_v7  ;;  %v427_v30 = vadd.f32 %v3633_v43, %v3631_v47  ;;  %v5169_v60 = vld [vmem:[#allocation37_spill] sm:$0xff] }
 0x206   :  { %5107 = vst [vmem:[#allocation13_spill] sm:$0xff] %v3727_v23  ;;  %5108 = vst [vmem:[#allocation78_spill] sm:$0xff] %v3730_v35  ;;  %v3739_v62 = vmul.f32 %v826_v48, %v826_v48  ;;  %v3741_v20 = vmul.f32 %v826_v48, %v458_v26  ;;  %v766_v46 = vld [vmem:[#allocation2 + $0xb0] sm:$0xff]  ;;  %v912_v10 = vsel %vm93_vm0, %v911_v13, %v5112_v32  ;;  %v819_v45 = vmul.f32 0.11111111, %v803_v40 }
 0x207   :  { %5109 = vst [vmem:[#allocation79_spill] sm:$0xff] %v3733_v11  ;;  %v782_v25 = vld [vmem:[#allocation2 + $0xb2] sm:$0xff]  ;;  %v1297_v63 = vsel %vm93_vm0, %v1296_v21, %v5113_v57  ;;  %v828_v61 = vmul.f32 0.11111111, %v812_v19  ;;  %953 = vrot.lane.b32.xlu1 %v912_v10, %s2527_s0  ;;  %v3750_v7 = vadd.f32 %v3727_v23, %v3515_v34  ;;  %v429_v47 = vadd.f32 %v3675_v49, %v3666_v28  ;;  %v914_v13 = vpop.permute.xlu0 %913  ;;  %v775_v28 = vld [vmem:[#allocation2 + $0x62] sm:$0xff]  ;;  %v5183_v23 = vld [vmem:[#allocation51_spill] sm:$0xff] }
 0x208   :  { %5110 = vst [vmem:[#allocation80_spill] sm:$0xff] %v3739_v62  ;;  %5111 = vst [vmem:[#allocation81_spill] sm:$0xff] %v3741_v20  ;;  %v798_v29 = vadd.f32 %v782_v25, %v766_v46  ;;  %v3754_v43 = vmul.f32 %v460_v36, %v460_v36  ;;  %v3758_v26 = vadd.f32 %v3739_v62, %v3733_v11  ;;  %1343 = vrot.lane.b32.xlu0 %v1297_v63, %s2527_s0  ;;  %v1299_v19 = vpop.permute.xlu1 %1298  ;;  %v5119_v49 = vld [vmem:[#allocation16_spill] sm:$0xff]  ;;  %v5120_v46 = vld [vmem:[#allocation17_spill] sm:$0xff] }
 0x209   :  { %5114 = vst [vmem:[#allocation14_spill] sm:$0xff] %v3750_v7  ;;  %v821_v8 = vmul.f32 0.11111111, %v805_v4  ;;  %v462_v38 = vmul.f32 0.11111111, %v446_v18  ;;  %v3761_v2 = vmul.f32 %v828_v61, %v828_v61  ;;  %v3763_v39 = vmul.f32 %v828_v61, %v460_v36  ;;  %v777_v36 = vld [vmem:[#allocation2 + $0x7a] sm:$0xff] }
 0x20a   :  { %5115 = vst [vmem:[#allocation15_spill] sm:$0xff] %v3754_v43  ;;  %5116 = vst [vmem:[#allocation82_spill] sm:$0xff] %v3758_v26  ;;  %v814_v48 = vadd.f32 %v798_v29, %v3683_v59  ;;  %v1300_v21 = vsel %vm93_vm0, %v1299_v19, %v5119_v49  ;;  %v915_v25 = vsel %vm93_vm0, %v914_v13, %v5120_v46  ;;  %v5123_v63 = vld [vmem:[#allocation36_spill] sm:$0xff]  ;;  %v5138_v26 = vld [vmem:[#allocation21_spill] sm:$0xff] }
 0x20b   :  { %5117 = vst [vmem:[#allocation83_spill] sm:$0xff] %v3761_v2  ;;  %5118 = vst [vmem:[#allocation84_spill] sm:$0xff] %v3763_v39  ;;  %v3772_v40 = vmul.f32 %v3575_v55, %v3575_v55  ;;  %v441_v4 = vadd.f32 %v3693_v44, %v3190_v50  ;;  %v3778_v59 = vadd.f32 %v3761_v2, %v3754_v43  ;;  %1345 = vrot.lane.b32.xlu1 %v1300_v21, %s2527_s0  ;;  %v759_v29 = vld [vmem:[#allocation2 + $0x60] sm:$0xff]  ;;  %v761_v21 = vld [vmem:[#allocation2 + $0x78] sm:$0xff] }
 0x20c   :  { %v830_v18 = vmul.f32 0.11111111, %v814_v48  ;;  %v443_v10 = vadd.f32 %v427_v30, %v3222_v51  ;;  %v445_v61 = vadd.f32 %v429_v47, %v5123_v63  ;;  %955 = vrot.lane.b32.xlu0 %v915_v25, %s2527_s0  ;;  %v3784_v19 = vmul.f32 %v819_v45, %v819_v45  ;;  %v779_v39 = vld [vmem:[#allocation2 + $0x92] sm:$0xff]  ;;  %v781_v51 = vld [vmem:[#allocation2 + $0xaa] sm:$0xff]  ;;  %v917_v25 = vpop.permute.xlu1 %916  ;;  %v1302_v63 = vpop.permute.xlu0 %1301 }
 0x20d   :  { %5121 = vst [vmem:[#allocation16_spill] sm:$0xff] %v3772_v40  ;;  %5122 = vst [vmem:[#allocation17_spill] sm:$0xff] %v3778_v59  ;;  %v3787_v13 = vmul.f32 %v819_v45, %v3482_v14  ;;  %v3789_v50 = vmul.f32 %v821_v8, %v821_v8  ;;  %v3792_v44 = vmul.f32 %v821_v8, %v3575_v55  ;;  %v5131_v59 = vld [vmem:[#allocation18_spill] sm:$0xff]  ;;  %v5132_v45 = vld [vmem:[#allocation19_spill] sm:$0xff] }
 0x20e   :  { %5124 = vst [vmem:[#allocation36_spill] sm:$0xff] %v3784_v19  ;;  %v3794_v48 = vmul.f32 %v462_v38, %v462_v38  ;;  %v3796_v30 = vmul.f32 %v830_v18, %v830_v18  ;;  %v3798_v47 = vmul.f32 %v830_v18, %v462_v38  ;;  %v791_v2 = vadd.f32 %v775_v28, %v759_v29  ;;  %v5133_v55 = vld [vmem:[#allocation58_spill] sm:$0xff]  ;;  %v5173_v43 = vld [vmem:[#allocation41_spill] sm:$0xff] }
 0x20f   :  { %5125 = vst [vmem:[#allocation85_spill] sm:$0xff] %v3787_v13  ;;  %5126 = vst [vmem:[#allocation86_spill] sm:$0xff] %v3789_v50  ;;  %v918_v14 = vsel %vm93_vm0, %v917_v25, %v5131_v59  ;;  %v1303_v20 = vsel %vm93_vm0, %v1302_v63, %v5132_v45  ;;  %v3806_v8 = vadd.f32 %v3784_v19, %v5133_v55  ;;  %v763_v13 = vld [vmem:[#allocation2 + $0x90] sm:$0xff]  ;;  %v455_v18 = vmul.f32 0.11111111, %v3697_v0  ;;  %v5179_v19 = vld [vmem:[#allocation47_spill] sm:$0xff] }
 0x210   :  { %5127 = vst [vmem:[#allocation87_spill] sm:$0xff] %v3792_v44  ;;  %5128 = vst [vmem:[#allocation88_spill] sm:$0xff] %v3794_v48  ;;  %v793_v44 = vadd.f32 %v777_v36, %v761_v21  ;;  %v3810_v38 = vadd.f32 %v3796_v30, %v3794_v48  ;;  %957 = vrot.lane.b32.xlu1 %v918_v14, %s2527_s0  ;;  %v3815_v28 = vadd.f32 %v3789_v50, %v3772_v40  ;;  %v920_v62 = vpop.permute.xlu0 %919  ;;  %v5175_v50 = vld [vmem:[#allocation43_spill] sm:$0xff]  ;;  %v5177_v11 = vld [vmem:[#allocation45_spill] sm:$0xff] }
 0x211   :  { %5129 = vst [vmem:[#allocation89_spill] sm:$0xff] %v3796_v30  ;;  %5130 = vst [vmem:[#allocation90_spill] sm:$0xff] %v3798_v47  ;;  %v457_v29 = vmul.f32 0.11111111, %v441_v4  ;;  %1347 = vrot.lane.b32.xlu0 %v1303_v20, %s2527_s0  ;;  %v459_v25 = vmul.f32 0.11111111, %v443_v10  ;;  %v795_v36 = vadd.f32 %v779_v39, %v763_v13  ;;  %v797_v21 = vadd.f32 %v781_v51, %v765_v58  ;;  %v1305_v47 = vpop.permute.xlu1 %1304 }
 0x212   :  { %5134 = vst [vmem:[#allocation18_spill] sm:$0xff] %v3806_v8  ;;  %5135 = vst [vmem:[#allocation91_spill] sm:$0xff] %v3810_v38  ;;  %v461_v63 = vmul.f32 0.11111111, %v445_v61  ;;  %v807_v30 = vadd.f32 %v791_v2, %v3551_v52  ;;  %v5137_v38 = vld [vmem:[#allocation20_spill] sm:$0xff]  ;;  %v921_v48 = vsel %vm93_vm0, %v920_v62, %v5138_v26  ;;  %v809_v35 = vadd.f32 %v793_v44, %v3585_v17 }
 0x213   :  { %5136 = vst [vmem:[#allocation92_spill] sm:$0xff] %v3815_v28  ;;  %v1306_v14 = vsel %vm93_vm0, %v1305_v47, %v5137_v38  ;;  %v811_v0 = vadd.f32 %v795_v36, %v3627_v56  ;;  %v813_v20 = vadd.f32 %v797_v21, %v3672_v3  ;;  %v3828_v58 = vmul.f32 %v455_v18, %v455_v18  ;;  %v5145_v3 = vld [vmem:[#allocation22_spill] sm:$0xff] }
 0x214   :  { %1349 = vrot.lane.b32.xlu1 %v1306_v14, %s2527_s0  ;;  %v823_v39 = vmul.f32 0.11111111, %v807_v30  ;;  %v825_v52 = vmul.f32 0.11111111, %v809_v35  ;;  %v3831_v2 = vmul.f32 %v457_v29, %v457_v29  ;;  %v3833_v4 = vmul.f32 %v459_v25, %v459_v25  ;;  %v1308_v17 = vpop.permute.xlu0 %1307  ;;  %v5146_v30 = vld [vmem:[#allocation23_spill] sm:$0xff] }
 0x215   :  { %5139 = vst [vmem:[#allocation93_spill] sm:$0xff] %v3828_v58  ;;  %959 = vrot.lane.b32.xlu0 %v921_v48, %s2527_s0  ;;  %v3835_v10 = vmul.f32 %v461_v63, %v461_v63  ;;  %v923_v62 = vpop.permute.xlu1 %922  ;;  %v827_v61 = vmul.f32 0.11111111, %v811_v0  ;;  %v829_v13 = vmul.f32 0.11111111, %v813_v20  ;;  %v1309_v35 = vsel %vm93_vm0, %v1308_v17, %v5146_v30  ;;  %v5158_v17 = vld [vmem:[#allocation25_spill] sm:$0xff] }
 0x216   :  { %5140 = vst [vmem:[#allocation94_spill] sm:$0xff] %v3831_v2  ;;  %5141 = vst [vmem:[#allocation95_spill] sm:$0xff] %v3833_v4  ;;  %v3837_v44 = vmul.f32 %v823_v39, %v823_v39  ;;  %v3839_v56 = vmul.f32 %v823_v39, %v455_v18  ;;  %v924_v51 = vsel %vm93_vm0, %v923_v62, %v5145_v3 }
 0x217   :  { %5142 = vst [vmem:[#allocation96_spill] sm:$0xff] %v3835_v10  ;;  %v3845_v48 = vmul.f32 %v825_v52, %v825_v52  ;;  %v3847_v47 = vmul.f32 %v825_v52, %v457_v29  ;;  %v3850_v36 = vmul.f32 %v827_v61, %v827_v61  ;;  %v3852_v21 = vmul.f32 %v829_v13, %v829_v13 }
 0x218   :  { %5143 = vst [vmem:[#allocation97_spill] sm:$0xff] %v3837_v44  ;;  %5144 = vst [vmem:[#allocation98_spill] sm:$0xff] %v3839_v56  ;;  %961 = vrot.lane.b32.xlu1 %v924_v51, %s2527_s0  ;;  %v3854_v14 = vmul.f32 %v827_v61, %v459_v25  ;;  %v3856_v18 = vmul.f32 %v829_v13, %v461_v63  ;;  %v3861_v0 = vadd.f32 %v3837_v44, %v3828_v58  ;;  %v926_v39 = vpop.permute.xlu0 %925  ;;  %v5157_v63 = vld [vmem:[#allocation24_spill] sm:$0xff] }
 0x219   :  { %5147 = vst [vmem:[#allocation22_spill] sm:$0xff] %v3845_v48  ;;  %5148 = vst [vmem:[#allocation99_spill] sm:$0xff] %v3847_v47  ;;  %1351 = vrot.lane.b32.xlu0 %v1309_v35, %s2527_s0  ;;  %v3865_v29 = vadd.f32 %v3845_v48, %v3831_v2  ;;  %v1311_v20 = vpop.permute.xlu1 %1310  ;;  %v3869_v52 = vadd.f32 %v3850_v36, %v3833_v4  ;;  %v3873_v25 = vadd.f32 %v3852_v21, %v3835_v10  ;;  %v5159_v35 = vld [vmem:[#allocation26_spill] sm:$0xff] }
 0x21a   :  { %5149 = vst [vmem:[#allocation100_spill] sm:$0xff] %v3850_v36  ;;  %5150 = vst [vmem:[#allocation101_spill] sm:$0xff] %v3852_v21  ;;  %v1312_v62 = vsel %vm93_vm0, %v1311_v20, %v5157_v63  ;;  %v927_v61 = vsel %vm93_vm0, %v926_v39, %v5158_v17  ;;  %v5167_v10 = vld [vmem:[#allocation34_spill] sm:$0xff] }
 0x21b   :  { %5151 = vst [vmem:[#allocation102_spill] sm:$0xff] %v3854_v14  ;;  %5152 = vst [vmem:[#allocation103_spill] sm:$0xff] %v3856_v18  ;;  %v5160_v14 = vld [vmem:[#allocation27_spill] sm:$0xff] }
 0x21c   :  { %5153 = vst [vmem:[#allocation104_spill] sm:$0xff] %v3861_v0  ;;  %5154 = vst [vmem:[#allocation105_spill] sm:$0xff] %v3865_v29  ;;  %1353 = vrot.lane.b32.xlu1 %v1312_v62, %s2527_s0  ;;  %v1314_v51 = vpop.permute.xlu0 %1313  ;;  %v5162_v62 = vld [vmem:[#allocation29_spill] sm:$0xff]  ;;  %v5165_v29 = vld [vmem:[#allocation32_spill] sm:$0xff] }
 0x21d   :  { %5155 = vst [vmem:[#allocation106_spill] sm:$0xff] %v3869_v52  ;;  %5156 = vst [vmem:[#allocation107_spill] sm:$0xff] %v3873_v25  ;;  %963 = vrot.lane.b32.xlu0 %v927_v61, %s2527_s0  ;;  %v929_v13 = vpop.permute.xlu1 %928  ;;  %v1315_v47 = vsel %vm93_vm0, %v1314_v51, %v5160_v14  ;;  %v5161_v25 = vld [vmem:[#allocation28_spill] sm:$0xff]  ;;  %v5163_v52 = vld [vmem:[#allocation30_spill] sm:$0xff] }
 0x21e   :  { %v930_v18 = vsel %vm93_vm0, %v929_v13, %v5159_v35 }
 0x220   :  { %965 = vrot.lane.b32.xlu1 %v930_v18, %s2527_s0  ;;  %v932_v21 = vpop.permute.xlu0 %931  ;;  %v5164_v18 = vld [vmem:[#allocation31_spill] sm:$0xff] }
 0x221   :  { %1355 = vrot.lane.b32.xlu0 %v1315_v47, %s2527_s0  ;;  %v1317_v20 = vpop.permute.xlu1 %1316  ;;  %v933_v61 = vsel %vm93_vm0, %v932_v21, %v5162_v62 }
 0x222   :  { %v1318_v39 = vsel %vm93_vm0, %v1317_v20, %v5161_v25 }
 0x224   :  { %1357 = vrot.lane.b32.xlu1 %v1318_v39, %s2527_s0  ;;  %v1320_v56 = vpop.permute.xlu0 %1319  ;;  %v5166_v39 = vld [vmem:[#allocation33_spill] sm:$0xff] }
 0x225   :  { %967 = vrot.lane.b32.xlu0 %v933_v61, %s2527_s0  ;;  %v935_v13 = vpop.permute.xlu1 %934  ;;  %v1321_v47 = vsel %vm93_vm0, %v1320_v56, %v5164_v18 }
 0x226   :  { %v936_v51 = vsel %vm93_vm0, %v935_v13, %v5163_v52 }
 0x228   :  { %969 = vrot.lane.b32.xlu1 %v936_v51, %s2527_s0  ;;  %v1696_v36 = vpop.permute.xlu0 %1695  ;;  %v5168_v51 = vld [vmem:[#allocation35_spill] sm:$0xff] }
 0x229   :  { %1359 = vrot.lane.b32.xlu0 %v1321_v47, %s2527_s0  ;;  %v1323_v20 = vpop.permute.xlu1 %1322  ;;  %v1697_v61 = vsel %vm93_vm0, %v1696_v36, %v5166_v39 }
 0x22a   :  { %v1324_v21 = vsel %vm93_vm0, %v1323_v20, %v5165_v29 }
 0x22c   :  { %1361 = vrot.lane.b32.xlu1 %v1324_v21, %s2527_s0  ;;  %v1702_v48 = vpop.permute.xlu0 %1701  ;;  %v5170_v21 = vld [vmem:[#allocation38_spill] sm:$0xff] }
 0x22d   :  { %1743 = vrot.lane.b32.xlu0 %v1697_v61, %s2527_s0  ;;  %v1699_v13 = vpop.permute.xlu1 %1698  ;;  %v1703_v47 = vsel %vm93_vm0, %v1702_v48, %v5168_v51 }
 0x22e   :  { %v1700_v56 = vsel %vm93_vm0, %v1699_v13, %v5167_v10 }
 0x230   :  { %1745 = vrot.lane.b32.xlu1 %v1700_v56, %s2527_s0  ;;  %v938_v0 = vpop.permute.xlu0 %937  ;;  %v5172_v56 = vld [vmem:[#allocation40_spill] sm:$0xff] }
 0x231   :  { %1747 = vrot.lane.b32.xlu0 %v1703_v47, %s2527_s0  ;;  %v1705_v20 = vpop.permute.xlu1 %1704  ;;  %v939_v61 = vsel %vm93_vm0, %v938_v0, %v5170_v21 }
 0x232   :  { %v1706_v36 = vsel %vm93_vm0, %v1705_v20, %v5169_v60 }
 0x234   :  { %1749 = vrot.lane.b32.xlu1 %v1706_v36, %s2527_s0  ;;  %v1326_v44 = vpop.permute.xlu0 %1325  ;;  %v5174_v36 = vld [vmem:[#allocation42_spill] sm:$0xff] }
 0x235   :  { %971 = vrot.lane.b32.xlu0 %v939_v61, %s2527_s0  ;;  %v941_v13 = vpop.permute.xlu1 %940  ;;  %v1327_v47 = vsel %vm93_vm0, %v1326_v44, %v5172_v56 }
 0x236   :  { %v942_v48 = vsel %vm93_vm0, %v941_v13, %v5171_v6 }
 0x238   :  { %973 = vrot.lane.b32.xlu1 %v942_v48, %s2527_s0  ;;  %v1708_v4 = vpop.permute.xlu0 %1707  ;;  %v5176_v48 = vld [vmem:[#allocation44_spill] sm:$0xff] }
 0x239   :  { %1363 = vrot.lane.b32.xlu0 %v1327_v47, %s2527_s0  ;;  %v1329_v20 = vpop.permute.xlu1 %1328  ;;  %v1709_v61 = vsel %vm93_vm0, %v1708_v4, %v5174_v36 }
 0x23a   :  { %v1330_v0 = vsel %vm93_vm0, %v1329_v20, %v5173_v43 }
 0x23c   :  { %1365 = vrot.lane.b32.xlu1 %v1330_v0, %s2527_s0  ;;  %v1332_v28 = vpop.permute.xlu0 %1331  ;;  %v5178_v0 = vld [vmem:[#allocation46_spill] sm:$0xff] }
 0x23d   :  { %1751 = vrot.lane.b32.xlu0 %v1709_v61, %s2527_s0  ;;  %v1711_v13 = vpop.permute.xlu1 %1710  ;;  %v1333_v47 = vsel %vm93_vm0, %v1332_v28, %v5176_v48 }
 0x23e   :  { %v1712_v44 = vsel %vm93_vm0, %v1711_v13, %v5175_v50 }
 0x240   :  { %1753 = vrot.lane.b32.xlu1 %v1712_v44, %s2527_s0  ;;  %v1714_v2 = vpop.permute.xlu0 %1713  ;;  %v5180_v44 = vld [vmem:[#allocation48_spill] sm:$0xff] }
 0x241   :  { %1367 = vrot.lane.b32.xlu0 %v1333_v47, %s2527_s0  ;;  %v1335_v20 = vpop.permute.xlu1 %1334  ;;  %v1715_v61 = vsel %vm93_vm0, %v1714_v2, %v5178_v0 }
 0x242   :  { %v1336_v4 = vsel %vm93_vm0, %v1335_v20, %v5177_v11 }
 0x244   :  { %1369 = vrot.lane.b32.xlu1 %v1336_v4, %s2527_s0  ;;  %v1338_v8 = vpop.permute.xlu0 %1337  ;;  %v5182_v4 = vld [vmem:[#allocation50_spill] sm:$0xff] }
 0x245   :  { %1755 = vrot.lane.b32.xlu0 %v1715_v61, %s2527_s0  ;;  %v1717_v13 = vpop.permute.xlu1 %1716  ;;  %v1339_v47 = vsel %vm93_vm0, %v1338_v8, %v5180_v44 }
 0x246   :  { %v1718_v28 = vsel %vm93_vm0, %v1717_v13, %v5179_v19 }
 0x248   :  { %1757 = vrot.lane.b32.xlu1 %v1718_v28, %s2527_s0  ;;  %v1720_v58 = vpop.permute.xlu0 %1719  ;;  %v5184_v28 = vld [vmem:[#allocation52_spill] sm:$0xff] }
 0x249   :  { %1371 = vrot.lane.b32.xlu0 %v1339_v47, %s2527_s0  ;;  %v1341_v20 = vpop.permute.xlu1 %1340  ;;  %v1721_v61 = vsel %vm93_vm0, %v1720_v58, %v5182_v4 }
 0x24a   :  { %v1342_v2 = vsel %vm93_vm0, %v1341_v20, %v5181_v16 }
 0x24c   :  { %1373 = vrot.lane.b32.xlu1 %v1342_v2, %s2527_s0  ;;  %v1726_v7 = vpop.permute.xlu0 %1725  ;;  %v5186_v2 = vld [vmem:[#allocation54_spill] sm:$0xff] }
 0x24d   :  { %1759 = vrot.lane.b32.xlu0 %v1721_v61, %s2527_s0  ;;  %v1723_v13 = vpop.permute.xlu1 %1722  ;;  %v1727_v47 = vsel %vm93_vm0, %v1726_v7, %v5184_v28 }
 0x24e   :  { %v1724_v8 = vsel %vm93_vm0, %v1723_v13, %v5183_v23 }
 0x250   :  { %1761 = vrot.lane.b32.xlu1 %v1724_v8, %s2527_s0  ;;  %v1732_v40 = vpop.permute.xlu0 %1731  ;;  %v5188_v8 = vld [vmem:[#allocation56_spill] sm:$0xff] }
 0x251   :  { %1763 = vrot.lane.b32.xlu0 %v1727_v47, %s2527_s0  ;;  %v1729_v20 = vpop.permute.xlu1 %1728  ;;  %v1733_v61 = vsel %vm93_vm0, %v1732_v40, %v5186_v2 }
 0x252   :  { %v1730_v58 = vsel %vm93_vm0, %v1729_v20, %v5185_v33  ;;  %v5189_v33 = vld [vmem:[#allocation57_spill] sm:$0xff] }
 0x254   :  { %1765 = vrot.lane.b32.xlu1 %v1730_v58, %s2527_s0  ;;  %v1738_v22 = vpop.permute.xlu0 %1737 }
 0x255   :  { %1767 = vrot.lane.b32.xlu0 %v1733_v61, %s2527_s0  ;;  %v1735_v13 = vpop.permute.xlu1 %1734  ;;  %v1739_v47 = vsel %vm93_vm0, %v1738_v22, %v5188_v8 }
 0x256   :  { %v1736_v7 = vsel %vm93_vm0, %v1735_v13, %v5187_v27 }
 0x258   :  { %1769 = vrot.lane.b32.xlu1 %v1736_v7, %s2527_s0 }
 0x259   :  { %1771 = vrot.lane.b32.xlu0 %v1739_v47, %s2527_s0  ;;  %v1741_v20 = vpop.permute.xlu1 %1740 }
 0x25a   :  { %v1742_v40 = vsel %vm93_vm0, %v1741_v20, %v5189_v33 }
 0x25c   :  { %1773 = vrot.lane.b32.xlu1 %v1742_v40, %s2527_s0 }
 0x26d   :  { %v944_v58 = vpop.permute.xlu0 %943 }
 0x26e   :  { %v975_v61 = vsel %vm93_vm0, %v944_v58, %v2930_v37 }
 0x26f   :  { %1007 = vrot.lane.b32.xlu0 %v975_v61, %s2528_s1 }
 0x271   :  { %v946_v13 = vpop.permute.xlu1 %945  ;;  %v948_v8 = vpop.permute.xlu0 %947 }
 0x272   :  { %v976_v22 = vsel %vm93_vm0, %v946_v13, %v2941_v41  ;;  %v977_v7 = vsel %vm93_vm0, %v948_v8, %v2945_v42 }
 0x273   :  { %1009 = vrot.lane.b32.xlu1 %v976_v22, %s2528_s1  ;;  %1071 = vrot.lane.b32.xlu0 %v975_v61, %s2530_s21 }
 0x275   :  { %v950_v47 = vpop.permute.xlu1 %949  ;;  %v952_v20 = vpop.permute.xlu0 %951 }
 0x276   :  { %v978_v40 = vsel %vm93_vm0, %v950_v47, %v5104_v5  ;;  %v979_v61 = vsel %vm93_vm0, %v952_v20, %v5105_v53 }
 0x277   :  { %1073 = vrot.lane.b32.xlu1 %v976_v22, %s2530_s21  ;;  %1011 = vrot.lane.b32.xlu0 %v977_v7, %s2528_s1 }
 0x279   :  { %v954_v58 = vpop.permute.xlu1 %953 }
 0x27a   :  { %v1344_v33 = vpop.permute.xlu0 %1343  ;;  %v980_v22 = vsel %vm93_vm0, %v954_v58, %v5112_v32 }
 0x27b   :  { %1013 = vrot.lane.b32.xlu1 %v978_v40, %s2528_s1  ;;  %1075 = vrot.lane.b32.xlu0 %v977_v7, %s2530_s21  ;;  %v1375_v7 = vsel %vm93_vm0, %v1344_v33, %v5113_v57 }
 0x27d   :  { %v1346_v13 = vpop.permute.xlu1 %1345 }
 0x27e   :  { %v956_v8 = vpop.permute.xlu0 %955 }
 0x27f   :  { %1077 = vrot.lane.b32.xlu1 %v978_v40, %s2530_s21  ;;  %1015 = vrot.lane.b32.xlu0 %v979_v61, %s2528_s1  ;;  %v1376_v40 = vsel %vm93_vm0, %v1346_v13, %v5119_v49 }
 0x282   :  { %v958_v27 = vpop.permute.xlu1 %957 }
 0x283   :  { %v1348_v47 = vpop.permute.xlu0 %1347  ;;  %1017 = vrot.lane.b32.xlu1 %v980_v22, %s2528_s1  ;;  %1079 = vrot.lane.b32.xlu0 %v979_v61, %s2530_s21  ;;  %v981_v61 = vsel %vm93_vm0, %v956_v8, %v5120_v46 }
 0x286   :  { %v1350_v2 = vpop.permute.xlu1 %1349 }
 0x287   :  { %v960_v20 = vpop.permute.xlu0 %959  ;;  %1081 = vrot.lane.b32.xlu1 %v980_v22, %s2530_s21  ;;  %1407 = vrot.lane.b32.xlu0 %v1375_v7, %s2528_s1  ;;  %v982_v22 = vsel %vm93_vm0, %v958_v27, %v5131_v59 }
 0x28a   :  { %v962_v28 = vpop.permute.xlu1 %961 }
 0x28b   :  { %v1352_v58 = vpop.permute.xlu0 %1351  ;;  %1409 = vrot.lane.b32.xlu1 %v1376_v40, %s2528_s1  ;;  %1471 = vrot.lane.b32.xlu0 %v1375_v7, %s2530_s21  ;;  %v1377_v7 = vsel %vm93_vm0, %v1348_v47, %v5132_v45  ;;  %v984_v45 = vsel %vm93_vm0, %v962_v28, %v5145_v3 }
 0x28e   :  { %v1354_v1 = vpop.permute.xlu1 %1353 }
 0x28f   :  { %v964_v33 = vpop.permute.xlu0 %963  ;;  %1473 = vrot.lane.b32.xlu1 %v1376_v40, %s2530_s21  ;;  %1019 = vrot.lane.b32.xlu0 %v981_v61, %s2528_s1  ;;  %v1378_v40 = vsel %vm93_vm0, %v1350_v2, %v5137_v38 }
 0x292   :  { %v966_v9 = vpop.permute.xlu1 %965 }
 0x293   :  { %v1356_v13 = vpop.permute.xlu0 %1355  ;;  %1021 = vrot.lane.b32.xlu1 %v982_v22, %s2528_s1  ;;  %1083 = vrot.lane.b32.xlu0 %v981_v61, %s2530_s21  ;;  %v983_v61 = vsel %vm93_vm0, %v960_v20, %v5138_v26  ;;  %v1379_v20 = vsel %vm93_vm0, %v1352_v58, %v5146_v30  ;;  %v1380_v26 = vsel %vm93_vm0, %v1354_v1, %v5157_v63 }
 0x296   :  { %v1358_v23 = vpop.permute.xlu1 %1357 }
 0x297   :  { %v968_v8 = vpop.permute.xlu0 %967  ;;  %1085 = vrot.lane.b32.xlu1 %v982_v22, %s2530_s21  ;;  %1411 = vrot.lane.b32.xlu0 %v1377_v7, %s2528_s1 }
 0x29a   :  { %v970_v4 = vpop.permute.xlu1 %969 }
 0x29b   :  { %v1360_v27 = vpop.permute.xlu0 %1359  ;;  %1413 = vrot.lane.b32.xlu1 %v1378_v40, %s2528_s1  ;;  %1475 = vrot.lane.b32.xlu0 %v1377_v7, %s2530_s21 }
 0x29e   :  { %v1362_v55 = vpop.permute.xlu1 %1361 }
 0x29f   :  { %v1744_v47 = vpop.permute.xlu0 %1743  ;;  %1477 = vrot.lane.b32.xlu1 %v1378_v40, %s2530_s21  ;;  %1023 = vrot.lane.b32.xlu0 %v983_v61, %s2528_s1 }
 0x2a2   :  { %v1746_v22 = vpop.permute.xlu1 %1745 }
 0x2a3   :  { %v1748_v2 = vpop.permute.xlu0 %1747  ;;  %1025 = vrot.lane.b32.xlu1 %v984_v45, %s2528_s1  ;;  %1087 = vrot.lane.b32.xlu0 %v983_v61, %s2530_s21  ;;  %v985_v61 = vsel %vm93_vm0, %v964_v33, %v5158_v17  ;;  %v1381_v33 = vsel %vm93_vm0, %v1356_v13, %v5160_v14  ;;  %v987_v13 = vsel %vm93_vm0, %v968_v8, %v5162_v62 }
 0x2a6   :  { %v1750_v38 = vpop.permute.xlu1 %1749 }
 0x2a7   :  { %v972_v7 = vpop.permute.xlu0 %971  ;;  %1089 = vrot.lane.b32.xlu1 %v984_v45, %s2530_s21  ;;  %1415 = vrot.lane.b32.xlu0 %v1379_v20, %s2528_s1  ;;  %v986_v45 = vsel %vm93_vm0, %v966_v9, %v5159_v35  ;;  %v1382_v9 = vsel %vm93_vm0, %v1358_v23, %v5161_v25  ;;  %v988_v23 = vsel %vm93_vm0, %v970_v4, %v5163_v52 }
 0x2aa   :  { %v974_v40 = vpop.permute.xlu1 %973 }
 0x2ab   :  { %1417 = vrot.lane.b32.xlu1 %v1380_v26, %s2528_s1  ;;  %1479 = vrot.lane.b32.xlu0 %v1379_v20, %s2530_s21  ;;  %v4037_v28 = vpop.permute.xlu0 %1363 }
 0x2ae   :  { %v4042_v58 = vpop.permute.xlu1 %1365 }
 0x2af   :  { %1481 = vrot.lane.b32.xlu1 %v1380_v26, %s2530_s21  ;;  %1027 = vrot.lane.b32.xlu0 %v985_v61, %s2528_s1  ;;  %v4047_v30 = vpop.permute.xlu0 %1751 }
 0x2b2   :  { %v4051_v1 = vpop.permute.xlu1 %1753 }
 0x2b3   :  { %1029 = vrot.lane.b32.xlu1 %v986_v45, %s2528_s1  ;;  %1091 = vrot.lane.b32.xlu0 %v985_v61, %s2530_s21  ;;  %v4057_v26 = vpop.permute.xlu0 %1367 }
 0x2b6   :  { %v4062_v20 = vpop.permute.xlu1 %1369 }
 0x2b7   :  { %1093 = vrot.lane.b32.xlu1 %v986_v45, %s2530_s21  ;;  %1419 = vrot.lane.b32.xlu0 %v1381_v33, %s2528_s1  ;;  %v4065_v61 = vpop.permute.xlu0 %1755 }
 0x2ba   :  { %v4071_v45 = vpop.permute.xlu1 %1757 }
 0x2bb   :  { %1421 = vrot.lane.b32.xlu1 %v1382_v9, %s2528_s1  ;;  %1483 = vrot.lane.b32.xlu0 %v1381_v33, %s2530_s21  ;;  %v4077_v25 = vpop.permute.xlu0 %1371  ;;  %v1383_v33 = vsel %vm93_vm0, %v1360_v27, %v5164_v18  ;;  %v1775_v27 = vsel %vm93_vm0, %v1744_v47, %v5166_v39  ;;  %v1777_v47 = vsel %vm93_vm0, %v1748_v2, %v5168_v51 }
 0x2be   :  { %v4082_v8 = vpop.permute.xlu1 %1373 }
 0x2bf   :  { %1485 = vrot.lane.b32.xlu1 %v1382_v9, %s2530_s21  ;;  %1031 = vrot.lane.b32.xlu0 %v987_v13, %s2528_s1  ;;  %v1384_v9 = vsel %vm93_vm0, %v1362_v55, %v5165_v29  ;;  %v4087_v62 = vpop.permute.xlu0 %1759  ;;  %v1776_v55 = vsel %vm93_vm0, %v1746_v22, %v5167_v10  ;;  %v1778_v22 = vsel %vm93_vm0, %v1750_v38, %v5169_v60 }
 0x2c2   :  { %v4091_v4 = vpop.permute.xlu1 %1761 }
 0x2c3   :  { %1033 = vrot.lane.b32.xlu1 %v988_v23, %s2528_s1  ;;  %1095 = vrot.lane.b32.xlu0 %v987_v13, %s2530_s21  ;;  %v4097_v13 = vpop.permute.xlu0 %1763 }
 0x2c7   :  { %1097 = vrot.lane.b32.xlu1 %v988_v23, %s2530_s21  ;;  %1423 = vrot.lane.b32.xlu0 %v1383_v33, %s2528_s1  ;;  %v4102_v23 = vpop.permute.xlu1 %1765 }
 0x2cb   :  { %1425 = vrot.lane.b32.xlu1 %v1384_v9, %s2528_s1  ;;  %1487 = vrot.lane.b32.xlu0 %v1383_v33, %s2530_s21  ;;  %v4105_v33 = vpop.permute.xlu0 %1767 }
 0x2cf   :  { %1489 = vrot.lane.b32.xlu1 %v1384_v9, %s2530_s21  ;;  %1807 = vrot.lane.b32.xlu0 %v1775_v27, %s2528_s1  ;;  %v4111_v9 = vpop.permute.xlu1 %1769  ;;  %v4117_v10 = vpop.permute.xlu0 %1771 }
 0x2d3   :  { %1809 = vrot.lane.b32.xlu1 %v1776_v55, %s2528_s1  ;;  %1871 = vrot.lane.b32.xlu0 %v1775_v27, %s2530_s21  ;;  %v989_v27 = vsel %vm93_vm0, %v972_v7, %v5170_v21  ;;  %v4122_v2 = vpop.permute.xlu1 %1773  ;;  %v1385_v7 = vsel %vm93_vm0, %v4037_v28, %v5172_v56 }
 0x2d7   :  { %1873 = vrot.lane.b32.xlu1 %v1776_v55, %s2530_s21  ;;  %1811 = vrot.lane.b32.xlu0 %v1777_v47, %s2528_s1  ;;  %v990_v55 = vsel %vm93_vm0, %v974_v40, %v5171_v6 }
 0x2db   :  { %1813 = vrot.lane.b32.xlu1 %v1778_v22, %s2528_s1  ;;  %1875 = vrot.lane.b32.xlu0 %v1777_v47, %s2530_s21 }
 0x2df   :  { %1877 = vrot.lane.b32.xlu1 %v1778_v22, %s2530_s21  ;;  %1035 = vrot.lane.b32.xlu0 %v989_v27, %s2528_s1 }
 0x2e1   :  { %v1008_v51 = vpop.permute.xlu0 %1007 }
 0x2e2   :  { %v1055_v38 = vsel %vm75_vm2, %v1008_v51, 0.0 }
 0x2e3   :  { %1037 = vrot.lane.b32.xlu1 %v990_v55, %s2528_s1  ;;  %1099 = vrot.lane.b32.xlu0 %v989_v27, %s2530_s21  ;;  %v1386_v27 = vsel %vm93_vm0, %v4042_v58, %v5173_v43 }
 0x2e5   :  { %v1010_v47 = vpop.permute.xlu1 %1009  ;;  %v1072_v60 = vpop.permute.xlu0 %1071 }
 0x2e6   :  { %v1119_v22 = vsel %vm74_vm3, %v1072_v60, 0.0  ;;  %v1056_v51 = vsel %vm75_vm2, %v1010_v47, 0.0 }
 0x2e7   :  { %1101 = vrot.lane.b32.xlu1 %v990_v55, %s2530_s21  ;;  %v1135_v40 = vadd.f32 %v1119_v22, %v1055_v38  ;;  %1427 = vrot.lane.b32.xlu0 %v1385_v7, %s2528_s1 }
 0x2e9   :  { %v1074_v6 = vpop.permute.xlu1 %1073  ;;  %v1151_v21 = vadd.f32 %v1135_v40, %v2930_v37  ;;  %v1012_v56 = vpop.permute.xlu0 %1011  ;;  %v1779_v37 = vsel %vm93_vm0, %v4047_v30, %v5174_v36 }
 0x2ea   :  { %v1120_v28 = vsel %vm74_vm3, %v1074_v6, 0.0  ;;  %v1057_v58 = vsel %vm75_vm2, %v1012_v56, 0.0  ;;  %v1780_v56 = vsel %vm93_vm0, %v4051_v1, %v5175_v50  ;;  %v1388_v50 = vsel %vm93_vm0, %v4062_v20, %v5177_v11 }
 0x2eb   :  { %v1136_v60 = vadd.f32 %v1120_v28, %v1056_v51  ;;  %1429 = vrot.lane.b32.xlu1 %v1386_v27, %s2528_s1  ;;  %1167 = vst.msk [vmem:[#allocation2 + $0x1] sm:$0xff] %vm366_vm4, %v1151_v21  ;;  %1491 = vrot.lane.b32.xlu0 %v1385_v7, %s2530_s21 }
 0x2ed   :  { %v1152_v55 = vadd.f32 %v1136_v60, %v2941_v41  ;;  %v1014_v38 = vpop.permute.xlu1 %1013  ;;  %v1076_v47 = vpop.permute.xlu0 %1075 }
 0x2ee   :  { %v1121_v6 = vsel %vm74_vm3, %v1076_v47, 0.0  ;;  %v1058_v7 = vsel %vm75_vm2, %v1014_v38, 0.0 }
 0x2ef   :  { %1168 = vst.msk [vmem:[#allocation2 + $0x9] sm:$0xff] %vm366_vm4, %v1152_v55  ;;  %1493 = vrot.lane.b32.xlu1 %v1386_v27, %s2530_s21  ;;  %v1137_v22 = vadd.f32 %v1121_v6, %v1057_v58  ;;  %1815 = vrot.lane.b32.xlu0 %v1779_v37, %s2528_s1 }
 0x2f1   :  { %v1078_v41 = vpop.permute.xlu1 %1077  ;;  %v1153_v30 = vadd.f32 %v1137_v22, %v2945_v42  ;;  %v1016_v51 = vpop.permute.xlu0 %1015  ;;  %v1387_v22 = vsel %vm93_vm0, %v4057_v26, %v5176_v48 }
 0x2f2   :  { %v1122_v40 = vsel %vm74_vm3, %v1078_v41, 0.0  ;;  %v1183_v27 = vld [vmem:[#allocation2] sm:$0xff]  ;;  %v1059_v1 = vsel %vm75_vm2, %v1016_v51, 0.0 }
 0x2f3   :  { %v1138_v28 = vadd.f32 %v1122_v40, %v1058_v7  ;;  %1817 = vrot.lane.b32.xlu1 %v1780_v56, %s2528_s1  ;;  %1169 = vst.msk [vmem:[#allocation2 + $0x19] sm:$0xff] %vm366_vm4, %v1153_v30  ;;  %1879 = vrot.lane.b32.xlu0 %v1779_v37, %s2530_s21 }
 0x2f5   :  { %v1154_v60 = vadd.f32 %v1138_v28, %v5104_v5  ;;  %v1018_v58 = vpop.permute.xlu1 %1017  ;;  %v1080_v6 = vpop.permute.xlu0 %1079 }
 0x2f6   :  { %v1184_v38 = vld [vmem:[#allocation2 + $0x8] sm:$0xff]  ;;  %v1123_v37 = vsel %vm74_vm3, %v1080_v6, 0.0  ;;  %v1060_v26 = vsel %vm75_vm2, %v1018_v58, 0.0 }
 0x2f7   :  { %v1199_v42 = vld [vmem:[#allocation2 + $0x2] sm:$0xff]  ;;  %v1200_v47 = vld [vmem:[#allocation2 + $0xa] sm:$0xff]  ;;  %1170 = vst.msk [vmem:[#allocation2 + $0x21] sm:$0xff] %vm366_vm4, %v1154_v60  ;;  %1881 = vrot.lane.b32.xlu1 %v1780_v56, %s2530_s21  ;;  %v1139_v7 = vadd.f32 %v1123_v37, %v1059_v1  ;;  %1431 = vrot.lane.b32.xlu0 %v1387_v22, %s2528_s1 }
 0x2f8   :  { %v1216_v41 = vadd.f32 %v1200_v47, %v1184_v38  ;;  %v1215_v5 = vadd.f32 %v1199_v42, %v1183_v27 }
 0x2f9   :  { %v1082_v51 = vpop.permute.xlu1 %1081  ;;  %v1155_v38 = vadd.f32 %v1139_v7, %v5105_v53  ;;  %v1408_v56 = vpop.permute.xlu0 %1407 }
 0x2fa   :  { %v1232_v40 = vadd.f32 %v1216_v41, %v1152_v55  ;;  %v1231_v28 = vadd.f32 %v1215_v5, %v1151_v21  ;;  %v1124_v47 = vsel %vm74_vm3, %v1082_v51, 0.0  ;;  %v1185_v20 = vld [vmem:[#allocation2 + $0x18] sm:$0xff]  ;;  %v1455_v58 = vsel %vm75_vm2, %v1408_v56, 0.0 }
 0x2fb   :  { %v1140_v1 = vadd.f32 %v1124_v47, %v1060_v26  ;;  %1433 = vrot.lane.b32.xlu1 %v1388_v50, %s2528_s1  ;;  %1171 = vst.msk [vmem:[#allocation2 + $0x31] sm:$0xff] %vm366_vm4, %v1155_v38  ;;  %1495 = vrot.lane.b32.xlu0 %v1387_v22, %s2530_s21  ;;  %v1781_v22 = vsel %vm93_vm0, %v4065_v61, %v5178_v0 }
 0x2fc   :  { %v4190_v27 = vmul.f32 0.11111111, %v1232_v40  ;;  %v4193_v55 = vmul.f32 0.11111111, %v1231_v28 }
 0x2fd   :  { %v1156_v53 = vadd.f32 %v1140_v1, %v5112_v32  ;;  %v1410_v42 = vpop.permute.xlu1 %1409  ;;  %v1472_v7 = vpop.permute.xlu0 %1471  ;;  %v1782_v1 = vsel %vm93_vm0, %v4071_v45, %v5179_v19 }
 0x2fe   :  { %v1264_v21 = vsub.f32 %v4190_v27, %v3496_v15  ;;  %v1263_v6 = vsub.f32 %v4193_v55, %v3506_v12  ;;  %v1186_v41 = vld [vmem:[#allocation2 + $0x20] sm:$0xff]  ;;  %v1519_v32 = vsel %vm74_vm3, %v1472_v7, 0.0  ;;  %v1456_v61 = vsel %vm75_vm2, %v1410_v42, 0.0  ;;  %v5199_v15 = vld [vmem:[#allocation65_spill] sm:$0xff] }
 0x2ff   :  { %v1201_v37 = vld [vmem:[#allocation2 + $0x1a] sm:$0xff]  ;;  %v1202_v5 = vld [vmem:[#allocation2 + $0x22] sm:$0xff]  ;;  %1172 = vst.msk [vmem:[#allocation2 + $0x39] sm:$0xff] %vm366_vm4, %v1156_v53  ;;  %1497 = vrot.lane.b32.xlu1 %v1388_v50, %s2530_s21  ;;  %v1535_v28 = vadd.f32 %v1519_v32, %v1455_v58  ;;  %1819 = vrot.lane.b32.xlu0 %v1781_v22, %s2528_s1  ;;  %v2175_v27 = vadd.f32 0.0001, %v5199_v15  ;;  %v5201_v55 = vld [vmem:[#allocation21_spill] sm:$0xff] }
 0x300   :  { %v1218_v40 = vadd.f32 %v1202_v5, %v1186_v41  ;;  %v1217_v51 = vadd.f32 %v1201_v37, %v1185_v20 }
 0x301   :  { %v1474_v47 = vpop.permute.xlu1 %1473  ;;  %v1551_v41 = vadd.f32 %v1535_v28, %v5113_v57  ;;  %v1020_v50 = vpop.permute.xlu0 %1019 }
 0x302   :  { %v1234_v26 = vadd.f32 %v1218_v40, %v1154_v60  ;;  %v1233_v56 = vadd.f32 %v1217_v51, %v1153_v30  ;;  %v1520_v5 = vsel %vm74_vm3, %v1474_v47, 0.0  ;;  %v1187_v30 = vld [vmem:[#allocation2 + $0x30] sm:$0xff]  ;;  %v1061_v42 = vsel %vm75_vm2, %v1020_v50, 0.0 }
 0x303   :  { %v1536_v58 = vadd.f32 %v1520_v5, %v1456_v61  ;;  %1821 = vrot.lane.b32.xlu1 %v1782_v1, %s2528_s1  ;;  %1567 = vst.msk [vmem:[#allocation2 + $0x1] sm:$0xff] %vm366_vm4, %v1551_v41  ;;  %1883 = vrot.lane.b32.xlu0 %v1781_v22, %s2530_s21  ;;  %v1389_v22 = vsel %vm93_vm0, %v4077_v25, %v5180_v44 }
 0x304   :  { %v4220_v20 = vmul.f32 0.11111111, %v1234_v26  ;;  %v4223_v60 = vmul.f32 0.11111111, %v1233_v56 }
 0x305   :  { %v1552_v57 = vadd.f32 %v1536_v58, %v5119_v49  ;;  %v1022_v37 = vpop.permute.xlu1 %1021  ;;  %v1084_v28 = vpop.permute.xlu0 %1083  ;;  %v1390_v58 = vsel %vm93_vm0, %v4082_v8, %v5181_v16 }
 0x306   :  { %v1266_v45 = vsub.f32 %v4220_v20, %v3510_v24  ;;  %v1188_v40 = vld [vmem:[#allocation2 + $0x38] sm:$0xff]  ;;  %v1125_v49 = vsel %vm74_vm3, %v1084_v28, 0.0  ;;  %v1062_v25 = vsel %vm75_vm2, %v1022_v37, 0.0 }
 0x307   :  { %v1203_v32 = vld [vmem:[#allocation2 + $0x32] sm:$0xff]  ;;  %v1204_v51 = vld [vmem:[#allocation2 + $0x3a] sm:$0xff]  ;;  %1568 = vst.msk [vmem:[#allocation2 + $0x9] sm:$0xff] %vm366_vm4, %v1552_v57  ;;  %1885 = vrot.lane.b32.xlu1 %v1782_v1, %s2530_s21  ;;  %v1141_v56 = vadd.f32 %v1125_v49, %v1061_v42  ;;  %1435 = vrot.lane.b32.xlu0 %v1389_v22, %s2528_s1 }
 0x308   :  { %v1220_v26 = vadd.f32 %v1204_v51, %v1188_v40  ;;  %v1219_v47 = vadd.f32 %v1203_v32, %v1187_v30  ;;  %v5190_v28 = vld [vmem:[#allocation58_spill] sm:$0xff] }
 0x309   :  { %v1086_v5 = vpop.permute.xlu1 %1085  ;;  %v4248_v40 = vadd.f32 %v1141_v56, %v5120_v46  ;;  %v1412_v30 = vpop.permute.xlu0 %1411  ;;  %v5192_v46 = vld [vmem:[#allocation51_spill] sm:$0xff]  ;;  %v5212_v24 = vld [vmem:[#allocation14_spill] sm:$0xff] }
 0x30a   :  { %v1236_v61 = vadd.f32 %v1220_v26, %v1156_v53  ;;  %v1235_v50 = vadd.f32 %v1219_v47, %v1155_v38  ;;  %v1126_v1 = vsel %vm74_vm3, %v1086_v5, 0.0  ;;  %v1457_v53 = vsel %vm75_vm2, %v1412_v30, 0.0  ;;  %v1583_v51 = vld [vmem:[#allocation2] sm:$0xff]  ;;  %v5191_v5 = vld [vmem:[#allocation50_spill] sm:$0xff] }
 0x30b   :  { %v1142_v32 = vadd.f32 %v1126_v1, %v1062_v25  ;;  %1437 = vrot.lane.b32.xlu1 %v1390_v58, %s2528_s1  ;;  %1173 = vst.msk [vmem:[#allocation2 + $0x49] sm:$0xff] %vm366_vm4, %v4248_v40  ;;  %1499 = vrot.lane.b32.xlu0 %v1389_v22, %s2530_s21  ;;  %v1783_v22 = vsel %vm93_vm0, %v4087_v62, %v5191_v5  ;;  %v2177_v20 = vadd.f32 0.0001, %v5212_v24  ;;  %v5215_v24 = vld [vmem:[#allocation93_spill] sm:$0xff] }
 0x30c   :  { %v4252_v42 = vmul.f32 0.11111111, %v1236_v61  ;;  %v4255_v38 = vmul.f32 0.11111111, %v1235_v50  ;;  %v1784_v7 = vsel %vm93_vm0, %v4091_v4, %v5192_v46  ;;  %v5194_v4 = vld [vmem:[#allocation60_spill] sm:$0xff] }
 0x30d   :  { %v1158_v8 = vadd.f32 %v1142_v32, %v5131_v59  ;;  %v1414_v37 = vpop.permute.xlu1 %1413  ;;  %v1476_v56 = vpop.permute.xlu0 %1475 }
 0x30e   :  { %v1584_v49 = vld [vmem:[#allocation2 + $0x8] sm:$0xff]  ;;  %v1521_v59 = vsel %vm74_vm3, %v1476_v56, 0.0  ;;  %v1458_v62 = vsel %vm75_vm2, %v1414_v37, 0.0 }
 0x30f   :  { %v1600_v47 = vld [vmem:[#allocation2 + $0xa] sm:$0xff]  ;;  %v1599_v61 = vld [vmem:[#allocation2 + $0x2] sm:$0xff]  ;;  %1174 = vst.msk [vmem:[#allocation2 + $0x51] sm:$0xff] %vm366_vm4, %v1158_v8  ;;  %1501 = vrot.lane.b32.xlu1 %v1390_v58, %s2530_s21  ;;  %v1537_v1 = vadd.f32 %v1521_v59, %v1457_v53  ;;  %1823 = vrot.lane.b32.xlu0 %v1783_v22, %s2528_s1  ;;  %v5196_v59 = vld [vmem:[#allocation62_spill] sm:$0xff] }
 0x310   :  { %v1616_v50 = vadd.f32 %v1600_v47, %v1584_v49  ;;  %v1615_v25 = vadd.f32 %v1599_v61, %v1583_v51  ;;  %v5193_v49 = vld [vmem:[#allocation19_spill] sm:$0xff]  ;;  %v5195_v37 = vld [vmem:[#allocation20_spill] sm:$0xff] }
 0x311   :  { %v1478_v32 = vpop.permute.xlu1 %1477  ;;  %v4281_v47 = vadd.f32 %v1537_v1, %v5193_v49  ;;  %v1024_v51 = vpop.permute.xlu0 %1023  ;;  %v5197_v1 = vld [vmem:[#allocation52_spill] sm:$0xff] }
 0x312   :  { %v1632_v30 = vadd.f32 %v1616_v50, %v1552_v57  ;;  %v1631_v26 = vadd.f32 %v1615_v25, %v1551_v41  ;;  %v1522_v58 = vsel %vm74_vm3, %v1478_v32, 0.0 }
 0x313   :  { %v1538_v56 = vadd.f32 %v1522_v58, %v1458_v62  ;;  %1825 = vrot.lane.b32.xlu1 %v1784_v7, %s2528_s1  ;;  %1569 = vst.msk [vmem:[#allocation2 + $0x19] sm:$0xff] %vm366_vm4, %v4281_v47  ;;  %1887 = vrot.lane.b32.xlu0 %v1783_v22, %s2530_s21 }
 0x314   :  { %v1648_v53 = vmul.f32 0.11111111, %v1632_v30  ;;  %v1647_v57 = vmul.f32 0.11111111, %v1631_v26  ;;  %v1785_v30 = vsel %vm93_vm0, %v4097_v13, %v5197_v1  ;;  %v1063_v26 = vsel %vm75_vm2, %v1024_v51, 0.0 }
 0x315   :  { %v1554_v61 = vadd.f32 %v1538_v56, %v5195_v37  ;;  %v1026_v50 = vpop.permute.xlu1 %1025  ;;  %v1088_v58 = vpop.permute.xlu0 %1087 }
 0x316   :  { %v1664_v41 = vsub.f32 %v1648_v53, %v5194_v4  ;;  %v1663_v25 = vsub.f32 %v1647_v57, %v5196_v59  ;;  %v1190_v32 = vld [vmem:[#allocation2 + $0x50] sm:$0xff]  ;;  %v1189_v53 = vld [vmem:[#allocation2 + $0x48] sm:$0xff]  ;;  %v1127_v57 = vsel %vm74_vm3, %v1088_v58, 0.0  ;;  %v5198_v4 = vld [vmem:[#allocation63_spill] sm:$0xff]  ;;  %v1064_v12 = vsel %vm75_vm2, %v1026_v50, 0.0 }
 0x317   :  { %v1205_v62 = vld [vmem:[#allocation2 + $0x4a] sm:$0xff]  ;;  %v1206_v49 = vld [vmem:[#allocation2 + $0x52] sm:$0xff]  ;;  %1570 = vst.msk [vmem:[#allocation2 + $0x21] sm:$0xff] %vm366_vm4, %v1554_v61  ;;  %1889 = vrot.lane.b32.xlu1 %v1784_v7, %s2530_s21  ;;  %v2176_v51 = vadd.f32 0.0001, %v5198_v4  ;;  %v1143_v37 = vadd.f32 %v1127_v57, %v1063_v26  ;;  %1827 = vrot.lane.b32.xlu0 %v1785_v30, %s2528_s1 }
 0x318   :  { %v2192_v22 = vadd.f32 %v1664_v41, %v1264_v21  ;;  %v1222_v56 = vadd.f32 %v1206_v49, %v1190_v32  ;;  %v2191_v13 = vadd.f32 %v1663_v25, %v1263_v6  ;;  %v1221_v21 = vadd.f32 %v1205_v62, %v1189_v53  ;;  %v5200_v41 = vld [vmem:[#allocation53_spill] sm:$0xff] }
 0x319   :  { %v1786_v59 = vsel %vm93_vm0, %v4102_v23, %v5200_v41  ;;  %v1090_v58 = vpop.permute.xlu1 %1089  ;;  %v4316_v6 = vadd.f32 %v1143_v37, %v5201_v55  ;;  %v1416_v26 = vpop.permute.xlu0 %1415 }
 0x31a   :  { %v2208_v32 = vadd.f32 0.0009, %v2192_v22  ;;  %v1238_v49 = vadd.f32 %v1222_v56, %v1158_v8  ;;  %v2207_v7 = vadd.f32 0.0009, %v2191_v13  ;;  %v1128_v25 = vsel %vm74_vm3, %v1090_v58, 0.0  ;;  %v5202_v22 = vld [vmem:[#allocation59_spill] sm:$0xff] }
 0x31b   :  { %v1237_v62 = vadd.f32 %v1221_v21, %v4248_v40  ;;  %v1144_v23 = vadd.f32 %v1128_v25, %v1064_v12  ;;  %1829 = vrot.lane.b32.xlu1 %v1786_v59, %s2528_s1  ;;  %1175 = vst.msk [vmem:[#allocation2 + $0x61] sm:$0xff] %vm366_vm4, %v4316_v6  ;;  %1891 = vrot.lane.b32.xlu0 %v1785_v30, %s2530_s21  ;;  %v1585_v4 = vld [vmem:[#allocation2 + $0x18] sm:$0xff]  ;;  %v5204_v30 = vld [vmem:[#allocation16_spill] sm:$0xff] }
 0x31c   :  { %v4321_v53 = vmul.f32 %v2208_v32, %v2176_v51  ;;  %v4323_v57 = vmul.f32 0.11111111, %v1238_v49  ;;  %v4329_v8 = vmul.f32 %v2207_v7, %v2175_v27  ;;  %v5203_v51 = vld [vmem:[#allocation54_spill] sm:$0xff]  ;;  %v1459_v7 = vsel %vm75_vm2, %v1416_v26, 0.0 }
 0x31d   :  { %v4331_v50 = vmul.f32 0.11111111, %v1237_v62  ;;  %v1160_v40 = vadd.f32 %v1144_v23, %v5145_v3  ;;  %v1418_v13 = vpop.permute.xlu1 %1417  ;;  %v1787_v37 = vsel %vm93_vm0, %v4105_v33, %v5203_v51  ;;  %v1480_v32 = vpop.permute.xlu0 %1479  ;;  %v5205_v23 = vld [vmem:[#allocation55_spill] sm:$0xff] }
 0x31e   :  { %v1270_v56 = vsub.f32 %v4323_v57, %v5202_v22  ;;  %v1586_v15 = vld [vmem:[#allocation2 + $0x20] sm:$0xff]  ;;  %v1523_v3 = vsel %vm74_vm3, %v1480_v32, 0.0  ;;  %v1460_v26 = vsel %vm75_vm2, %v1418_v13, 0.0  ;;  %2404 = vrcp.f32 %v4321_v53 }
 0x31f   :  { %v1602_v21 = vld [vmem:[#allocation2 + $0x22] sm:$0xff]  ;;  %v1601_v49 = vld [vmem:[#allocation2 + $0x1a] sm:$0xff]  ;;  %1176 = vst.msk [vmem:[#allocation2 + $0x69] sm:$0xff] %vm366_vm4, %v1160_v40  ;;  %1893 = vrot.lane.b32.xlu1 %v1786_v59, %s2530_s21  ;;  %v1539_v33 = vadd.f32 %v1523_v3, %v1459_v7  ;;  %1831 = vrot.lane.b32.xlu0 %v1787_v37, %s2528_s1  ;;  %v5208_v7 = vld [vmem:[#allocation13_spill] sm:$0xff]  ;;  %2406 = vrcp.f32 %v4329_v8 }
 0x320   :  { %v1618_v58 = vadd.f32 %v1602_v21, %v1586_v15  ;;  %v1617_v12 = vadd.f32 %v1601_v49, %v1585_v4  ;;  %v1788_v15 = vsel %vm93_vm0, %v4111_v9, %v5205_v23  ;;  %v5206_v21 = vld [vmem:[#allocation23_spill] sm:$0xff]  ;;  %v5207_v9 = vld [vmem:[#allocation66_spill] sm:$0xff]  ;;  %v5230_v57 = vld [vmem:[#allocation92_spill] sm:$0xff] }
 0x321   :  { %v1482_v25 = vpop.permute.xlu1 %1481  ;;  %v4355_v27 = vadd.f32 %v1539_v33, %v5206_v21  ;;  %v1028_v4 = vpop.permute.xlu0 %1027  ;;  %v2181_v22 = vadd.f32 0.0001, %v5230_v57 }
 0x322   :  { %v1634_v55 = vadd.f32 %v1618_v58, %v1554_v61  ;;  %v1633_v62 = vadd.f32 %v1617_v12, %v4281_v47  ;;  %v1524_v59 = vsel %vm74_vm3, %v1482_v25, 0.0  ;;  %v5209_v12 = vld [vmem:[#allocation56_spill] sm:$0xff] }
 0x323   :  { %v1540_v49 = vadd.f32 %v1524_v59, %v1460_v26  ;;  %1833 = vrot.lane.b32.xlu1 %v1788_v15, %s2528_s1  ;;  %1571 = vst.msk [vmem:[#allocation2 + $0x31] sm:$0xff] %vm366_vm4, %v4355_v27  ;;  %1895 = vrot.lane.b32.xlu0 %v1787_v37, %s2530_s21  ;;  %v1789_v33 = vsel %vm93_vm0, %v4117_v10, %v5209_v12  ;;  %v1191_v59 = vld [vmem:[#allocation2 + $0x60] sm:$0xff] }
 0x324   :  { %v1650_v32 = vmul.f32 0.11111111, %v1634_v55  ;;  %v1649_v61 = vmul.f32 0.11111111, %v1633_v62  ;;  %v1065_v62 = vsel %vm75_vm2, %v1028_v4, 0.0  ;;  %v5210_v10 = vsub.f32 %v4223_v60, %v3515_v34 }
 0x325   :  { %v1556_v13 = vadd.f32 %v1540_v49, %v5157_v63  ;;  %v1030_v58 = vpop.permute.xlu1 %1029  ;;  %v1092_v21 = vpop.permute.xlu0 %1091 }
 0x326   :  { %v1666_v47 = vsub.f32 %v1650_v32, %v5207_v9  ;;  %v1665_v3 = vsub.f32 %v1649_v61, %v5208_v7  ;;  %v1192_v55 = vld [vmem:[#allocation2 + $0x68] sm:$0xff]  ;;  %v1129_v32 = vsel %vm74_vm3, %v1092_v21, 0.0  ;;  %v1066_v34 = vsel %vm75_vm2, %v1030_v58, 0.0  ;;  %v5214_v58 = vld [vmem:[#allocation75_spill] sm:$0xff] }
 0x327   :  { %v1207_v25 = vld [vmem:[#allocation2 + $0x62] sm:$0xff]  ;;  %v1208_v26 = vld [vmem:[#allocation2 + $0x6a] sm:$0xff]  ;;  %1572 = vst.msk [vmem:[#allocation2 + $0x39] sm:$0xff] %vm366_vm4, %v1556_v13  ;;  %1897 = vrot.lane.b32.xlu1 %v1788_v15, %s2530_s21  ;;  %v1145_v9 = vadd.f32 %v1129_v32, %v1065_v62  ;;  %1835 = vrot.lane.b32.xlu0 %v1789_v33, %s2528_s1 }
 0x328   :  { %v2194_v37 = vadd.f32 %v1666_v47, %v1266_v45  ;;  %v1224_v63 = vadd.f32 %v1208_v26, %v1192_v55  ;;  %v2193_v49 = vadd.f32 %v1665_v3, %v5210_v10  ;;  %v5211_v61 = vld [vmem:[#allocation68_spill] sm:$0xff]  ;;  %v1223_v45 = vadd.f32 %v1207_v25, %v1191_v59  ;;  %v5213_v47 = vld [vmem:[#allocation57_spill] sm:$0xff] }
 0x329   :  { %v2178_v4 = vadd.f32 0.0001, %v5211_v61  ;;  %v1790_v7 = vsel %vm93_vm0, %v4122_v2, %v5213_v47  ;;  %v1094_v21 = vpop.permute.xlu1 %1093  ;;  %v4390_v60 = vadd.f32 %v1145_v9, %v5158_v17  ;;  %v1420_v62 = vpop.permute.xlu0 %1419 }
 0x32a   :  { %v2210_v55 = vadd.f32 0.0009, %v2194_v37  ;;  %v1240_v26 = vadd.f32 %v1224_v63, %v1160_v40  ;;  %v2209_v15 = vadd.f32 0.0009, %v2193_v49  ;;  %v1130_v3 = vsel %vm74_vm3, %v1094_v21, 0.0  ;;  %v1587_v10 = vld [vmem:[#allocation2 + $0x30] sm:$0xff] }
 0x32b   :  { %v1239_v25 = vadd.f32 %v1223_v45, %v4316_v6  ;;  %v1146_v2 = vadd.f32 %v1130_v3, %v1066_v34  ;;  %1837 = vrot.lane.b32.xlu1 %v1790_v7, %s2528_s1  ;;  %1177 = vst.msk [vmem:[#allocation2 + $0x79] sm:$0xff] %vm366_vm4, %v4390_v60  ;;  %1899 = vrot.lane.b32.xlu0 %v1789_v33, %s2530_s21  ;;  %v1461_v33 = vsel %vm75_vm2, %v1420_v62, 0.0 }
 0x32c   :  { %v4395_v59 = vmul.f32 %v2210_v55, %v2178_v4  ;;  %v4397_v32 = vmul.f32 0.11111111, %v1240_v26  ;;  %v4403_v17 = vmul.f32 %v2209_v15, %v2177_v20 }
 0x32d   :  { %v4405_v40 = vmul.f32 0.11111111, %v1239_v25  ;;  %v1162_v6 = vadd.f32 %v1146_v2, %v5159_v35  ;;  %v1422_v63 = vpop.permute.xlu1 %1421  ;;  %v1484_v4 = vpop.permute.xlu0 %1483 }
 0x32e   :  { %v1588_v49 = vld [vmem:[#allocation2 + $0x38] sm:$0xff]  ;;  %v1525_v20 = vsel %vm74_vm3, %v1484_v4, 0.0  ;;  %v1462_v3 = vsel %vm75_vm2, %v1422_v63, 0.0  ;;  %v5238_v53 = vsub.f32 %v4397_v32, %v5214_v58  ;;  %2408 = vrcp.f32 %v4395_v59 }
 0x32f   :  { %v1604_v61 = vld [vmem:[#allocation2 + $0x3a] sm:$0xff]  ;;  %v1603_v9 = vld [vmem:[#allocation2 + $0x32] sm:$0xff]  ;;  %1178 = vst.msk [vmem:[#allocation2 + $0x81] sm:$0xff] %vm366_vm4, %v1162_v6  ;;  %1901 = vrot.lane.b32.xlu1 %v1790_v7, %s2530_s21  ;;  %v1541_v26 = vadd.f32 %v1525_v20, %v1461_v33  ;;  %v5216_v7 = vld [vmem:[#allocation69_spill] sm:$0xff]  ;;  %2410 = vrcp.f32 %v4403_v17 }
 0x330   :  { %v1620_v55 = vadd.f32 %v1604_v61, %v1588_v49  ;;  %v1619_v35 = vadd.f32 %v1603_v9, %v1587_v10 }
 0x331   :  { %v1486_v15 = vpop.permute.xlu1 %1485  ;;  %v1557_v25 = vadd.f32 %v1541_v26, %v5160_v14  ;;  %v1032_v62 = vpop.permute.xlu0 %1031 }
 0x332   :  { %v1636_v21 = vadd.f32 %v1620_v55, %v1556_v13  ;;  %v1635_v34 = vadd.f32 %v1619_v35, %v4355_v27  ;;  %v1526_v2 = vsel %vm74_vm3, %v1486_v15, 0.0  ;;  %v5217_v13 = vld [vmem:[#allocation28_spill] sm:$0xff]  ;;  %v1067_v14 = vsel %vm75_vm2, %v1032_v62, 0.0 }
 0x333   :  { %v1542_v61 = vadd.f32 %v1526_v2, %v1462_v3  ;;  %1573 = vst.msk [vmem:[#allocation2 + $0x49] sm:$0xff] %vm366_vm4, %v1557_v25  ;;  %v5218_v27 = vld [vmem:[#allocation36_spill] sm:$0xff]  ;;  %v1193_v2 = vld [vmem:[#allocation2 + $0x78] sm:$0xff] }
 0x334   :  { %v1652_v49 = vmul.f32 0.11111111, %v1636_v21  ;;  %v1651_v4 = vmul.f32 0.11111111, %v1635_v34  ;;  %v5219_v21 = vsub.f32 %v4252_v42, %v3519_v31  ;;  %v5222_v31 = vld [vmem:[#allocation18_spill] sm:$0xff] }
 0x335   :  { %v1558_v9 = vadd.f32 %v1542_v61, %v5217_v13  ;;  %v1034_v55 = vpop.permute.xlu1 %1033  ;;  %v1096_v26 = vpop.permute.xlu0 %1095  ;;  %v2179_v42 = vadd.f32 0.0001, %v5222_v31 }
 0x336   :  { %v1668_v10 = vsub.f32 %v1652_v49, %v5216_v7  ;;  %v1667_v33 = vsub.f32 %v1651_v4, %v5218_v27  ;;  %v1194_v20 = vld [vmem:[#allocation2 + $0x80] sm:$0xff]  ;;  %v1131_v3 = vsel %vm74_vm3, %v1096_v26, 0.0  ;;  %v5220_v49 = vsub.f32 %v4255_v38, %v5190_v28 }
 0x337   :  { %v1209_v63 = vld [vmem:[#allocation2 + $0x7a] sm:$0xff]  ;;  %v1210_v35 = vld [vmem:[#allocation2 + $0x82] sm:$0xff]  ;;  %1574 = vst.msk [vmem:[#allocation2 + $0x51] sm:$0xff] %vm366_vm4, %v1558_v9  ;;  %v1147_v13 = vadd.f32 %v1131_v3, %v1067_v14 }
 0x338   :  { %v2196_v15 = vadd.f32 %v1668_v10, %v5219_v21  ;;  %v1226_v34 = vadd.f32 %v1210_v35, %v1194_v20  ;;  %v2195_v61 = vadd.f32 %v1667_v33, %v5220_v49  ;;  %v5221_v4 = vld [vmem:[#allocation71_spill] sm:$0xff]  ;;  %v1225_v62 = vadd.f32 %v1209_v63, %v1193_v2  ;;  %v5223_v35 = vld [vmem:[#allocation29_spill] sm:$0xff] }
 0x339   :  { %v2180_v7 = vadd.f32 0.0001, %v5221_v4  ;;  %v1098_v37 = vpop.permute.xlu1 %1097  ;;  %v1068_v20 = vsel %vm75_vm2, %v1034_v55, 0.0  ;;  %v4444_v26 = vadd.f32 %v1147_v13, %v5223_v35  ;;  %v1424_v28 = vpop.permute.xlu0 %1423  ;;  %v5225_v4 = vld [vmem:[#allocation94_spill] sm:$0xff] }
 0x33a   :  { %v2212_v27 = vadd.f32 0.0009, %v2196_v15  ;;  %v1242_v45 = vadd.f32 %v1226_v34, %v1162_v6  ;;  %v2211_v10 = vadd.f32 0.0009, %v2195_v61  ;;  %v1132_v38 = vsel %vm74_vm3, %v1098_v37, 0.0  ;;  %v5224_v15 = vld [vmem:[#allocation79_spill] sm:$0xff] }
 0x33b   :  { %v1241_v33 = vadd.f32 %v1225_v62, %v4390_v60  ;;  %v1148_v6 = vadd.f32 %v1132_v38, %v1068_v20  ;;  %1179 = vst.msk [vmem:[#allocation2 + $0x91] sm:$0xff] %vm366_vm4, %v4444_v26  ;;  %v1589_v2 = vld [vmem:[#allocation2 + $0x48] sm:$0xff]  ;;  %v1463_v62 = vsel %vm75_vm2, %v1424_v28, 0.0 }
 0x33c   :  { %v4449_v14 = vmul.f32 %v2212_v27, %v2180_v7  ;;  %v4451_v63 = vmul.f32 0.11111111, %v1242_v45  ;;  %v4455_v21 = vmul.f32 %v2211_v10, %v2179_v42 }
 0x33d   :  { %v4457_v55 = vmul.f32 0.11111111, %v1241_v33  ;;  %v1164_v37 = vadd.f32 %v1148_v6, %v5163_v52  ;;  %v1426_v3 = vpop.permute.xlu1 %1425  ;;  %v1488_v61 = vpop.permute.xlu0 %1487 }
 0x33e   :  { %v1590_v60 = vld [vmem:[#allocation2 + $0x50] sm:$0xff]  ;;  %v1527_v27 = vsel %vm74_vm3, %v1488_v61, 0.0  ;;  %v1464_v35 = vsel %vm75_vm2, %v1426_v3, 0.0  ;;  %v5226_v61 = vld [vmem:[#allocation72_spill] sm:$0xff]  ;;  %2412 = vrcp.f32 %v4449_v14 }
 0x33f   :  { %v1606_v49 = vld [vmem:[#allocation2 + $0x52] sm:$0xff]  ;;  %v1605_v45 = vld [vmem:[#allocation2 + $0x4a] sm:$0xff]  ;;  %1180 = vst.msk [vmem:[#allocation2 + $0x99] sm:$0xff] %vm366_vm4, %v1164_v37  ;;  %v1543_v52 = vadd.f32 %v1527_v27, %v1463_v62  ;;  %2414 = vrcp.f32 %v4455_v21 }
 0x340   :  { %v1622_v13 = vadd.f32 %v1606_v49, %v1590_v60  ;;  %v1621_v31 = vadd.f32 %v1605_v45, %v1589_v2 }
 0x341   :  { %v1490_v10 = vpop.permute.xlu1 %1489  ;;  %v1559_v38 = vadd.f32 %v1543_v52, %v5164_v18  ;;  %v1808_v6 = vpop.permute.xlu0 %1807 }
 0x342   :  { %v1638_v42 = vadd.f32 %v1622_v13, %v1558_v9  ;;  %v1637_v20 = vadd.f32 %v1621_v31, %v1557_v25  ;;  %v1528_v33 = vsel %vm74_vm3, %v1490_v10, 0.0  ;;  %v5227_v25 = vld [vmem:[#allocation86_spill] sm:$0xff]  ;;  %v1855_v18 = vsel %vm75_vm2, %v1808_v6, 0.0 }
 0x343   :  { %v1544_v49 = vadd.f32 %v1528_v33, %v1464_v35  ;;  %1575 = vst.msk [vmem:[#allocation2 + $0x61] sm:$0xff] %vm366_vm4, %v1559_v38  ;;  %v1195_v10 = vld [vmem:[#allocation2 + $0x90] sm:$0xff] }
 0x344   :  { %v1654_v60 = vmul.f32 0.11111111, %v1638_v42  ;;  %v1653_v28 = vmul.f32 0.11111111, %v1637_v20  ;;  %v5228_v20 = vsub.f32 %v4331_v50, %v5204_v30  ;;  %v5229_v33 = vld [vmem:[#allocation74_spill] sm:$0xff] }
 0x345   :  { %v1560_v9 = vadd.f32 %v1544_v49, %v5165_v29  ;;  %v1810_v45 = vpop.permute.xlu1 %1809  ;;  %v1872_v31 = vpop.permute.xlu0 %1871 }
 0x346   :  { %v1670_v2 = vsub.f32 %v1654_v60, %v5226_v61  ;;  %v1669_v13 = vsub.f32 %v1653_v28, %v5227_v25  ;;  %v1196_v62 = vld [vmem:[#allocation2 + $0x98] sm:$0xff]  ;;  %v1919_v29 = vsel %vm74_vm3, %v1872_v31, 0.0  ;;  %v2182_v60 = vadd.f32 0.0001, %v5229_v33 }
 0x347   :  { %v1211_v3 = vld [vmem:[#allocation2 + $0x92] sm:$0xff]  ;;  %v1212_v27 = vld [vmem:[#allocation2 + $0x9a] sm:$0xff]  ;;  %1576 = vst.msk [vmem:[#allocation2 + $0x69] sm:$0xff] %vm366_vm4, %v1560_v9  ;;  %v1935_v49 = vadd.f32 %v1919_v29, %v1855_v18 }
 0x348   :  { %v2198_v52 = vadd.f32 %v1670_v2, %v1270_v56  ;;  %v1228_v42 = vadd.f32 %v1212_v27, %v1196_v62  ;;  %v2197_v35 = vadd.f32 %v1669_v13, %v5228_v20  ;;  %v1227_v6 = vadd.f32 %v1211_v3, %v1195_v10 }
 0x349   :  { %v1874_v25 = vpop.permute.xlu1 %1873  ;;  %v1856_v2 = vsel %vm75_vm2, %v1810_v45, 0.0  ;;  %v1951_v62 = vadd.f32 %v1935_v49, %v5166_v39  ;;  %v1812_v50 = vpop.permute.xlu0 %1811  ;;  %v5231_v45 = vld [vmem:[#allocation15_spill] sm:$0xff] }
 0x34a   :  { %v2214_v28 = vadd.f32 0.0009, %v2198_v52  ;;  %v1244_v61 = vadd.f32 %v1228_v42, %v1164_v37  ;;  %v2213_v56 = vadd.f32 0.0009, %v2197_v35  ;;  %v1920_v27 = vsel %vm74_vm3, %v1874_v25, 0.0  ;;  %v1591_v52 = vld [vmem:[#allocation2 + $0x60] sm:$0xff] }
 0x34b   :  { %v1243_v30 = vadd.f32 %v1227_v6, %v4444_v26  ;;  %v1936_v37 = vadd.f32 %v1920_v27, %v1856_v2  ;;  %1967 = vst.msk [vmem:[#allocation2 + $0x1] sm:$0xff] %vm366_vm4, %v1951_v62  ;;  %v5232_v42 = vld [vmem:[#allocation34_spill] sm:$0xff] }
 0x34c   :  { %v4497_v13 = vmul.f32 %v2214_v28, %v2182_v60  ;;  %v4499_v3 = vmul.f32 0.11111111, %v1244_v61  ;;  %v4502_v18 = vmul.f32 %v2213_v56, %v2181_v22  ;;  %v5233_v60 = vld [vmem:[#allocation95_spill] sm:$0xff]  ;;  %v1857_v28 = vsel %vm75_vm2, %v1812_v50, 0.0 }
 0x34d   :  { %v4504_v31 = vmul.f32 0.11111111, %v1243_v30  ;;  %v1952_v29 = vadd.f32 %v1936_v37, %v5232_v42  ;;  %v1814_v10 = vpop.permute.xlu1 %1813  ;;  %v1876_v33 = vpop.permute.xlu0 %1875  ;;  %v5234_v30 = vld [vmem:[#allocation35_spill] sm:$0xff] }
 0x34e   :  { %v1592_v20 = vld [vmem:[#allocation2 + $0x68] sm:$0xff]  ;;  %v1921_v61 = vsel %vm74_vm3, %v1876_v33, 0.0  ;;  %v1858_v27 = vsel %vm75_vm2, %v1814_v10, 0.0  ;;  %2416 = vrcp.f32 %v4502_v18 }
 0x34f   :  { %v1607_v26 = vld [vmem:[#allocation2 + $0x62] sm:$0xff]  ;;  %v1608_v35 = vld [vmem:[#allocation2 + $0x6a] sm:$0xff]  ;;  %1968 = vst.msk [vmem:[#allocation2 + $0x9] sm:$0xff] %vm366_vm4, %v1952_v29  ;;  %v1937_v57 = vadd.f32 %v1921_v61, %v1857_v28  ;;  %2418 = vrcp.f32 %v4497_v13 }
 0x350   :  { %v1624_v6 = vadd.f32 %v1608_v35, %v1592_v20  ;;  %v1623_v25 = vadd.f32 %v1607_v26, %v1591_v52  ;;  %v5236_v26 = vld [vmem:[#allocation37_spill] sm:$0xff] }
 0x351   :  { %v1878_v56 = vpop.permute.xlu1 %1877  ;;  %v4519_v37 = vadd.f32 %v1937_v57, %v5234_v30  ;;  %v1036_v20 = vpop.permute.xlu0 %1035 }
 0x352   :  { %v1640_v22 = vadd.f32 %v1624_v6, %v1560_v9  ;;  %v1639_v2 = vadd.f32 %v1623_v25, %v1559_v38  ;;  %v1922_v42 = vsel %vm74_vm3, %v1878_v56, 0.0  ;;  %v5235_v9 = vld [vmem:[#allocation76_spill] sm:$0xff]  ;;  %v5237_v6 = vld [vmem:[#allocation97_spill] sm:$0xff] }
 0x353   :  { %v1938_v50 = vadd.f32 %v1922_v42, %v1858_v27  ;;  %1969 = vst.msk [vmem:[#allocation2 + $0x19] sm:$0xff] %vm366_vm4, %v4519_v37  ;;  %v1983_v52 = vld [vmem:[#allocation2] sm:$0xff]  ;;  %v5239_v42 = vld [vmem:[#allocation61_spill] sm:$0xff] }
 0x354   :  { %v1656_v35 = vmul.f32 0.11111111, %v1640_v22  ;;  %v1655_v49 = vmul.f32 0.11111111, %v1639_v2  ;;  %v1069_v22 = vsel %vm75_vm2, %v1036_v20, 0.0  ;;  %v5241_v20 = vsub.f32 %v4405_v40, %v5215_v24 }
 0x355   :  { %v1954_v10 = vadd.f32 %v1938_v50, %v5236_v26  ;;  %v1038_v33 = vpop.permute.xlu1 %1037  ;;  %v1100_v56 = vpop.permute.xlu0 %1099  ;;  %v5240_v50 = vld [vmem:[#allocation12_spill] sm:$0xff] }
 0x356   :  { %v1672_v38 = vsub.f32 %v1656_v35, %v5235_v9  ;;  %v1671_v28 = vsub.f32 %v1655_v49, %v5237_v6  ;;  %v1984_v61 = vld [vmem:[#allocation2 + $0x8] sm:$0xff]  ;;  %v1133_v49 = vsel %vm74_vm3, %v1100_v56, 0.0  ;;  %v2080_v35 = vmul.f32 2.0, %v5239_v42 }
 0x357   :  { %v1999_v25 = vld [vmem:[#allocation2 + $0x2] sm:$0xff]  ;;  %v2000_v57 = vld [vmem:[#allocation2 + $0xa] sm:$0xff]  ;;  %1970 = vst.msk [vmem:[#allocation2 + $0x21] sm:$0xff] %vm366_vm4, %v1954_v10  ;;  %v2184_v9 = vadd.f32 0.0001, %v5240_v50  ;;  %v1149_v8 = vadd.f32 %v1133_v49, %v1069_v22  ;;  %v5245_v50 = vld [vmem:[#allocation39_spill] sm:$0xff] }
 0x358   :  { %v2200_v2 = vadd.f32 %v1672_v38, %v5238_v53  ;;  %v2015_v27 = vadd.f32 %v1999_v25, %v1983_v52  ;;  %v2016_v30 = vadd.f32 %v2000_v57, %v1984_v61  ;;  %v2199_v26 = vadd.f32 %v1671_v28, %v5241_v20  ;;  %v5242_v38 = vld [vmem:[#allocation104_spill] sm:$0xff]  ;;  %v5243_v25 = vld [vmem:[#allocation38_spill] sm:$0xff] }
 0x359   :  { %v1102_v58 = vpop.permute.xlu1 %1101  ;;  %v2183_v52 = vadd.f32 0.0001, %v5242_v38  ;;  %v1070_v61 = vsel %vm75_vm2, %v1038_v33, 0.0  ;;  %v4547_v57 = vadd.f32 %v1149_v8, %v5243_v25  ;;  %v1428_v22 = vpop.permute.xlu0 %1427  ;;  %v2096_v8 = vadd.f32 0.0001, %v2080_v35 }
 0x35a   :  { %v2216_v6 = vadd.f32 0.0009, %v2200_v2  ;;  %v2031_v39 = vadd.f32 %v2015_v27, %v1951_v62  ;;  %v2032_v32 = vadd.f32 %v2016_v30, %v1952_v29  ;;  %v1134_v56 = vsel %vm74_vm3, %v1102_v58, 0.0  ;;  %v5244_v29 = vld [vmem:[#allocation64_spill] sm:$0xff]  ;;  %v1985_v30 = vld [vmem:[#allocation2 + $0x18] sm:$0xff] }
 0x35b   :  { %v2215_v53 = vadd.f32 0.0009, %v2199_v26  ;;  %v1150_v62 = vadd.f32 %v1134_v56, %v1070_v61  ;;  %v2079_v28 = vmul.f32 2.0, %v5244_v29  ;;  %1181 = vst.msk [vmem:[#allocation2 + $0xa9] sm:$0xff] %vm366_vm4, %v4547_v57  ;;  %v1465_v56 = vsel %vm75_vm2, %v1428_v22, 0.0 }
 0x35c   :  { %v4551_v49 = vmul.f32 %v2216_v6, %v2184_v9  ;;  %v2047_v40 = vmul.f32 0.11111111, %v2031_v39  ;;  %v2048_v24 = vmul.f32 0.11111111, %v2032_v32 }
 0x35d   :  { %v4556_v2 = vmul.f32 %v2215_v53, %v2183_v52  ;;  %v4562_v9 = vadd.f32 %v1150_v62, %v5245_v50  ;;  %v1430_v39 = vpop.permute.xlu1 %1429  ;;  %v1492_v32 = vpop.permute.xlu0 %1491  ;;  %v2095_v25 = vadd.f32 0.0001, %v2079_v28 }
 0x35e   :  { %v2063_v33 = vsub.f32 %v2047_v40, %v5244_v29  ;;  %v2064_v27 = vsub.f32 %v2048_v24, %v5239_v42  ;;  %v1986_v20 = vld [vmem:[#allocation2 + $0x20] sm:$0xff]  ;;  %v1529_v35 = vsel %vm74_vm3, %v1492_v32, 0.0  ;;  %v2405_v29 = vpop.eup %2404  ;;  %2420 = vrcp.f32 %v4551_v49  ;;  %v5274_v49 = vld [vmem:[#allocation101_spill] sm:$0xff] }
 0x35f   :  { %v2001_v26 = vld [vmem:[#allocation2 + $0x1a] sm:$0xff]  ;;  %v2002_v6 = vld [vmem:[#allocation2 + $0x22] sm:$0xff]  ;;  %1182 = vst.msk [vmem:[#allocation2 + $0xb1] sm:$0xff] %vm366_vm4, %v4562_v9  ;;  %v1545_v50 = vadd.f32 %v1529_v35, %v1465_v56  ;;  %2422 = vrcp.f32 %v4556_v2 }
 0x360   :  { %v2111_v58 = vmul.f32 2.0, %v2063_v33  ;;  %v2112_v38 = vmul.f32 2.0, %v2064_v27  ;;  %v2017_v52 = vadd.f32 %v2001_v26, %v1985_v30  ;;  %v2018_v59 = vadd.f32 %v2002_v6, %v1986_v20  ;;  %v5246_v42 = vld [vmem:[#allocation67_spill] sm:$0xff]  ;;  %v5247_v33 = vld [vmem:[#allocation78_spill] sm:$0xff]  ;;  %v2407_v20 = vpop.eup %2406 }
 0x361   :  { %v2082_v61 = vmul.f32 2.0, %v5246_v42  ;;  %v1494_v62 = vpop.permute.xlu1 %1493  ;;  %v2081_v27 = vmul.f32 2.0, %v5247_v33  ;;  %v1466_v30 = vsel %vm75_vm2, %v1430_v39, 0.0  ;;  %v1816_v22 = vpop.permute.xlu0 %1815 }
 0x362   :  { %v2127_v53 = vadd.f32 0.0009, %v2111_v58  ;;  %v2128_v40 = vadd.f32 0.0009, %v2112_v38  ;;  %v2033_v17 = vadd.f32 %v2017_v52, %v4519_v37  ;;  %v2034_v24 = vadd.f32 %v2018_v59, %v1954_v10  ;;  %v5248_v37 = vld [vmem:[#allocation40_spill] sm:$0xff] }
 0x363   :  { %v1530_v28 = vsel %vm74_vm3, %v1494_v62, 0.0  ;;  %v2098_v38 = vadd.f32 0.0001, %v2082_v61  ;;  %v4579_v10 = vadd.f32 %v1545_v50, %v5248_v37  ;;  %v2097_v35 = vadd.f32 0.0001, %v2081_v27 }
 0x364   :  { %v2143_v26 = vmul.f32 %v2127_v53, %v2095_v25  ;;  %v2144_v6 = vmul.f32 %v2128_v40, %v2096_v8  ;;  %v2049_v32 = vmul.f32 0.11111111, %v2033_v17  ;;  %v2050_v58 = vmul.f32 0.11111111, %v2034_v24 }
 0x365   :  { %v1546_v52 = vadd.f32 %v1530_v28, %v1466_v30  ;;  %v1818_v56 = vpop.permute.xlu1 %1817  ;;  %1577 = vst.msk [vmem:[#allocation2 + $0x79] sm:$0xff] %vm366_vm4, %v4579_v10  ;;  %v1859_v8 = vsel %vm75_vm2, %v1816_v22, 0.0  ;;  %v1880_v61 = vpop.permute.xlu0 %1879 }
 0x366   :  { %v2240_v59 = vmul.f32 %v2407_v20, %v2143_v26  ;;  %v2242_v7 = vmul.f32 %v2405_v29, %v2144_v6  ;;  %v2065_v34 = vsub.f32 %v2049_v32, %v5247_v33  ;;  %v2066_v39 = vsub.f32 %v2050_v58, %v5246_v42  ;;  %v1198_v62 = vld [vmem:[#allocation2 + $0xb0] sm:$0xff]  ;;  %v1197_v42 = vld [vmem:[#allocation2 + $0xa8] sm:$0xff] }
 0x367   :  { %v1214_v47 = vld [vmem:[#allocation2 + $0xb2] sm:$0xff]  ;;  %v4584_v25 = vadd.f32 %v1546_v52, %v5173_v43  ;;  %v1213_v53 = vld [vmem:[#allocation2 + $0xaa] sm:$0xff]  ;;  %v1860_v43 = vsel %vm75_vm2, %v1818_v56, 0.0  ;;  %v1923_v27 = vsel %vm74_vm3, %v1880_v61, 0.0 }
 0x368   :  { %v2271_v40 = vsub.f32 1.0, %v2240_v59  ;;  %v2272_v17 = vsub.f32 1.0, %v2242_v7  ;;  %v2113_v24 = vmul.f32 2.0, %v2065_v34  ;;  %v2114_v29 = vmul.f32 2.0, %v2066_v39  ;;  %v2409_v7 = vpop.eup %2408 }
 0x369   :  { %v1230_v33 = vadd.f32 %v1214_v47, %v1198_v62  ;;  %1578 = vst.msk [vmem:[#allocation2 + $0x81] sm:$0xff] %vm366_vm4, %v4584_v25  ;;  %v1229_v30 = vadd.f32 %v1213_v53, %v1197_v42  ;;  %v1882_v26 = vpop.permute.xlu1 %1881  ;;  %v1939_v6 = vadd.f32 %v1923_v27, %v1859_v8  ;;  %v1432_v32 = vpop.permute.xlu0 %1431 }
 0x36a   :  { %v2287_v50 = vmul.f32 0.5, %v2271_v40  ;;  %v2288_v28 = vmul.f32 0.5, %v2272_v17  ;;  %v2129_v22 = vadd.f32 0.0009, %v2113_v24  ;;  %v2130_v20 = vadd.f32 0.0009, %v2114_v29  ;;  %v2411_v37 = vpop.eup %2410 }
 0x36b   :  { %v1246_v34 = vadd.f32 %v1230_v33, %v4562_v9  ;;  %v1924_v47 = vsel %vm74_vm3, %v1882_v26, 0.0  ;;  %v1245_v58 = vadd.f32 %v1229_v30, %v4547_v57  ;;  %v4603_v61 = vadd.f32 %v1939_v6, %v5174_v36  ;;  %v5249_v29 = vld [vmem:[#allocation88_spill] sm:$0xff]  ;;  %v5250_v33 = vld [vmem:[#allocation43_spill] sm:$0xff] }
 0x36c   :  { %v2303_v52 = vmax.f32 %v2287_v50, 0.0  ;;  %v2304_v59 = vmax.f32 %v2288_v28, 0.0  ;;  %v2145_v39 = vmul.f32 %v2129_v22, %v2097_v35  ;;  %v2146_v56 = vmul.f32 %v2130_v20, %v2098_v38  ;;  %v1593_v57 = vld [vmem:[#allocation2 + $0x78] sm:$0xff]  ;;  %v5251_v6 = vld [vmem:[#allocation96_spill] sm:$0xff] }
 0x36d   :  { %v4600_v62 = vmul.f32 0.11111111, %v1246_v34  ;;  %v1940_v53 = vadd.f32 %v1924_v47, %v1860_v43  ;;  %v1434_v24 = vpop.permute.xlu1 %1433  ;;  %1971 = vst.msk [vmem:[#allocation2 + $0x31] sm:$0xff] %vm366_vm4, %v4603_v61  ;;  %v1467_v36 = vsel %vm75_vm2, %v1432_v32, 0.0  ;;  %v1496_v38 = vpop.permute.xlu0 %1495  ;;  %v4614_v35 = vmul.f32 0.11111111, %v1245_v58 }
 0x36e   :  { %v2319_v40 = vmin.f32 %v2303_v52, 1.0  ;;  %v2320_v9 = vmin.f32 %v2304_v59, 1.0  ;;  %v2244_v8 = vmul.f32 %v2411_v37, %v2145_v39  ;;  %v2246_v17 = vmul.f32 %v2409_v7, %v2146_v56 }
 0x36f   :  { %v1278_v42 = vsub.f32 %v4600_v62, %v5249_v29  ;;  %v4608_v27 = vadd.f32 %v1940_v53, %v5250_v33  ;;  %v1531_v34 = vsel %vm74_vm3, %v1496_v38, 0.0  ;;  %v1277_v47 = vsub.f32 %v4614_v35, %v5251_v6  ;;  %v5252_v38 = vld [vmem:[#allocation70_spill] sm:$0xff] }
 0x370   :  { %v2335_v43 = vsel %vm366_vm4, %v2319_v40, 0.0  ;;  %v2336_v30 = vsel %vm366_vm4, %v2320_v9, 0.0  ;;  %v2273_v50 = vsub.f32 1.0, %v2244_v8  ;;  %v2274_v28 = vsub.f32 1.0, %v2246_v17  ;;  %v1594_v22 = vld [vmem:[#allocation2 + $0x80] sm:$0xff] }
 0x371   :  { %v1609_v20 = vld [vmem:[#allocation2 + $0x7a] sm:$0xff]  ;;  %v2337_v26 = vadd.f32 %v2336_v30, %v2335_v43  ;;  %v1610_v7 = vld [vmem:[#allocation2 + $0x82] sm:$0xff]  ;;  %1972 = vst.msk [vmem:[#allocation2 + $0x39] sm:$0xff] %vm366_vm4, %v4608_v27  ;;  %v1547_v59 = vadd.f32 %v1531_v34, %v1467_v36  ;;  %v1498_v39 = vpop.permute.xlu1 %1497  ;;  %v1468_v56 = vsel %vm75_vm2, %v1434_v24, 0.0  ;;  %v1820_v40 = vpop.permute.xlu0 %1819  ;;  %v2084_v43 = vmul.f32 2.0, %v5252_v38  ;;  %v5253_v36 = vld [vmem:[#allocation73_spill] sm:$0xff] }
 0x372   :  { %v1625_v32 = vadd.f32 %v1609_v20, %v1593_v57  ;;  %v2289_v58 = vmul.f32 0.5, %v2273_v50  ;;  %v2290_v37 = vmul.f32 0.5, %v2274_v28  ;;  %v1626_v52 = vadd.f32 %v1610_v7, %v1594_v22  ;;  %v5254_v7 = vld [vmem:[#allocation82_spill] sm:$0xff] }
 0x373   :  { %v1532_v53 = vsel %vm74_vm3, %v1498_v39, 0.0  ;;  %v4631_v57 = vadd.f32 %v1547_v59, %v5176_v48  ;;  %v2086_v30 = vmul.f32 2.0, %v5253_v36 }
 0x374   :  { %v1641_v9 = vadd.f32 %v1625_v32, %v4579_v10  ;;  %v2305_v8 = vmax.f32 %v2289_v58, 0.0  ;;  %v2306_v17 = vmax.f32 %v2290_v37, 0.0  ;;  %v1642_v33 = vadd.f32 %v1626_v52, %v4584_v25  ;;  %v1987_v34 = vld [vmem:[#allocation2 + $0x30] sm:$0xff]  ;;  %v5256_v52 = vld [vmem:[#allocation80_spill] sm:$0xff] }
 0x375   :  { %v1548_v50 = vadd.f32 %v1532_v53, %v1468_v56  ;;  %1579 = vst.msk [vmem:[#allocation2 + $0x91] sm:$0xff] %vm366_vm4, %v4631_v57  ;;  %v1822_v10 = vpop.permute.xlu1 %1821  ;;  %v2186_v25 = vadd.f32 0.0001, %v5254_v7  ;;  %v1884_v32 = vpop.permute.xlu0 %1883  ;;  %v5255_v58 = vld [vmem:[#allocation22_spill] sm:$0xff]  ;;  %v5258_v7 = vld [vmem:[#allocation105_spill] sm:$0xff] }
 0x376   :  { %v1657_v28 = vmul.f32 0.11111111, %v1641_v9  ;;  %v2321_v24 = vmin.f32 %v2305_v8, 1.0  ;;  %v2322_v22 = vmin.f32 %v2306_v17, 1.0  ;;  %v1658_v20 = vmul.f32 0.11111111, %v1642_v33 }
 0x377   :  { %v4641_v48 = vadd.f32 %v1548_v50, %v5177_v11  ;;  %v1861_v9 = vsel %vm75_vm2, %v1820_v40, 0.0  ;;  %v1925_v8 = vsel %vm74_vm3, %v1884_v32, 0.0  ;;  %v5259_v40 = vsub.f32 %v4457_v55, %v5225_v4 }
 0x378   :  { %v1673_v37 = vsub.f32 %v1657_v28, %v5255_v58  ;;  %v2338_v14 = vsel %vm366_vm4, %v2321_v24, 0.0  ;;  %v1674_v59 = vsub.f32 %v1658_v20, %v5256_v52  ;;  %v1988_v39 = vld [vmem:[#allocation2 + $0x38] sm:$0xff]  ;;  %v1941_v33 = vadd.f32 %v1925_v8, %v1861_v9 }
 0x379   :  { %v2003_v56 = vld [vmem:[#allocation2 + $0x32] sm:$0xff]  ;;  %v2004_v53 = vld [vmem:[#allocation2 + $0x3a] sm:$0xff]  ;;  %v2339_v21 = vadd.f32 %v2338_v14, %v2337_v26  ;;  %1580 = vst.msk [vmem:[#allocation2 + $0x99] sm:$0xff] %vm366_vm4, %v4641_v48  ;;  %v2340_v50 = vsel %vm366_vm4, %v2322_v22, 0.0  ;;  %v5257_v28 = vsub.f32 %v4451_v63, %v5224_v15  ;;  %v1886_v20 = vpop.permute.xlu1 %1885  ;;  %v2185_v58 = vadd.f32 0.0001, %v5258_v7  ;;  %v1436_v22 = vpop.permute.xlu0 %1435 }
 0x37a   :  { %v2019_v17 = vadd.f32 %v2003_v56, %v1987_v34  ;;  %v2020_v11 = vadd.f32 %v2004_v53, %v1988_v39  ;;  %v2201_v32 = vadd.f32 %v1673_v37, %v5259_v40  ;;  %v4665_v52 = vadd.f32 %v1941_v33, %v5178_v0  ;;  %v5261_v53 = vld [vmem:[#allocation85_spill] sm:$0xff] }
 0x37b   :  { %v2202_v24 = vadd.f32 %v1674_v59, %v5257_v28  ;;  %v4660_v26 = vadd.f32 %v2340_v50, %v2339_v21  ;;  %v1862_v63 = vsel %vm75_vm2, %v1822_v10, 0.0  ;;  %v1926_v15 = vsel %vm74_vm3, %v1886_v20, 0.0 }
 0x37c   :  { %v2035_v34 = vadd.f32 %v2019_v17, %v4603_v61  ;;  %v2036_v14 = vadd.f32 %v2020_v11, %v4608_v27  ;;  %v2217_v59 = vadd.f32 0.0009, %v2201_v32  ;;  %v2100_v55 = vadd.f32 0.0001, %v2084_v43  ;;  %1973 = vst.msk [vmem:[#allocation2 + $0x49] sm:$0xff] %vm366_vm4, %v4665_v52  ;;  %v5260_v61 = vld [vmem:[#allocation77_spill] sm:$0xff] }
 0x37d   :  { %v2218_v39 = vadd.f32 0.0009, %v2202_v24  ;;  %v1942_v56 = vadd.f32 %v1926_v15, %v1862_v63  ;;  %v2088_v27 = vmul.f32 2.0, %v5260_v61  ;;  %v2083_v9 = vmul.f32 2.0, %v5261_v53  ;;  %v1438_v8 = vpop.permute.xlu1 %1437  ;;  %v1500_v33 = vpop.permute.xlu0 %1499  ;;  %v1595_v40 = vld [vmem:[#allocation2 + $0x90] sm:$0xff] }
 0x37e   :  { %v2051_v4 = vmul.f32 0.11111111, %v2035_v34  ;;  %v2052_v37 = vmul.f32 0.11111111, %v2036_v14  ;;  %v4677_v21 = vmul.f32 %v2217_v59, %v2185_v58  ;;  %v4679_v10 = vadd.f32 0.0001, %v2086_v30  ;;  %v2413_v15 = vpop.eup %2412 }
 0x37f   :  { %v4674_v0 = vmul.f32 %v2218_v39, %v2186_v25  ;;  %v4684_v11 = vadd.f32 %v1942_v56, %v5179_v19  ;;  %v1469_v25 = vsel %vm75_vm2, %v1436_v22, 0.0  ;;  %v1533_v20 = vsel %vm74_vm3, %v1500_v33, 0.0  ;;  %v5262_v34 = vld [vmem:[#allocation87_spill] sm:$0xff] }
 0x380   :  { %v2067_v17 = vsub.f32 %v2051_v4, %v5261_v53  ;;  %v2068_v43 = vsub.f32 %v2052_v37, %v5252_v38  ;;  %v1596_v50 = vld [vmem:[#allocation2 + $0x98] sm:$0xff]  ;;  %v1549_v38 = vadd.f32 %v1533_v20, %v1469_v25  ;;  %v4692_v19 = vadd.f32 0.0001, %v2088_v27  ;;  %v2415_v53 = vpop.eup %2414 }
 0x381   :  { %v1611_v28 = vld [vmem:[#allocation2 + $0x92] sm:$0xff]  ;;  %v1612_v24 = vld [vmem:[#allocation2 + $0x9a] sm:$0xff]  ;;  %1974 = vst.msk [vmem:[#allocation2 + $0x51] sm:$0xff] %vm366_vm4, %v4684_v11  ;;  %v2099_v32 = vadd.f32 0.0001, %v2083_v9  ;;  %v2085_v14 = vmul.f32 2.0, %v5262_v34  ;;  %v1502_v39 = vpop.permute.xlu1 %1501  ;;  %v1824_v56 = vpop.permute.xlu0 %1823  ;;  %2424 = vrcp.f32 %v4674_v0 }
 0x382   :  { %v2115_v7 = vmul.f32 2.0, %v2067_v17  ;;  %v2116_v30 = vmul.f32 2.0, %v2068_v43  ;;  %v1628_v58 = vadd.f32 %v1612_v24, %v1596_v50  ;;  %v1627_v63 = vadd.f32 %v1611_v28, %v1595_v40  ;;  %v5263_v17 = vld [vmem:[#allocation81_spill] sm:$0xff] }
 0x383   :  { %v4697_v37 = vadd.f32 %v1549_v38, %v5180_v44  ;;  %v4700_v43 = vmul.f32 2.0, %v5263_v17  ;;  %v1470_v27 = vsel %vm75_vm2, %v1438_v8, 0.0  ;;  %v1534_v9 = vsel %vm74_vm3, %v1502_v39, 0.0  ;;  %v5264_v44 = vld [vmem:[#allocation17_spill] sm:$0xff]  ;;  %v5265_v38 = vld [vmem:[#allocation83_spill] sm:$0xff] }
 0x384   :  { %v2131_v22 = vadd.f32 0.0009, %v2115_v7  ;;  %v2132_v59 = vadd.f32 0.0009, %v2116_v30  ;;  %v1644_v4 = vadd.f32 %v1628_v58, %v4641_v48  ;;  %v1643_v33 = vadd.f32 %v1627_v63, %v4631_v57  ;;  %v1989_v39 = vld [vmem:[#allocation2 + $0x48] sm:$0xff] }
 0x385   :  { %v1550_v48 = vadd.f32 %v1534_v9, %v1470_v27  ;;  %1581 = vst.msk [vmem:[#allocation2 + $0xa9] sm:$0xff] %vm366_vm4, %v4697_v37  ;;  %v2188_v25 = vadd.f32 0.0001, %v5264_v44  ;;  %v4710_v20 = vadd.f32 0.0001, %v2085_v14  ;;  %v1826_v7 = vpop.permute.xlu1 %1825  ;;  %v5267_v9 = vsub.f32 %v4499_v3, %v5231_v45 }
 0x386   :  { %v2147_v50 = vmul.f32 %v2131_v22, %v2099_v32  ;;  %v2148_v28 = vmul.f32 %v2132_v59, %v2100_v55  ;;  %v1660_v24 = vmul.f32 0.11111111, %v1644_v4  ;;  %v1659_v30 = vmul.f32 0.11111111, %v1643_v33  ;;  %v1888_v32 = vpop.permute.xlu0 %1887  ;;  %v5266_v4 = vld [vmem:[#allocation100_spill] sm:$0xff] }
 0x387   :  { %v1566_v57 = vadd.f32 %v1550_v48, %v5181_v16  ;;  %v1863_v59 = vsel %vm75_vm2, %v1824_v56, 0.0  ;;  %v1927_v14 = vsel %vm74_vm3, %v1888_v32, 0.0  ;;  %v5268_v56 = vsub.f32 %v4504_v31, %v5233_v60 }
 0x388   :  { %v2248_v58 = vmul.f32 %v2415_v53, %v2147_v50  ;;  %v2250_v8 = vmul.f32 %v2413_v15, %v2148_v28  ;;  %v1676_v40 = vsub.f32 %v1660_v24, %v5265_v38  ;;  %v1990_v55 = vld [vmem:[#allocation2 + $0x50] sm:$0xff]  ;;  %v1675_v53 = vsub.f32 %v1659_v30, %v5266_v4 }
 0x389   :  { %v2005_v63 = vld [vmem:[#allocation2 + $0x4a] sm:$0xff]  ;;  %v2006_v22 = vld [vmem:[#allocation2 + $0x52] sm:$0xff]  ;;  %1582 = vst.msk [vmem:[#allocation2 + $0xb1] sm:$0xff] %vm366_vm4, %v1566_v57  ;;  %v1943_v50 = vadd.f32 %v1927_v14, %v1863_v59  ;;  %v1890_v28 = vpop.permute.xlu1 %1889  ;;  %v1864_v45 = vsel %vm75_vm2, %v1826_v7, 0.0  ;;  %2426 = vrcp.f32 %v4677_v21 }
 0x38a   :  { %v2275_v15 = vsub.f32 1.0, %v2248_v58  ;;  %v2276_v27 = vsub.f32 1.0, %v2250_v8  ;;  %v2204_v16 = vadd.f32 %v1676_v40, %v5267_v9  ;;  %v2021_v33 = vadd.f32 %v2005_v63, %v1989_v39  ;;  %v1828_v8 = vpop.permute.xlu0 %1827 }
 0x38b   :  { %v2022_v18 = vadd.f32 %v2006_v22, %v1990_v55  ;;  %v2203_v24 = vadd.f32 %v1675_v53, %v5268_v56  ;;  %v4733_v13 = vadd.f32 %v1943_v50, %v5191_v5  ;;  %v1928_v38 = vsel %vm74_vm3, %v1890_v28, 0.0  ;;  %v5269_v55 = vld [vmem:[#allocation106_spill] sm:$0xff] }
 0x38c   :  { %v2291_v48 = vmul.f32 0.5, %v2275_v15  ;;  %v2292_v44 = vmul.f32 0.5, %v2276_v27  ;;  %v2220_v30 = vadd.f32 0.0009, %v2204_v16  ;;  %v2037_v58 = vadd.f32 %v2021_v33, %v4665_v52  ;;  %v1597_v56 = vld [vmem:[#allocation2 + $0xa8] sm:$0xff] }
 0x38d   :  { %v2038_v3 = vadd.f32 %v2022_v18, %v4684_v11  ;;  %1975 = vst.msk [vmem:[#allocation2 + $0x61] sm:$0xff] %vm366_vm4, %v4733_v13  ;;  %v1944_v52 = vadd.f32 %v1928_v38, %v1864_v45  ;;  %v1865_v11 = vsel %vm75_vm2, %v1828_v8, 0.0  ;;  %v1830_v7 = vpop.permute.xlu1 %1829  ;;  %v2187_v5 = vadd.f32 0.0001, %v5269_v55 }
 0x38e   :  { %v2307_v40 = vmax.f32 %v2291_v48, 0.0  ;;  %v2308_v31 = vmax.f32 %v2292_v44, 0.0  ;;  %v4737_v60 = vmul.f32 %v2220_v30, %v2188_v25  ;;  %v2053_v39 = vmul.f32 0.11111111, %v2037_v58  ;;  %v1892_v14 = vpop.permute.xlu0 %1891 }
 0x38f   :  { %v2054_v32 = vmul.f32 0.11111111, %v2038_v3  ;;  %v2219_v4 = vadd.f32 0.0009, %v2203_v24  ;;  %v4747_v27 = vadd.f32 %v1944_v52, %v5192_v46  ;;  %v1866_v9 = vsel %vm75_vm2, %v1830_v7, 0.0  ;;  %v5270_v7 = vld [vmem:[#allocation91_spill] sm:$0xff] }
 0x390   :  { %v2323_v63 = vmin.f32 %v2307_v40, 1.0  ;;  %v2324_v22 = vmin.f32 %v2308_v31, 1.0  ;;  %v2069_v59 = vsub.f32 %v2053_v39, %v5262_v34  ;;  %v1598_v53 = vld [vmem:[#allocation2 + $0xb0] sm:$0xff]  ;;  %v1929_v16 = vsel %vm74_vm3, %v1892_v14, 0.0  ;;  %v2417_v39 = vpop.eup %2416 }
 0x391   :  { %v2070_v25 = vsub.f32 %v2054_v32, %v5253_v36  ;;  %v1614_v15 = vld [vmem:[#allocation2 + $0xb2] sm:$0xff]  ;;  %v1613_v33 = vld [vmem:[#allocation2 + $0xaa] sm:$0xff]  ;;  %1976 = vst.msk [vmem:[#allocation2 + $0x69] sm:$0xff] %vm366_vm4, %v4747_v27  ;;  %v1945_v46 = vadd.f32 %v1929_v16, %v1865_v11  ;;  %v1894_v48 = vpop.permute.xlu1 %1893  ;;  %v4760_v45 = vmul.f32 %v2219_v4, %v2187_v5  ;;  %v4768_v32 = vadd.f32 0.0001, %v4700_v43  ;;  %v2419_v43 = vpop.eup %2418 }
 0x392   :  { %v2342_v18 = vsel %vm366_vm4, %v2323_v63, 0.0  ;;  %v2344_v34 = vsel %vm366_vm4, %v2324_v22, 0.0  ;;  %v2117_v50 = vmul.f32 2.0, %v2069_v59  ;;  %v1630_v28 = vadd.f32 %v1614_v15, %v1598_v53  ;;  %v1832_v3 = vpop.permute.xlu0 %1831  ;;  %v5271_v22 = vld [vmem:[#allocation98_spill] sm:$0xff]  ;;  %v5273_v53 = vld [vmem:[#allocation107_spill] sm:$0xff] }
 0x393   :  { %v2343_v36 = vadd.f32 %v2342_v18, %v4660_v26  ;;  %v2118_v24 = vmul.f32 2.0, %v2070_v25  ;;  %v1629_v44 = vadd.f32 %v1613_v33, %v1597_v56  ;;  %v1930_v8 = vsel %vm74_vm3, %v1894_v48, 0.0 }
 0x394   :  { %v2133_v30 = vadd.f32 0.0009, %v2117_v50  ;;  %v1646_v58 = vadd.f32 %v1630_v28, %v1566_v57  ;;  %v4765_v26 = vadd.f32 %v1945_v46, %v5197_v1  ;;  %v1946_v31 = vadd.f32 %v1930_v8, %v1866_v9  ;;  %v1991_v16 = vld [vmem:[#allocation2 + $0x60] sm:$0xff] }
 0x395   :  { %v4762_v38 = vadd.f32 %v2344_v34, %v2343_v36  ;;  %v2134_v40 = vadd.f32 0.0009, %v2118_v24  ;;  %v1645_v11 = vadd.f32 %v1629_v44, %v4697_v37  ;;  %v2190_v55 = vadd.f32 0.0001, %v5270_v7  ;;  %v1834_v63 = vpop.permute.xlu1 %1833 }
 0x396   :  { %v2149_v52 = vmul.f32 %v2133_v30, %v4710_v20  ;;  %v1662_v57 = vmul.f32 0.11111111, %v1646_v58  ;;  %1977 = vst.msk [vmem:[#allocation2 + $0x79] sm:$0xff] %vm366_vm4, %v4765_v26  ;;  %v4777_v1 = vadd.f32 %v1946_v31, %v5200_v41  ;;  %v4780_v59 = vmul.f32 2.0, %v5271_v22  ;;  %v5272_v20 = vld [vmem:[#allocation89_spill] sm:$0xff]  ;;  %v1896_v25 = vpop.permute.xlu0 %1895 }
 0x397   :  { %v2150_v5 = vmul.f32 %v2134_v40, %v4679_v10  ;;  %v1661_v37 = vmul.f32 0.11111111, %v1645_v11  ;;  %v4784_v15 = vadd.f32 0.0001, %v5273_v53  ;;  %v1867_v41 = vsel %vm75_vm2, %v1832_v3, 0.0 }
 0x398   :  { %v2252_v14 = vmul.f32 %v2417_v39, %v2149_v52  ;;  %v1678_v4 = vsub.f32 %v1662_v57, %v5272_v20  ;;  %1978 = vst.msk [vmem:[#allocation2 + $0x81] sm:$0xff] %vm366_vm4, %v4777_v1  ;;  %v1931_v9 = vsel %vm74_vm3, %v1896_v25, 0.0  ;;  %v1992_v34 = vld [vmem:[#allocation2 + $0x68] sm:$0xff]  ;;  %v1868_v48 = vsel %vm75_vm2, %v1834_v63, 0.0 }
 0x399   :  { %v2254_v10 = vmul.f32 %v2419_v43, %v2150_v5  ;;  %v2008_v50 = vld [vmem:[#allocation2 + $0x6a] sm:$0xff]  ;;  %v1947_v28 = vadd.f32 %v1931_v9, %v1867_v41  ;;  %v1677_v56 = vsub.f32 %v1661_v37, %v5274_v49  ;;  %v2007_v36 = vld [vmem:[#allocation2 + $0x62] sm:$0xff]  ;;  %v1898_v44 = vpop.permute.xlu1 %1897  ;;  %2428 = vrcp.f32 %v4737_v60 }
 0x39a   :  { %v2277_v33 = vsub.f32 1.0, %v2252_v14  ;;  %v2206_v18 = vadd.f32 %v1678_v4, %v1278_v42  ;;  %v2024_v46 = vadd.f32 %v2008_v50, %v1992_v34  ;;  %v2023_v30 = vadd.f32 %v2007_v36, %v1991_v16  ;;  %v1836_v29 = vpop.permute.xlu0 %1835  ;;  %v5275_v36 = vld [vmem:[#allocation99_spill] sm:$0xff] }
 0x39b   :  { %v2278_v24 = vsub.f32 1.0, %v2254_v10  ;;  %v4800_v3 = vadd.f32 %v1947_v28, %v5203_v51  ;;  %v1932_v62 = vsel %vm74_vm3, %v1898_v44, 0.0  ;;  %v2205_v51 = vadd.f32 %v1677_v56, %v1277_v47  ;;  %v2421_v56 = vpop.eup %2420 }
 0x39c   :  { %v2293_v58 = vmul.f32 0.5, %v2277_v33  ;;  %v2222_v8 = vadd.f32 0.0009, %v2206_v18  ;;  %v2040_v40 = vadd.f32 %v2024_v46, %v4747_v27  ;;  %v1948_v31 = vadd.f32 %v1932_v62, %v1868_v48  ;;  %v5276_v48 = vld [vmem:[#allocation57_spill] sm:$0xff] }
 0x39d   :  { %v2294_v42 = vmul.f32 0.5, %v2278_v24  ;;  %1979 = vst.msk [vmem:[#allocation2 + $0x91] sm:$0xff] %vm366_vm4, %v4800_v3  ;;  %v2039_v57 = vadd.f32 %v2023_v30, %v4733_v13  ;;  %v1838_v2 = vpop.permute.xlu1 %1837  ;;  %v1869_v43 = vsel %vm75_vm2, %v1836_v29, 0.0  ;;  %v1993_v20 = vld [vmem:[#allocation2 + $0x78] sm:$0xff]  ;;  %v2221_v46 = vadd.f32 0.0009, %v2205_v51 }
 0x39e   :  { %v2309_v39 = vmax.f32 %v2293_v58, 0.0  ;;  %v4806_v52 = vmul.f32 %v2222_v8, %v2190_v55  ;;  %v2056_v7 = vmul.f32 0.11111111, %v2040_v40  ;;  %v4816_v27 = vadd.f32 %v1948_v31, %v5205_v23  ;;  %v1900_v14 = vpop.permute.xlu0 %1899  ;;  %v5277_v51 = vld [vmem:[#allocation84_spill] sm:$0xff] }
 0x39f   :  { %v2310_v11 = vmax.f32 %v2294_v42, 0.0  ;;  %v1994_v55 = vld [vmem:[#allocation2 + $0x80] sm:$0xff]  ;;  %v1870_v13 = vsel %vm75_vm2, %v1838_v2, 0.0  ;;  %v1933_v23 = vsel %vm74_vm3, %v1900_v14, 0.0  ;;  %v2055_v53 = vmul.f32 0.11111111, %v2039_v57  ;;  %v2423_v57 = vpop.eup %2422 }
 0x3a0   :  { %v2325_v5 = vmin.f32 %v2309_v39, 1.0  ;;  %v2010_v63 = vld [vmem:[#allocation2 + $0x82] sm:$0xff]  ;;  %v2009_v35 = vld [vmem:[#allocation2 + $0x7a] sm:$0xff]  ;;  %v2072_v47 = vsub.f32 %v2056_v7, %v5260_v61  ;;  %1980 = vst.msk [vmem:[#allocation2 + $0x99] sm:$0xff] %vm366_vm4, %v4816_v27  ;;  %v1949_v25 = vadd.f32 %v1933_v23, %v1869_v43  ;;  %v2103_v30 = vadd.f32 0.0001, %v4780_v59 }
 0x3a1   :  { %v2326_v6 = vmin.f32 %v2310_v11, 1.0  ;;  %v2026_v0 = vadd.f32 %v2010_v63, %v1994_v55  ;;  %v2025_v37 = vadd.f32 %v2009_v35, %v1993_v20  ;;  %v1902_v9 = vpop.permute.xlu1 %1901  ;;  %v2071_v34 = vsub.f32 %v2055_v53, %v5271_v22  ;;  %v5278_v63 = vld [vmem:[#allocation102_spill] sm:$0xff] }
 0x3a2   :  { %v2346_v4 = vsel %vm366_vm4, %v2325_v5, 0.0  ;;  %v2120_v41 = vmul.f32 2.0, %v2072_v47  ;;  %v4833_v16 = vadd.f32 %v1949_v25, %v5209_v12  ;;  %v1934_v33 = vsel %vm74_vm3, %v1902_v9, 0.0 }
 0x3a3   :  { %v2347_v10 = vadd.f32 %v2346_v4, %v4762_v38  ;;  %v2348_v21 = vsel %vm366_vm4, %v2326_v6, 0.0  ;;  %v2042_v61 = vadd.f32 %v2026_v0, %v4777_v1  ;;  %v2041_v18 = vadd.f32 %v2025_v37, %v4765_v26 }
 0x3a4   :  { %v2136_v28 = vadd.f32 0.0009, %v2120_v41  ;;  %v1950_v49 = vadd.f32 %v1934_v33, %v1870_v13  ;;  %1981 = vst.msk [vmem:[#allocation2 + $0xa9] sm:$0xff] %vm366_vm4, %v4833_v16  ;;  %v2089_v12 = vmul.f32 2.0, %v5275_v36  ;;  %v2119_v24 = vmul.f32 2.0, %v2071_v34  ;;  %v1995_v44 = vld [vmem:[#allocation2 + $0x90] sm:$0xff] }
 0x3a5   :  { %v4839_v50 = vadd.f32 %v2348_v21, %v2347_v10  ;;  %v2058_v38 = vmul.f32 0.11111111, %v2042_v61  ;;  %v2057_v1 = vmul.f32 0.11111111, %v2041_v18  ;;  %v2237_v40 = vmul.f32 %v2221_v46, %v4784_v15  ;;  %v2425_v15 = vpop.eup %2424 }
 0x3a6   :  { %v2152_v54 = vmul.f32 %v2136_v28, %v4692_v19  ;;  %v1966_v22 = vadd.f32 %v1950_v49, %v5276_v48  ;;  %v2135_v42 = vadd.f32 0.0009, %v2119_v24  ;;  %v2092_v11 = vmul.f32 2.0, %v5277_v51  ;;  %v2427_v6 = vpop.eup %2426 }
 0x3a7   :  { %v2074_v26 = vsub.f32 %v2058_v38, %v5263_v17  ;;  %v1996_v58 = vld [vmem:[#allocation2 + $0x98] sm:$0xff]  ;;  %v2073_v29 = vsub.f32 %v2057_v1, %v5275_v36  ;;  %2430 = vrcp.f32 %v4760_v45  ;;  %v2091_v43 = vmul.f32 2.0, %v5278_v63 }
 0x3a8   :  { %v2012_v8 = vld [vmem:[#allocation2 + $0x9a] sm:$0xff]  ;;  %v2011_v62 = vld [vmem:[#allocation2 + $0x92] sm:$0xff]  ;;  %v2258_v31 = vmul.f32 %v2421_v56, %v2152_v54  ;;  %1982 = vst.msk [vmem:[#allocation2 + $0xb1] sm:$0xff] %vm366_vm4, %v1966_v22  ;;  %v2151_v7 = vmul.f32 %v2135_v42, %v2103_v30  ;;  %v2105_v13 = vadd.f32 0.0001, %v2089_v12  ;;  %2432 = vrcp.f32 %v4806_v52 }
 0x3a9   :  { %v2122_v39 = vmul.f32 2.0, %v2074_v26  ;;  %v2028_v19 = vadd.f32 %v2012_v8, %v1996_v58  ;;  %v2027_v17 = vadd.f32 %v2011_v62, %v1995_v44  ;;  %v2121_v59 = vmul.f32 2.0, %v2073_v29  ;;  %v5279_v45 = vld [vmem:[#allocation90_spill] sm:$0xff]  ;;  %v2429_v58 = vpop.eup %2428  ;;  %v5280_v42 = vld [vmem:[#allocation103_spill] sm:$0xff] }
 0x3aa   :  { %v2280_v60 = vsub.f32 1.0, %v2258_v31  ;;  %v2256_v35 = vmul.f32 %v2423_v57, %v2151_v7  ;;  %v2108_v4 = vadd.f32 0.0001, %v2092_v11  ;;  %v2094_v25 = vmul.f32 2.0, %v5279_v45 }
 0x3ab   :  { %v2138_v2 = vadd.f32 0.0009, %v2122_v39  ;;  %v2044_v5 = vadd.f32 %v2028_v19, %v4816_v27  ;;  %v2043_v55 = vadd.f32 %v2027_v17, %v4800_v3  ;;  %v2137_v14 = vadd.f32 0.0009, %v2121_v59  ;;  %v1997_v49 = vld [vmem:[#allocation2 + $0xa8] sm:$0xff] }
 0x3ac   :  { %v2296_v47 = vmul.f32 0.5, %v2280_v60  ;;  %v2279_v53 = vsub.f32 1.0, %v2256_v35  ;;  %v2107_v33 = vadd.f32 0.0001, %v2091_v43  ;;  %2434 = vrcp.f32 %v2237_v40 }
 0x3ad   :  { %v2154_v0 = vmul.f32 %v2138_v2, %v4768_v32  ;;  %v2060_v23 = vmul.f32 0.11111111, %v2044_v5  ;;  %v2059_v20 = vmul.f32 0.11111111, %v2043_v55  ;;  %v2153_v37 = vmul.f32 %v2137_v14, %v2105_v13 }
 0x3ae   :  { %v2312_v27 = vmax.f32 %v2296_v47, 0.0  ;;  %v2295_v18 = vmul.f32 0.5, %v2279_v53  ;;  %v2093_v31 = vmul.f32 2.0, %v5280_v42  ;;  %v2110_v14 = vadd.f32 0.0001, %v2094_v25 }
 0x3af   :  { %v2262_v10 = vmul.f32 %v2425_v15, %v2154_v0  ;;  %v2076_v3 = vsub.f32 %v2060_v23, %v5277_v51  ;;  %v2075_v21 = vsub.f32 %v2059_v20, %v5278_v63  ;;  %v1998_v41 = vld [vmem:[#allocation2 + $0xb0] sm:$0xff]  ;;  %v2260_v32 = vmul.f32 %v2427_v6, %v2153_v37 }
 0x3b0   :  { %v2014_v61 = vld [vmem:[#allocation2 + $0xb2] sm:$0xff]  ;;  %v2013_v9 = vld [vmem:[#allocation2 + $0xaa] sm:$0xff]  ;;  %v2311_v12 = vmax.f32 %v2295_v18, 0.0  ;;  %v2328_v24 = vmin.f32 %v2312_v27, 1.0  ;;  %v2109_v0 = vadd.f32 0.0001, %v2093_v31 }
 0x3b1   :  { %v2282_v34 = vsub.f32 1.0, %v2262_v10  ;;  %v2124_v28 = vmul.f32 2.0, %v2076_v3  ;;  %v2030_v38 = vadd.f32 %v2014_v61, %v1998_v41  ;;  %v2029_v56 = vadd.f32 %v2013_v9, %v1997_v49 }
 0x3b2   :  { %v2123_v1 = vmul.f32 2.0, %v2075_v21  ;;  %v2281_v36 = vsub.f32 1.0, %v2260_v32  ;;  %v2327_v30 = vmin.f32 %v2311_v12, 1.0  ;;  %v2352_v11 = vsel %vm366_vm4, %v2328_v24, 0.0 }
 0x3b3   :  { %v2298_v46 = vmul.f32 0.5, %v2282_v34  ;;  %v2140_v54 = vadd.f32 0.0009, %v2124_v28  ;;  %v2046_v26 = vadd.f32 %v2030_v38, %v1966_v22  ;;  %v2045_v52 = vadd.f32 %v2029_v56, %v4833_v16 }
 0x3b4   :  { %v2139_v48 = vadd.f32 0.0009, %v2123_v1  ;;  %v2297_v44 = vmul.f32 0.5, %v2281_v36  ;;  %v2350_v17 = vsel %vm366_vm4, %v2327_v30, 0.0  ;;  %v2431_v57 = vpop.eup %2430 }
 0x3b5   :  { %v2314_v8 = vmax.f32 %v2298_v46, 0.0  ;;  %v2156_v62 = vmul.f32 %v2140_v54, %v2108_v4  ;;  %v2062_v29 = vmul.f32 0.11111111, %v2046_v26  ;;  %v2061_v40 = vmul.f32 0.11111111, %v2045_v52  ;;  %v2433_v4 = vpop.eup %2432 }
 0x3b6   :  { %v2155_v39 = vmul.f32 %v2139_v48, %v2107_v33  ;;  %v2313_v19 = vmax.f32 %v2297_v44, 0.0  ;;  %v2351_v16 = vadd.f32 %v2350_v17, %v4839_v50 }
 0x3b7   :  { %v2078_v51 = vsub.f32 %v2062_v29, %v5279_v45  ;;  %v2266_v22 = vmul.f32 %v2429_v58, %v2156_v62  ;;  %v2077_v59 = vsub.f32 %v2061_v40, %v5280_v42  ;;  %v2330_v2 = vmin.f32 %v2314_v8, 1.0 }
 0x3b8   :  { %v2264_v7 = vmul.f32 %v2431_v57, %v2155_v39  ;;  %v2329_v60 = vmin.f32 %v2313_v19, 1.0  ;;  %v2353_v15 = vadd.f32 %v2352_v11, %v2351_v16 }
 0x3b9   :  { %v2126_v5 = vmul.f32 2.0, %v2078_v51  ;;  %v2284_v55 = vsub.f32 1.0, %v2266_v22  ;;  %v2125_v63 = vmul.f32 2.0, %v2077_v59  ;;  %v2356_v20 = vsel %vm366_vm4, %v2330_v2, 0.0  ;;  %v2435_v27 = vpop.eup %2434 }
 0x3ba   :  { %v2283_v43 = vsub.f32 1.0, %v2264_v7  ;;  %v2354_v13 = vsel %vm366_vm4, %v2329_v60, 0.0 }
 0x3bb   :  { %v2142_v35 = vadd.f32 0.0009, %v2126_v5  ;;  %v2300_v6 = vmul.f32 0.5, %v2284_v55  ;;  %v2355_v47 = vadd.f32 %v2354_v13, %v2353_v15  ;;  %v2141_v50 = vadd.f32 0.0009, %v2125_v63 }
 0x3bc   :  { %v2299_v23 = vmul.f32 0.5, %v2283_v43 }
 0x3bd   :  { %v2158_v45 = vmul.f32 %v2142_v35, %v2110_v14  ;;  %v2316_v37 = vmax.f32 %v2300_v6, 0.0  ;;  %v2357_v53 = vadd.f32 %v2356_v20, %v2355_v47  ;;  %v2157_v10 = vmul.f32 %v2141_v50, %v2109_v0 }
 0x3be   :  { %v2315_v3 = vmax.f32 %v2299_v23, 0.0 }
 0x3bf   :  { %v2270_v21 = vmul.f32 %v2433_v4, %v2158_v45  ;;  %v2268_v41 = vmul.f32 %v2435_v27, %v2157_v10  ;;  %v2332_v9 = vmin.f32 %v2316_v37, 1.0 }
 0x3c0   :  { %v2331_v61 = vmin.f32 %v2315_v3, 1.0 }
 0x3c1   :  { %v2286_v25 = vsub.f32 1.0, %v2270_v21  ;;  %v2285_v33 = vsub.f32 1.0, %v2268_v41  ;;  %v2360_v38 = vsel %vm366_vm4, %v2332_v9, 0.0 }
 0x3c2   :  { %v2358_v32 = vsel %vm366_vm4, %v2331_v61, 0.0 }
 0x3c3   :  { %v2302_v18 = vmul.f32 0.5, %v2286_v25  ;;  %v2359_v34 = vadd.f32 %v2358_v32, %v2357_v53  ;;  %v2301_v28 = vmul.f32 0.5, %v2285_v33 }
 0x3c5   :  { %v2318_v49 = vmax.f32 %v2302_v18, 0.0  ;;  %v2361_v56 = vadd.f32 %v2360_v38, %v2359_v34  ;;  %v2317_v1 = vmax.f32 %v2301_v28, 0.0 }
 0x3c7   :  { %v2333_v36 = vmin.f32 %v2317_v1, 1.0  ;;  %v2334_v12 = vmin.f32 %v2318_v49, 1.0 }
 0x3c9   :  { %v2362_v24 = vsel %vm366_vm4, %v2333_v36, 0.0  ;;  %v2364_v54 = vsel %vm366_vm4, %v2334_v12, 0.0 }
 0x3ca   :  { %v2363_v46 = vadd.f32 %v2362_v24, %v2361_v56 }
 0x3cc   :  { %v2365_v26 = vadd.f32 %v2364_v54, %v2363_v46 }
 0x3ce   :  { %2366 = vadd.xlane.f32.xlu0 %v2365_v26 }
 0x457   :  { %v2367_v52 = vpop.xlane.xlu0 %2366 }
 0x458   :  { %v2368_v48 = vrot.slane %v2367_v52, 4 }
 0x45a   :  { %v2369_v44 = vadd.f32 %v2368_v48, %v2367_v52 }
 0x45c   :  { %v2370_v30 = vrot.slane %v2369_v44, 2 }
 0x45e   :  { %v2371_v58 = vadd.f32 %v2370_v30, %v2369_v44 }
 0x460   :  { %v2372_v8 = vrot.slane %v2371_v58, 1 }
 0x462   :  { %v2373_v62 = vadd.f32 %v2372_v8, %v2371_v58 }
 0x464   :  { %2393 = vpush %v2373_v62 }
 0x495   :  { %s2394_s24 = spop %2393 }
 0x496   :  { %v2375_v29 = vstv %s2394_s24 }
 0x497   :  { %2376 = vst [vmem:[#allocation8] sm:$0x1] %v2375_v29 }
 0x498   :  { %2508 = shalt.err (!%p2505_p0)
}
 0x499   :  { %2386 = dma.vmem_to_hbm [thread:$0]  %s2384_s23, 16, %s4880_s2, [#allocation5]  }
 0x49a   :  { %2521 = dma.done.wait [#allocation5], 16  }
 0x49b   :  { %2522 = vsyncadd [#allocation5], 4294967280 }
 0x49c   :  { %2390 = vsyncpa [#allocation4], 1 }
 0x49d   :  { %2391 = vsyncpa [#allocation7], 1 }
 0x49e   :  { %2392 = vsyncpa [#allocation5], 1 }

</bundles_post_ra>
